<compile_context>
chip_gen: v6e
topology: v6e:2x2x1
jax: 0.10.0
libtpu: 0.0.40
codegen_flags: <defaults>
</compile_context>

<pallas_src>
import functools

import jax
import jax.numpy as jnp
from jax import lax
from jax.experimental import pallas as pl
from jax.experimental.pallas import tpu as pltpu  # noqa: F401  (kept for tuning hooks)

# Switch to jnp.bfloat16 on v6e/v7x for MXU throughput; accumulation stays f32.
_MATMUL_DTYPE = jnp.float32


# ----------------------------------------------------------------------------
# Fused decoder kernel
# ----------------------------------------------------------------------------

def _decoder_kernel(
    tok_ref, wemb_ref, pemb_ref, enc_ref, trg_m_ref, src_m_ref,
    sa_wq_ref, sa_wk_ref, sa_wv_ref, sa_wo_ref, sa_bo_ref, nrm_g_ref, nrm_b_ref,
    ca_wq_ref, ca_wk_ref, ca_wv_ref, ca_wo_ref, ca_bo_ref, nrm1_g_ref, nrm1_b_ref,
    w1_ref, b1_ref, w2_ref, b2_ref, nrm2_g_ref, nrm2_b_ref,
    wout_ref, bout_ref,
    o_ref,
    *, N, L, Lsrc, heads, eps,
):
    V, E = wemb_ref.shape
    D = E // heads
    num_layers = sa_wq_ref.shape[0]
    scale = 1.0 / (E ** 0.5)          # matches torch: energy / embed_size ** 0.5

    def mm(a, b):
        return jnp.dot(a.astype(_MATMUL_DTYPE), b.astype(_MATMUL_DTYPE),
                       preferred_element_type=jnp.float32)

    def layernorm(x, g, b):
        mu = jnp.mean(x, axis=-1, keepdims=True)
        xc = x - mu
        var = jnp.mean(xc * xc, axis=-1, keepdims=True)
        return xc * lax.rsqrt(var + eps) * g + b

    def attn_block(q2, kv2, Lk, wq, wk, wv, wo, bo, mask_for_batch):
        # q2: (N*L, E) query source, kv2: (N*Lk, E) key/value source.
        Q = mm(q2, wq)
        K = mm(kv2, wk)
        Vp = mm(kv2, wv)
        rows = []
        for n in range(N):
            qn = Q[n * L:(n + 1) * L]            # (L, E)
            kn = K[n * Lk:(n + 1) * Lk]          # (Lk, E)
            vn = Vp[n * Lk:(n + 1) * Lk]         # (Lk, E)
            mask_n = mask_for_batch(n)           # (L, Lk) or (1, Lk)
            per_head = []
            for h in range(heads):
                qh = qn[:, h * D:(h + 1) * D]
                kh = kn[:, h * D:(h + 1) * D]
                vh = vn[:, h * D:(h + 1) * D]
                energy = lax.dot_general(
                    qh.astype(_MATMUL_DTYPE), kh.astype(_MATMUL_DTYPE),
                    dimension_numbers=(((1,), (1,)), ((), ())),
                    preferred_element_type=jnp.float32)            # (L, Lk)
                energy = jnp.where(mask_n == 0, jnp.float32(-1e20), energy)
                s = energy * scale
                s = s - jnp.max(s, axis=-1, keepdims=True)
                p = jnp.exp(s)
                p = p * pl.reciprocal(jnp.sum(p, axis=-1, keepdims=True), approx=True)
                per_head.append(mm(p, vh))                         # (L, D)
            rows.append(jnp.concatenate(per_head, axis=-1))        # (L, E)
        a = jnp.concatenate(rows, axis=0)                          # (N*L, E)
        return mm(a, wo) + bo                                      # fc_out

    # --- embedding: one-hot token lookup (V tiny) + static positional slice ----------
    # TODO(synk): for production vocab sizes replace the one-hot matmul with a
    # scalar-prefetch / DMA row gather.
    tok = tok_ref[...]                                             # (N*L, 1) int32
    one_hot = (tok == lax.broadcasted_iota(jnp.int32, (N * L, V), 1)).astype(jnp.float32)
    x = mm(one_hot, wemb_ref[...])                                 # word embedding
    x = x + jnp.concatenate([pemb_ref[...]] * N, axis=0)           # positions = arange(L)
    # nn.Dropout after the embedding is identity (eval mode).

    enc2 = enc_ref[...]                                            # (N*Lsrc, E)

    for l in range(num_layers):
        # masked self-attention on x
        sa = attn_block(
            x, x, L,
            sa_wq_ref[l], sa_wk_ref[l], sa_wv_ref[l], sa_wo_ref[l], sa_bo_ref[l],
            lambda n: trg_m_ref[n])
        query = layernorm(sa + x, nrm_g_ref[l], nrm_b_ref[l])      # dropout = identity
        # cross-attention: keys / values from encoder output
        ca = attn_block(
            query, enc2, Lsrc,
            ca_wq_ref[l], ca_wk_ref[l], ca_wv_ref[l], ca_wo_ref[l], ca_bo_ref[l],
            lambda n: src_m_ref[n])
        y = layernorm(ca + query, nrm1_g_ref[l], nrm1_b_ref[l])    # dropout = identity
        # feed-forward
        h = jnp.maximum(mm(y, w1_ref[l]) + b1_ref[l], 0.0)
        f = mm(h, w2_ref[l]) + b2_ref[l]
        x = layernorm(f + y, nrm2_g_ref[l], nrm2_b_ref[l])         # dropout = identity

    o_ref[...] = mm(x, wout_ref[...]) + bout_ref[...]              # final fc_out


# ----------------------------------------------------------------------------
# Wrapper: one pallas_call for the whole decoder forward
# ----------------------------------------------------------------------------

def decoder_forward(params, x_tokens, enc_out, src_mask, trg_mask, embed_size, heads):
    N, L = x_tokens.shape
    Lsrc = enc_out.shape[1]
    E = embed_size
    V = params["wemb"].shape[0]

    tok = x_tokens.reshape(N * L, 1).astype(jnp.int32)
    pemb_slice = params["pemb"][:L]                    # static arange positions
    enc2 = enc_out.reshape(N * Lsrc, E)
    trg_m = trg_mask.reshape(N, L, L)                  # no per-head replication
    src_m = src_mask.reshape(N, 1, Lsrc)

    kern = functools.partial(_decoder_kernel, N=N, L=L, Lsrc=Lsrc, heads=heads, eps=1e-5)

    # TODO(synk): at production sizes (large E / N*L) tile the row dimension with a
    # grid ("parallel" semantics) and set vmem_limit_bytes for v7x's 64 MiB VMEM.
    logits = pl.pallas_call(
        kern,
        out_shape=jax.ShapeDtypeStruct((N * L, V), jnp.float32),
    )(
        tok, params["wemb"], pemb_slice, enc2, trg_m, src_m,
        params["sa_wq"], params["sa_wk"], params["sa_wv"], params["sa_wo"], params["sa_bo"],
        params["norm_g"], params["norm_b"],
        params["ca_wq"], params["ca_wk"], params["ca_wv"], params["ca_wo"], params["ca_bo"],
        params["norm1_g"], params["norm1_b"],
        params["w1"], params["b1"], params["w2"], params["b2"],
        params["norm2_g"], params["norm2_b"],
        params["w_out"], params["b_out"],
    )
    return logits.reshape(N, L, V)


# ----------------------------------------------------------------------------
# Deterministic parameter init (per-layer weights stacked along a leading axis)
# ----------------------------------------------------------------------------

def init_params(key, vocab, embed_size, num_layers, heads, forward_expansion, max_length):
    E = embed_size
    D = E // heads
    FF = forward_expansion * E

    def nrm(k, shape, scale=0.02):
        return (scale * jax.random.normal(k, shape)).astype(jnp.float32)

    eye_h = jnp.eye(heads, dtype=jnp.float32)

    def head_proj(k):
        # per-head Linear(D, D, bias=False) in (in, out) layout, folded into a
        # block-diagonal (E, E) matrix so all heads are projected by one matmul.
        return jnp.kron(eye_h, nrm(k, (D, D)))

    keys = jax.random.split(key, 3 + num_layers)
    params = {
        "wemb": nrm(keys[0], (vocab, E), 1.0),
        "pemb": nrm(keys[1], (max_length, E), 1.0),
        "w_out": nrm(keys[2], (E, vocab)),
        "b_out": jnp.zeros((1, vocab), jnp.float32),
    }

    names = ["sa_wq", "sa_wk", "sa_wv", "sa_wo", "sa_bo", "norm_g", "norm_b",
             "ca_wq", "ca_wk", "ca_wv", "ca_wo", "ca_bo", "norm1_g", "norm1_b",
             "w1", "b1", "w2", "b2", "norm2_g", "norm2_b"]
    stacks = {n: [] for n in names}
    for i in range(num_layers):
        lk = jax.random.split(keys[3 + i], 10)
        # DecoderBlock.attention (masked self-attention)
        stacks["sa_wv"].append(head_proj(lk[0]))
        stacks["sa_wk"].append(head_proj(lk[1]))
        stacks["sa_wq"].append(head_proj(lk[2]))
        stacks["sa_wo"].append(nrm(lk[3], (E, E)))
        stacks["sa_bo"].append(jnp.zeros((1, E), jnp.float32))
        stacks["norm_g"].append(jnp.ones((1, E), jnp.float32))
        stacks["norm_b"].append(jnp.zeros((1, E), jnp.float32))
        # TransformerBlock.attention (cross-attention)
        stacks["ca_wv"].append(head_proj(lk[4]))
        stacks["ca_wk"].append(head_proj(lk[5]))
        stacks["ca_wq"].append(head_proj(lk[6]))
        stacks["ca_wo"].append(nrm(lk[7], (E, E)))
        stacks["ca_bo"].append(jnp.zeros((1, E), jnp.float32))
        stacks["norm1_g"].append(jnp.ones((1, E), jnp.float32))
        stacks["norm1_b"].append(jnp.zeros((1, E), jnp.float32))
        # feed-forward
        stacks["w1"].append(nrm(lk[8], (E, FF)))
        stacks["b1"].append(jnp.zeros((1, FF), jnp.float32))
        stacks["w2"].append(nrm(lk[9], (FF, E)))
        stacks["b2"].append(jnp.zeros((1, E), jnp.float32))
        stacks["norm2_g"].append(jnp.ones((1, E), jnp.float32))
        stacks["norm2_b"].append(jnp.zeros((1, E), jnp.float32))
    for n in names:
        params[n] = jnp.stack(stacks[n], axis=0)
    return params


# ----------------------------------------------------------------------------
# Main
# ----------------------------------------------------------------------------

if __name__ == "__main__":
    N = 2                 # batch
    L = 8                 # target sequence length
    SRC_L = 8             # encoder sequence length
    EMBED = 32
    HEADS = 4
    NUM_LAYERS = 2
    FWD_EXP = 2
    VOCAB = 16
    MAX_LEN = 16

    root = jax.random.PRNGKey(0)
    k_par, k_tok, k_enc = jax.random.split(root, 3)

    params = init_params(k_par, VOCAB, EMBED, NUM_LAYERS, HEADS, FWD_EXP, MAX_LEN)

    x_tokens = jax.random.randint(k_tok, (N, L), 0, VOCAB, dtype=jnp.int32)
    enc_out = jax.random.normal(k_enc, (N, SRC_L, EMBED), dtype=jnp.float32)

    # masks (same conventions as the torch training script): causal target mask,
    # all-ones source mask
    trg_mask = jnp.tril(jnp.ones((L, L), jnp.float32)).reshape(1, 1, L, L)
    trg_mask = jnp.broadcast_to(trg_mask, (N, 1, L, L))
    src_mask = jnp.ones((N, 1, 1, SRC_L), jnp.float32)

    fwd = jax.jit(
        functools.partial(decoder_forward, embed_size=EMBED, heads=HEADS)
    )
    out = fwd(params, x_tokens, enc_out, src_mask, trg_mask)
    out = jax.block_until_ready(out)

    assert out.shape == (N, L, VOCAB), out.shape
    assert bool(jnp.all(jnp.isfinite(out)))
    print("KERNEL_OK")
</pallas_src>

<mosaic_0001>
module attributes {stable_mosaic.version = 11 : i64} {
  func.func @_decoder_kernel(%arg0: memref<16x1xi32, #tpu.memory_space<vmem>>, %arg1: memref<16x32xf32, #tpu.memory_space<vmem>>, %arg2: memref<8x32xf32, #tpu.memory_space<vmem>>, %arg3: memref<16x32xf32, #tpu.memory_space<vmem>>, %arg4: memref<2x8x8xf32, #tpu.memory_space<vmem>>, %arg5: memref<2x1x8xf32, #tpu.memory_space<vmem>>, %arg6: memref<2x32x32xf32, #tpu.memory_space<vmem>>, %arg7: memref<2x32x32xf32, #tpu.memory_space<vmem>>, %arg8: memref<2x32x32xf32, #tpu.memory_space<vmem>>, %arg9: memref<2x32x32xf32, #tpu.memory_space<vmem>>, %arg10: memref<2x1x32xf32, #tpu.memory_space<vmem>>, %arg11: memref<2x1x32xf32, #tpu.memory_space<vmem>>, %arg12: memref<2x1x32xf32, #tpu.memory_space<vmem>>, %arg13: memref<2x32x32xf32, #tpu.memory_space<vmem>>, %arg14: memref<2x32x32xf32, #tpu.memory_space<vmem>>, %arg15: memref<2x32x32xf32, #tpu.memory_space<vmem>>, %arg16: memref<2x32x32xf32, #tpu.memory_space<vmem>>, %arg17: memref<2x1x32xf32, #tpu.memory_space<vmem>>, %arg18: memref<2x1x32xf32, #tpu.memory_space<vmem>>, %arg19: memref<2x1x32xf32, #tpu.memory_space<vmem>>, %arg20: memref<2x32x64xf32, #tpu.memory_space<vmem>>, %arg21: memref<2x1x64xf32, #tpu.memory_space<vmem>>, %arg22: memref<2x64x32xf32, #tpu.memory_space<vmem>>, %arg23: memref<2x1x32xf32, #tpu.memory_space<vmem>>, %arg24: memref<2x1x32xf32, #tpu.memory_space<vmem>>, %arg25: memref<2x1x32xf32, #tpu.memory_space<vmem>>, %arg26: memref<32x16xf32, #tpu.memory_space<vmem>>, %arg27: memref<1x16xf32, #tpu.memory_space<vmem>>, %arg28: memref<16x16xf32, #tpu.memory_space<vmem>>) attributes {dimension_semantics = [], scalar_prefetch = 0 : i64, scratch_operands = 0 : i64, tpu.core_type = #tpu.core_type<tc>} {
    %c0 = arith.constant 0 : index
    %c0_0 = arith.constant 0 : index
    %0 = vector.load %arg0[%c0, %c0_0] : memref<16x1xi32, #tpu.memory_space<vmem>>, vector<16x1xi32>
    %1 = tpu.iota {dimensions = array<i32: 1>} : vector<16x16xi32>
    %2 = vector.broadcast %0 : vector<16x1xi32> to vector<16x16xi32>
    %3 = arith.cmpi eq, %2, %1 : vector<16x16xi32>
    %4 = arith.extui %3 : vector<16x16xi1> to vector<16x16xi32>
    %5 = arith.sitofp %4 : vector<16x16xi32> to vector<16x16xf32>
    %c0_1 = arith.constant 0 : index
    %c0_2 = arith.constant 0 : index
    %6 = vector.load %arg1[%c0_1, %c0_2] : memref<16x32xf32, #tpu.memory_space<vmem>>, vector<16x32xf32>
    %cst = arith.constant dense<0.000000e+00> : vector<16x32xf32>
    %7 = tpu.matmul %5, %6, %cst {dimension_numbers = #tpu.dot_dimension_numbers<[1], [0], [0], [1], [0, 0, 1, 1], [], []>} : vector<16x16xf32>, vector<16x32xf32>, vector<16x32xf32> -> vector<16x32xf32>
    %c0_3 = arith.constant 0 : index
    %c0_4 = arith.constant 0 : index
    %8 = vector.load %arg2[%c0_3, %c0_4] : memref<8x32xf32, #tpu.memory_space<vmem>>, vector<8x32xf32>
    %9 = tpu.concatenate %8, %8 in 0 : vector<8x32xf32>, vector<8x32xf32> -> vector<16x32xf32>
    %10 = arith.addf %7, %9 : vector<16x32xf32>
    %c0_5 = arith.constant 0 : index
    %c0_6 = arith.constant 0 : index
    %11 = vector.load %arg3[%c0_5, %c0_6] : memref<16x32xf32, #tpu.memory_space<vmem>>, vector<16x32xf32>
    %c0_7 = arith.constant 0 : index
    %c0_8 = arith.constant 0 : index
    %c0_9 = arith.constant 0 : index
    %12 = vector.load %arg6[%c0_7, %c0_8, %c0_9] : memref<2x32x32xf32, #tpu.memory_space<vmem>>, vector<1x32x32xf32>
    %13 = vector.shape_cast %12 : vector<1x32x32xf32> to vector<32x32xf32>
    %c0_10 = arith.constant 0 : index
    %c0_11 = arith.constant 0 : index
    %c0_12 = arith.constant 0 : index
    %14 = vector.load %arg7[%c0_10, %c0_11, %c0_12] : memref<2x32x32xf32, #tpu.memory_space<vmem>>, vector<1x32x32xf32>
    %15 = vector.shape_cast %14 : vector<1x32x32xf32> to vector<32x32xf32>
    %c0_13 = arith.constant 0 : index
    %c0_14 = arith.constant 0 : index
    %c0_15 = arith.constant 0 : index
    %16 = vector.load %arg8[%c0_13, %c0_14, %c0_15] : memref<2x32x32xf32, #tpu.memory_space<vmem>>, vector<1x32x32xf32>
    %17 = vector.shape_cast %16 : vector<1x32x32xf32> to vector<32x32xf32>
    %c0_16 = arith.constant 0 : index
    %c0_17 = arith.constant 0 : index
    %c0_18 = arith.constant 0 : index
    %18 = vector.load %arg9[%c0_16, %c0_17, %c0_18] : memref<2x32x32xf32, #tpu.memory_space<vmem>>, vector<1x32x32xf32>
    %19 = vector.shape_cast %18 : vector<1x32x32xf32> to vector<32x32xf32>
    %c0_19 = arith.constant 0 : index
    %c0_20 = arith.constant 0 : index
    %c0_21 = arith.constant 0 : index
    %20 = vector.load %arg10[%c0_19, %c0_20, %c0_21] : memref<2x1x32xf32, #tpu.memory_space<vmem>>, vector<1x1x32xf32>
    %21 = vector.shape_cast %20 : vector<1x1x32xf32> to vector<1x32xf32>
    %cst_22 = arith.constant dense<0.000000e+00> : vector<16x32xf32>
    %22 = tpu.matmul %10, %13, %cst_22 {dimension_numbers = #tpu.dot_dimension_numbers<[1], [0], [0], [1], [0, 0, 1, 1], [], []>} : vector<16x32xf32>, vector<32x32xf32>, vector<16x32xf32> -> vector<16x32xf32>
    %cst_23 = arith.constant dense<0.000000e+00> : vector<16x32xf32>
    %23 = tpu.matmul %10, %15, %cst_23 {dimension_numbers = #tpu.dot_dimension_numbers<[1], [0], [0], [1], [0, 0, 1, 1], [], []>} : vector<16x32xf32>, vector<32x32xf32>, vector<16x32xf32> -> vector<16x32xf32>
    %cst_24 = arith.constant dense<0.000000e+00> : vector<16x32xf32>
    %24 = tpu.matmul %10, %17, %cst_24 {dimension_numbers = #tpu.dot_dimension_numbers<[1], [0], [0], [1], [0, 0, 1, 1], [], []>} : vector<16x32xf32>, vector<32x32xf32>, vector<16x32xf32> -> vector<16x32xf32>
    %25 = vector.extract_strided_slice %22 {offsets = [0, 0], sizes = [8, 32], strides = [1, 1]} : vector<16x32xf32> to vector<8x32xf32>
    %26 = vector.extract_strided_slice %23 {offsets = [0, 0], sizes = [8, 32], strides = [1, 1]} : vector<16x32xf32> to vector<8x32xf32>
    %27 = vector.extract_strided_slice %24 {offsets = [0, 0], sizes = [8, 32], strides = [1, 1]} : vector<16x32xf32> to vector<8x32xf32>
    %c0_25 = arith.constant 0 : index
    %c0_26 = arith.constant 0 : index
    %c0_27 = arith.constant 0 : index
    %28 = vector.load %arg4[%c0_25, %c0_26, %c0_27] : memref<2x8x8xf32, #tpu.memory_space<vmem>>, vector<1x8x8xf32>
    %29 = vector.shape_cast %28 : vector<1x8x8xf32> to vector<8x8xf32>
    %30 = vector.extract_strided_slice %25 {offsets = [0, 0], sizes = [8, 8], strides = [1, 1]} : vector<8x32xf32> to vector<8x8xf32>
    %31 = vector.extract_strided_slice %26 {offsets = [0, 0], sizes = [8, 8], strides = [1, 1]} : vector<8x32xf32> to vector<8x8xf32>
    %32 = vector.extract_strided_slice %27 {offsets = [0, 0], sizes = [8, 8], strides = [1, 1]} : vector<8x32xf32> to vector<8x8xf32>
    %cst_28 = arith.constant dense<0.000000e+00> : vector<8x8xf32>
    %33 = tpu.matmul %30, %31, %cst_28 {dimension_numbers = #tpu.dot_dimension_numbers<[1], [1], [0], [0], [0, 0, 1, 0], [], []>} : vector<8x8xf32>, vector<8x8xf32>, vector<8x8xf32> -> vector<8x8xf32>
    %cst_29 = arith.constant 0.000000e+00 : f32
    %34 = vector.broadcast %cst_29 : f32 to vector<8x8xf32>
    %35 = arith.cmpf oeq, %29, %34 : vector<8x8xf32>
    %cst_30 = arith.constant -1.000000e+20 : f32
    %36 = vector.broadcast %cst_30 : f32 to vector<8x8xf32>
    %37 = arith.select %35, %36, %33 : vector<8x8xi1>, vector<8x8xf32>
    %cst_31 = arith.constant 0.176776692 : f32
    %38 = vector.broadcast %cst_31 : f32 to vector<8x8xf32>
    %39 = arith.mulf %37, %38 : vector<8x8xf32>
    %cst_32 = arith.constant dense<0xFF800000> : vector<8xf32>
    %40 = vector.multi_reduction <maximumf>, %39, %cst_32 [1] : vector<8x8xf32> to vector<8xf32>
    %41 = vector.shape_cast %40 : vector<8xf32> to vector<8x1xf32>
    %42 = vector.broadcast %41 : vector<8x1xf32> to vector<8x8xf32>
    %43 = arith.subf %39, %42 : vector<8x8xf32>
    %44 = math.exp %43 : vector<8x8xf32>
    %cst_33 = arith.constant dense<0.000000e+00> : vector<8xf32>
    %45 = vector.multi_reduction <add>, %44, %cst_33 [1] : vector<8x8xf32> to vector<8xf32>
    %46 = vector.shape_cast %45 : vector<8xf32> to vector<8x1xf32>
    %47 = tpu.reciprocal %46 {approx = true} : vector<8x1xf32> -> vector<8x1xf32>
    %48 = vector.broadcast %47 : vector<8x1xf32> to vector<8x8xf32>
    %49 = arith.mulf %44, %48 : vector<8x8xf32>
    %cst_34 = arith.constant dense<0.000000e+00> : vector<8x8xf32>
    %50 = tpu.matmul %49, %32, %cst_34 {dimension_numbers = #tpu.dot_dimension_numbers<[1], [0], [0], [1], [0, 0, 1, 1], [], []>} : vector<8x8xf32>, vector<8x8xf32>, vector<8x8xf32> -> vector<8x8xf32>
    %51 = vector.extract_strided_slice %25 {offsets = [0, 8], sizes = [8, 8], strides = [1, 1]} : vector<8x32xf32> to vector<8x8xf32>
    %52 = vector.extract_strided_slice %26 {offsets = [0, 8], sizes = [8, 8], strides = [1, 1]} : vector<8x32xf32> to vector<8x8xf32>
    %53 = vector.extract_strided_slice %27 {offsets = [0, 8], sizes = [8, 8], strides = [1, 1]} : vector<8x32xf32> to vector<8x8xf32>
    %cst_35 = arith.constant dense<0.000000e+00> : vector<8x8xf32>
    %54 = tpu.matmul %51, %52, %cst_35 {dimension_numbers = #tpu.dot_dimension_numbers<[1], [1], [0], [0], [0, 0, 1, 0], [], []>} : vector<8x8xf32>, vector<8x8xf32>, vector<8x8xf32> -> vector<8x8xf32>
    %cst_36 = arith.constant 0.000000e+00 : f32
    %55 = vector.broadcast %cst_36 : f32 to vector<8x8xf32>
    %56 = arith.cmpf oeq, %29, %55 : vector<8x8xf32>
    %cst_37 = arith.constant -1.000000e+20 : f32
    %57 = vector.broadcast %cst_37 : f32 to vector<8x8xf32>
    %58 = arith.select %56, %57, %54 : vector<8x8xi1>, vector<8x8xf32>
    %cst_38 = arith.constant 0.176776692 : f32
    %59 = vector.broadcast %cst_38 : f32 to vector<8x8xf32>
    %60 = arith.mulf %58, %59 : vector<8x8xf32>
    %cst_39 = arith.constant dense<0xFF800000> : vector<8xf32>
    %61 = vector.multi_reduction <maximumf>, %60, %cst_39 [1] : vector<8x8xf32> to vector<8xf32>
    %62 = vector.shape_cast %61 : vector<8xf32> to vector<8x1xf32>
    %63 = vector.broadcast %62 : vector<8x1xf32> to vector<8x8xf32>
    %64 = arith.subf %60, %63 : vector<8x8xf32>
    %65 = math.exp %64 : vector<8x8xf32>
    %cst_40 = arith.constant dense<0.000000e+00> : vector<8xf32>
    %66 = vector.multi_reduction <add>, %65, %cst_40 [1] : vector<8x8xf32> to vector<8xf32>
    %67 = vector.shape_cast %66 : vector<8xf32> to vector<8x1xf32>
    %68 = tpu.reciprocal %67 {approx = true} : vector<8x1xf32> -> vector<8x1xf32>
    %69 = vector.broadcast %68 : vector<8x1xf32> to vector<8x8xf32>
    %70 = arith.mulf %65, %69 : vector<8x8xf32>
    %cst_41 = arith.constant dense<0.000000e+00> : vector<8x8xf32>
    %71 = tpu.matmul %70, %53, %cst_41 {dimension_numbers = #tpu.dot_dimension_numbers<[1], [0], [0], [1], [0, 0, 1, 1], [], []>} : vector<8x8xf32>, vector<8x8xf32>, vector<8x8xf32> -> vector<8x8xf32>
    %72 = vector.extract_strided_slice %25 {offsets = [0, 16], sizes = [8, 8], strides = [1, 1]} : vector<8x32xf32> to vector<8x8xf32>
    %73 = vector.extract_strided_slice %26 {offsets = [0, 16], sizes = [8, 8], strides = [1, 1]} : vector<8x32xf32> to vector<8x8xf32>
    %74 = vector.extract_strided_slice %27 {offsets = [0, 16], sizes = [8, 8], strides = [1, 1]} : vector<8x32xf32> to vector<8x8xf32>
    %cst_42 = arith.constant dense<0.000000e+00> : vector<8x8xf32>
    %75 = tpu.matmul %72, %73, %cst_42 {dimension_numbers = #tpu.dot_dimension_numbers<[1], [1], [0], [0], [0, 0, 1, 0], [], []>} : vector<8x8xf32>, vector<8x8xf32>, vector<8x8xf32> -> vector<8x8xf32>
    %cst_43 = arith.constant 0.000000e+00 : f32
    %76 = vector.broadcast %cst_43 : f32 to vector<8x8xf32>
    %77 = arith.cmpf oeq, %29, %76 : vector<8x8xf32>
    %cst_44 = arith.constant -1.000000e+20 : f32
    %78 = vector.broadcast %cst_44 : f32 to vector<8x8xf32>
    %79 = arith.select %77, %78, %75 : vector<8x8xi1>, vector<8x8xf32>
    %cst_45 = arith.constant 0.176776692 : f32
    %80 = vector.broadcast %cst_45 : f32 to vector<8x8xf32>
    %81 = arith.mulf %79, %80 : vector<8x8xf32>
    %cst_46 = arith.constant dense<0xFF800000> : vector<8xf32>
    %82 = vector.multi_reduction <maximumf>, %81, %cst_46 [1] : vector<8x8xf32> to vector<8xf32>
    %83 = vector.shape_cast %82 : vector<8xf32> to vector<8x1xf32>
    %84 = vector.broadcast %83 : vector<8x1xf32> to vector<8x8xf32>
    %85 = arith.subf %81, %84 : vector<8x8xf32>
    %86 = math.exp %85 : vector<8x8xf32>
    %cst_47 = arith.constant dense<0.000000e+00> : vector<8xf32>
    %87 = vector.multi_reduction <add>, %86, %cst_47 [1] : vector<8x8xf32> to vector<8xf32>
    %88 = vector.shape_cast %87 : vector<8xf32> to vector<8x1xf32>
    %89 = tpu.reciprocal %88 {approx = true} : vector<8x1xf32> -> vector<8x1xf32>
    %90 = vector.broadcast %89 : vector<8x1xf32> to vector<8x8xf32>
    %91 = arith.mulf %86, %90 : vector<8x8xf32>
    %cst_48 = arith.constant dense<0.000000e+00> : vector<8x8xf32>
    %92 = tpu.matmul %91, %74, %cst_48 {dimension_numbers = #tpu.dot_dimension_numbers<[1], [0], [0], [1], [0, 0, 1, 1], [], []>} : vector<8x8xf32>, vector<8x8xf32>, vector<8x8xf32> -> vector<8x8xf32>
    %93 = vector.extract_strided_slice %25 {offsets = [0, 24], sizes = [8, 8], strides = [1, 1]} : vector<8x32xf32> to vector<8x8xf32>
    %94 = vector.extract_strided_slice %26 {offsets = [0, 24], sizes = [8, 8], strides = [1, 1]} : vector<8x32xf32> to vector<8x8xf32>
    %95 = vector.extract_strided_slice %27 {offsets = [0, 24], sizes = [8, 8], strides = [1, 1]} : vector<8x32xf32> to vector<8x8xf32>
    %cst_49 = arith.constant dense<0.000000e+00> : vector<8x8xf32>
    %96 = tpu.matmul %93, %94, %cst_49 {dimension_numbers = #tpu.dot_dimension_numbers<[1], [1], [0], [0], [0, 0, 1, 0], [], []>} : vector<8x8xf32>, vector<8x8xf32>, vector<8x8xf32> -> vector<8x8xf32>
    %cst_50 = arith.constant 0.000000e+00 : f32
    %97 = vector.broadcast %cst_50 : f32 to vector<8x8xf32>
    %98 = arith.cmpf oeq, %29, %97 : vector<8x8xf32>
    %cst_51 = arith.constant -1.000000e+20 : f32
    %99 = vector.broadcast %cst_51 : f32 to vector<8x8xf32>
    %100 = arith.select %98, %99, %96 : vector<8x8xi1>, vector<8x8xf32>
    %cst_52 = arith.constant 0.176776692 : f32
    %101 = vector.broadcast %cst_52 : f32 to vector<8x8xf32>
    %102 = arith.mulf %100, %101 : vector<8x8xf32>
    %cst_53 = arith.constant dense<0xFF800000> : vector<8xf32>
    %103 = vector.multi_reduction <maximumf>, %102, %cst_53 [1] : vector<8x8xf32> to vector<8xf32>
    %104 = vector.shape_cast %103 : vector<8xf32> to vector<8x1xf32>
    %105 = vector.broadcast %104 : vector<8x1xf32> to vector<8x8xf32>
    %106 = arith.subf %102, %105 : vector<8x8xf32>
    %107 = math.exp %106 : vector<8x8xf32>
    %cst_54 = arith.constant dense<0.000000e+00> : vector<8xf32>
    %108 = vector.multi_reduction <add>, %107, %cst_54 [1] : vector<8x8xf32> to vector<8xf32>
    %109 = vector.shape_cast %108 : vector<8xf32> to vector<8x1xf32>
    %110 = tpu.reciprocal %109 {approx = true} : vector<8x1xf32> -> vector<8x1xf32>
    %111 = vector.broadcast %110 : vector<8x1xf32> to vector<8x8xf32>
    %112 = arith.mulf %107, %111 : vector<8x8xf32>
    %cst_55 = arith.constant dense<0.000000e+00> : vector<8x8xf32>
    %113 = tpu.matmul %112, %95, %cst_55 {dimension_numbers = #tpu.dot_dimension_numbers<[1], [0], [0], [1], [0, 0, 1, 1], [], []>} : vector<8x8xf32>, vector<8x8xf32>, vector<8x8xf32> -> vector<8x8xf32>
    %114 = tpu.concatenate %50, %71, %92, %113 in 1 : vector<8x8xf32>, vector<8x8xf32>, vector<8x8xf32>, vector<8x8xf32> -> vector<8x32xf32>
    %115 = vector.extract_strided_slice %22 {offsets = [8, 0], sizes = [8, 32], strides = [1, 1]} : vector<16x32xf32> to vector<8x32xf32>
    %116 = vector.extract_strided_slice %23 {offsets = [8, 0], sizes = [8, 32], strides = [1, 1]} : vector<16x32xf32> to vector<8x32xf32>
    %117 = vector.extract_strided_slice %24 {offsets = [8, 0], sizes = [8, 32], strides = [1, 1]} : vector<16x32xf32> to vector<8x32xf32>
    %c1 = arith.constant 1 : index
    %c0_56 = arith.constant 0 : index
    %c0_57 = arith.constant 0 : index
    %118 = vector.load %arg4[%c1, %c0_56, %c0_57] : memref<2x8x8xf32, #tpu.memory_space<vmem>>, vector<1x8x8xf32>
    %119 = vector.shape_cast %118 : vector<1x8x8xf32> to vector<8x8xf32>
    %120 = vector.extract_strided_slice %115 {offsets = [0, 0], sizes = [8, 8], strides = [1, 1]} : vector<8x32xf32> to vector<8x8xf32>
    %121 = vector.extract_strided_slice %116 {offsets = [0, 0], sizes = [8, 8], strides = [1, 1]} : vector<8x32xf32> to vector<8x8xf32>
    %122 = vector.extract_strided_slice %117 {offsets = [0, 0], sizes = [8, 8], strides = [1, 1]} : vector<8x32xf32> to vector<8x8xf32>
    %cst_58 = arith.constant dense<0.000000e+00> : vector<8x8xf32>
    %123 = tpu.matmul %120, %121, %cst_58 {dimension_numbers = #tpu.dot_dimension_numbers<[1], [1], [0], [0], [0, 0, 1, 0], [], []>} : vector<8x8xf32>, vector<8x8xf32>, vector<8x8xf32> -> vector<8x8xf32>
    %cst_59 = arith.constant 0.000000e+00 : f32
    %124 = vector.broadcast %cst_59 : f32 to vector<8x8xf32>
    %125 = arith.cmpf oeq, %119, %124 : vector<8x8xf32>
    %cst_60 = arith.constant -1.000000e+20 : f32
    %126 = vector.broadcast %cst_60 : f32 to vector<8x8xf32>
    %127 = arith.select %125, %126, %123 : vector<8x8xi1>, vector<8x8xf32>
    %cst_61 = arith.constant 0.176776692 : f32
    %128 = vector.broadcast %cst_61 : f32 to vector<8x8xf32>
    %129 = arith.mulf %127, %128 : vector<8x8xf32>
    %cst_62 = arith.constant dense<0xFF800000> : vector<8xf32>
    %130 = vector.multi_reduction <maximumf>, %129, %cst_62 [1] : vector<8x8xf32> to vector<8xf32>
    %131 = vector.shape_cast %130 : vector<8xf32> to vector<8x1xf32>
    %132 = vector.broadcast %131 : vector<8x1xf32> to vector<8x8xf32>
    %133 = arith.subf %129, %132 : vector<8x8xf32>
    %134 = math.exp %133 : vector<8x8xf32>
    %cst_63 = arith.constant dense<0.000000e+00> : vector<8xf32>
    %135 = vector.multi_reduction <add>, %134, %cst_63 [1] : vector<8x8xf32> to vector<8xf32>
    %136 = vector.shape_cast %135 : vector<8xf32> to vector<8x1xf32>
    %137 = tpu.reciprocal %136 {approx = true} : vector<8x1xf32> -> vector<8x1xf32>
    %138 = vector.broadcast %137 : vector<8x1xf32> to vector<8x8xf32>
    %139 = arith.mulf %134, %138 : vector<8x8xf32>
    %cst_64 = arith.constant dense<0.000000e+00> : vector<8x8xf32>
    %140 = tpu.matmul %139, %122, %cst_64 {dimension_numbers = #tpu.dot_dimension_numbers<[1], [0], [0], [1], [0, 0, 1, 1], [], []>} : vector<8x8xf32>, vector<8x8xf32>, vector<8x8xf32> -> vector<8x8xf32>
    %141 = vector.extract_strided_slice %115 {offsets = [0, 8], sizes = [8, 8], strides = [1, 1]} : vector<8x32xf32> to vector<8x8xf32>
    %142 = vector.extract_strided_slice %116 {offsets = [0, 8], sizes = [8, 8], strides = [1, 1]} : vector<8x32xf32> to vector<8x8xf32>
    %143 = vector.extract_strided_slice %117 {offsets = [0, 8], sizes = [8, 8], strides = [1, 1]} : vector<8x32xf32> to vector<8x8xf32>
    %cst_65 = arith.constant dense<0.000000e+00> : vector<8x8xf32>
    %144 = tpu.matmul %141, %142, %cst_65 {dimension_numbers = #tpu.dot_dimension_numbers<[1], [1], [0], [0], [0, 0, 1, 0], [], []>} : vector<8x8xf32>, vector<8x8xf32>, vector<8x8xf32> -> vector<8x8xf32>
    %cst_66 = arith.constant 0.000000e+00 : f32
    %145 = vector.broadcast %cst_66 : f32 to vector<8x8xf32>
    %146 = arith.cmpf oeq, %119, %145 : vector<8x8xf32>
    %cst_67 = arith.constant -1.000000e+20 : f32
    %147 = vector.broadcast %cst_67 : f32 to vector<8x8xf32>
    %148 = arith.select %146, %147, %144 : vector<8x8xi1>, vector<8x8xf32>
    %cst_68 = arith.constant 0.176776692 : f32
    %149 = vector.broadcast %cst_68 : f32 to vector<8x8xf32>
    %150 = arith.mulf %148, %149 : vector<8x8xf32>
    %cst_69 = arith.constant dense<0xFF800000> : vector<8xf32>
    %151 = vector.multi_reduction <maximumf>, %150, %cst_69 [1] : vector<8x8xf32> to vector<8xf32>
    %152 = vector.shape_cast %151 : vector<8xf32> to vector<8x1xf32>
    %153 = vector.broadcast %152 : vector<8x1xf32> to vector<8x8xf32>
    %154 = arith.subf %150, %153 : vector<8x8xf32>
    %155 = math.exp %154 : vector<8x8xf32>
    %cst_70 = arith.constant dense<0.000000e+00> : vector<8xf32>
    %156 = vector.multi_reduction <add>, %155, %cst_70 [1] : vector<8x8xf32> to vector<8xf32>
    %157 = vector.shape_cast %156 : vector<8xf32> to vector<8x1xf32>
    %158 = tpu.reciprocal %157 {approx = true} : vector<8x1xf32> -> vector<8x1xf32>
    %159 = vector.broadcast %158 : vector<8x1xf32> to vector<8x8xf32>
    %160 = arith.mulf %155, %159 : vector<8x8xf32>
    %cst_71 = arith.constant dense<0.000000e+00> : vector<8x8xf32>
    %161 = tpu.matmul %160, %143, %cst_71 {dimension_numbers = #tpu.dot_dimension_numbers<[1], [0], [0], [1], [0, 0, 1, 1], [], []>} : vector<8x8xf32>, vector<8x8xf32>, vector<8x8xf32> -> vector<8x8xf32>
    %162 = vector.extract_strided_slice %115 {offsets = [0, 16], sizes = [8, 8], strides = [1, 1]} : vector<8x32xf32> to vector<8x8xf32>
    %163 = vector.extract_strided_slice %116 {offsets = [0, 16], sizes = [8, 8], strides = [1, 1]} : vector<8x32xf32> to vector<8x8xf32>
    %164 = vector.extract_strided_slice %117 {offsets = [0, 16], sizes = [8, 8], strides = [1, 1]} : vector<8x32xf32> to vector<8x8xf32>
    %cst_72 = arith.constant dense<0.000000e+00> : vector<8x8xf32>
    %165 = tpu.matmul %162, %163, %cst_72 {dimension_numbers = #tpu.dot_dimension_numbers<[1], [1], [0], [0], [0, 0, 1, 0], [], []>} : vector<8x8xf32>, vector<8x8xf32>, vector<8x8xf32> -> vector<8x8xf32>
    %cst_73 = arith.constant 0.000000e+00 : f32
    %166 = vector.broadcast %cst_73 : f32 to vector<8x8xf32>
    %167 = arith.cmpf oeq, %119, %166 : vector<8x8xf32>
    %cst_74 = arith.constant -1.000000e+20 : f32
    %168 = vector.broadcast %cst_74 : f32 to vector<8x8xf32>
    %169 = arith.select %167, %168, %165 : vector<8x8xi1>, vector<8x8xf32>
    %cst_75 = arith.constant 0.176776692 : f32
    %170 = vector.broadcast %cst_75 : f32 to vector<8x8xf32>
    %171 = arith.mulf %169, %170 : vector<8x8xf32>
    %cst_76 = arith.constant dense<0xFF800000> : vector<8xf32>
    %172 = vector.multi_reduction <maximumf>, %171, %cst_76 [1] : vector<8x8xf32> to vector<8xf32>
    %173 = vector.shape_cast %172 : vector<8xf32> to vector<8x1xf32>
    %174 = vector.broadcast %173 : vector<8x1xf32> to vector<8x8xf32>
    %175 = arith.subf %171, %174 : vector<8x8xf32>
    %176 = math.exp %175 : vector<8x8xf32>
    %cst_77 = arith.constant dense<0.000000e+00> : vector<8xf32>
    %177 = vector.multi_reduction <add>, %176, %cst_77 [1] : vector<8x8xf32> to vector<8xf32>
    %178 = vector.shape_cast %177 : vector<8xf32> to vector<8x1xf32>
    %179 = tpu.reciprocal %178 {approx = true} : vector<8x1xf32> -> vector<8x1xf32>
    %180 = vector.broadcast %179 : vector<8x1xf32> to vector<8x8xf32>
    %181 = arith.mulf %176, %180 : vector<8x8xf32>
    %cst_78 = arith.constant dense<0.000000e+00> : vector<8x8xf32>
    %182 = tpu.matmul %181, %164, %cst_78 {dimension_numbers = #tpu.dot_dimension_numbers<[1], [0], [0], [1], [0, 0, 1, 1], [], []>} : vector<8x8xf32>, vector<8x8xf32>, vector<8x8xf32> -> vector<8x8xf32>
    %183 = vector.extract_strided_slice %115 {offsets = [0, 24], sizes = [8, 8], strides = [1, 1]} : vector<8x32xf32> to vector<8x8xf32>
    %184 = vector.extract_strided_slice %116 {offsets = [0, 24], sizes = [8, 8], strides = [1, 1]} : vector<8x32xf32> to vector<8x8xf32>
    %185 = vector.extract_strided_slice %117 {offsets = [0, 24], sizes = [8, 8], strides = [1, 1]} : vector<8x32xf32> to vector<8x8xf32>
    %cst_79 = arith.constant dense<0.000000e+00> : vector<8x8xf32>
    %186 = tpu.matmul %183, %184, %cst_79 {dimension_numbers = #tpu.dot_dimension_numbers<[1], [1], [0], [0], [0, 0, 1, 0], [], []>} : vector<8x8xf32>, vector<8x8xf32>, vector<8x8xf32> -> vector<8x8xf32>
    %cst_80 = arith.constant 0.000000e+00 : f32
    %187 = vector.broadcast %cst_80 : f32 to vector<8x8xf32>
    %188 = arith.cmpf oeq, %119, %187 : vector<8x8xf32>
    %cst_81 = arith.constant -1.000000e+20 : f32
    %189 = vector.broadcast %cst_81 : f32 to vector<8x8xf32>
    %190 = arith.select %188, %189, %186 : vector<8x8xi1>, vector<8x8xf32>
    %cst_82 = arith.constant 0.176776692 : f32
    %191 = vector.broadcast %cst_82 : f32 to vector<8x8xf32>
    %192 = arith.mulf %190, %191 : vector<8x8xf32>
    %cst_83 = arith.constant dense<0xFF800000> : vector<8xf32>
    %193 = vector.multi_reduction <maximumf>, %192, %cst_83 [1] : vector<8x8xf32> to vector<8xf32>
    %194 = vector.shape_cast %193 : vector<8xf32> to vector<8x1xf32>
    %195 = vector.broadcast %194 : vector<8x1xf32> to vector<8x8xf32>
    %196 = arith.subf %192, %195 : vector<8x8xf32>
    %197 = math.exp %196 : vector<8x8xf32>
    %cst_84 = arith.constant dense<0.000000e+00> : vector<8xf32>
    %198 = vector.multi_reduction <add>, %197, %cst_84 [1] : vector<8x8xf32> to vector<8xf32>
    %199 = vector.shape_cast %198 : vector<8xf32> to vector<8x1xf32>
    %200 = tpu.reciprocal %199 {approx = true} : vector<8x1xf32> -> vector<8x1xf32>
    %201 = vector.broadcast %200 : vector<8x1xf32> to vector<8x8xf32>
    %202 = arith.mulf %197, %201 : vector<8x8xf32>
    %cst_85 = arith.constant dense<0.000000e+00> : vector<8x8xf32>
    %203 = tpu.matmul %202, %185, %cst_85 {dimension_numbers = #tpu.dot_dimension_numbers<[1], [0], [0], [1], [0, 0, 1, 1], [], []>} : vector<8x8xf32>, vector<8x8xf32>, vector<8x8xf32> -> vector<8x8xf32>
    %204 = tpu.concatenate %140, %161, %182, %203 in 1 : vector<8x8xf32>, vector<8x8xf32>, vector<8x8xf32>, vector<8x8xf32> -> vector<8x32xf32>
    %205 = tpu.concatenate %114, %204 in 0 : vector<8x32xf32>, vector<8x32xf32> -> vector<16x32xf32>
    %cst_86 = arith.constant dense<0.000000e+00> : vector<16x32xf32>
    %206 = tpu.matmul %205, %19, %cst_86 {dimension_numbers = #tpu.dot_dimension_numbers<[1], [0], [0], [1], [0, 0, 1, 1], [], []>} : vector<16x32xf32>, vector<32x32xf32>, vector<16x32xf32> -> vector<16x32xf32>
    %207 = vector.broadcast %21 : vector<1x32xf32> to vector<16x32xf32>
    %208 = arith.addf %206, %207 : vector<16x32xf32>
    %209 = arith.addf %208, %10 : vector<16x32xf32>
    %c0_87 = arith.constant 0 : index
    %c0_88 = arith.constant 0 : index
    %c0_89 = arith.constant 0 : index
    %210 = vector.load %arg11[%c0_87, %c0_88, %c0_89] : memref<2x1x32xf32, #tpu.memory_space<vmem>>, vector<1x1x32xf32>
    %211 = vector.shape_cast %210 : vector<1x1x32xf32> to vector<1x32xf32>
    %c0_90 = arith.constant 0 : index
    %c0_91 = arith.constant 0 : index
    %c0_92 = arith.constant 0 : index
    %212 = vector.load %arg12[%c0_90, %c0_91, %c0_92] : memref<2x1x32xf32, #tpu.memory_space<vmem>>, vector<1x1x32xf32>
    %213 = vector.shape_cast %212 : vector<1x1x32xf32> to vector<1x32xf32>
    %cst_93 = arith.constant dense<0.000000e+00> : vector<16xf32>
    %214 = vector.multi_reduction <add>, %209, %cst_93 [1] : vector<16x32xf32> to vector<16xf32>
    %215 = vector.shape_cast %214 : vector<16xf32> to vector<16x1xf32>
    %cst_94 = arith.constant 3.200000e+01 : f32
    %216 = vector.broadcast %cst_94 : f32 to vector<16x1xf32>
    %217 = arith.divf %215, %216 : vector<16x1xf32>
    %218 = vector.broadcast %217 : vector<16x1xf32> to vector<16x32xf32>
    %219 = arith.subf %209, %218 : vector<16x32xf32>
    %220 = arith.mulf %219, %219 : vector<16x32xf32>
    %cst_95 = arith.constant dense<0.000000e+00> : vector<16xf32>
    %221 = vector.multi_reduction <add>, %220, %cst_95 [1] : vector<16x32xf32> to vector<16xf32>
    %222 = vector.shape_cast %221 : vector<16xf32> to vector<16x1xf32>
    %cst_96 = arith.constant 3.200000e+01 : f32
    %223 = vector.broadcast %cst_96 : f32 to vector<16x1xf32>
    %224 = arith.divf %222, %223 : vector<16x1xf32>
    %cst_97 = arith.constant 9.99999974E-6 : f32
    %225 = vector.broadcast %cst_97 : f32 to vector<16x1xf32>
    %226 = arith.addf %224, %225 : vector<16x1xf32>
    %227 = math.rsqrt %226 : vector<16x1xf32>
    %228 = vector.broadcast %227 : vector<16x1xf32> to vector<16x32xf32>
    %229 = arith.mulf %219, %228 : vector<16x32xf32>
    %230 = vector.broadcast %211 : vector<1x32xf32> to vector<16x32xf32>
    %231 = arith.mulf %229, %230 : vector<16x32xf32>
    %232 = vector.broadcast %213 : vector<1x32xf32> to vector<16x32xf32>
    %233 = arith.addf %231, %232 : vector<16x32xf32>
    %c0_98 = arith.constant 0 : index
    %c0_99 = arith.constant 0 : index
    %c0_100 = arith.constant 0 : index
    %234 = vector.load %arg13[%c0_98, %c0_99, %c0_100] : memref<2x32x32xf32, #tpu.memory_space<vmem>>, vector<1x32x32xf32>
    %235 = vector.shape_cast %234 : vector<1x32x32xf32> to vector<32x32xf32>
    %c0_101 = arith.constant 0 : index
    %c0_102 = arith.constant 0 : index
    %c0_103 = arith.constant 0 : index
    %236 = vector.load %arg14[%c0_101, %c0_102, %c0_103] : memref<2x32x32xf32, #tpu.memory_space<vmem>>, vector<1x32x32xf32>
    %237 = vector.shape_cast %236 : vector<1x32x32xf32> to vector<32x32xf32>
    %c0_104 = arith.constant 0 : index
    %c0_105 = arith.constant 0 : index
    %c0_106 = arith.constant 0 : index
    %238 = vector.load %arg15[%c0_104, %c0_105, %c0_106] : memref<2x32x32xf32, #tpu.memory_space<vmem>>, vector<1x32x32xf32>
    %239 = vector.shape_cast %238 : vector<1x32x32xf32> to vector<32x32xf32>
    %c0_107 = arith.constant 0 : index
    %c0_108 = arith.constant 0 : index
    %c0_109 = arith.constant 0 : index
    %240 = vector.load %arg16[%c0_107, %c0_108, %c0_109] : memref<2x32x32xf32, #tpu.memory_space<vmem>>, vector<1x32x32xf32>
    %241 = vector.shape_cast %240 : vector<1x32x32xf32> to vector<32x32xf32>
    %c0_110 = arith.constant 0 : index
    %c0_111 = arith.constant 0 : index
    %c0_112 = arith.constant 0 : index
    %242 = vector.load %arg17[%c0_110, %c0_111, %c0_112] : memref<2x1x32xf32, #tpu.memory_space<vmem>>, vector<1x1x32xf32>
    %243 = vector.shape_cast %242 : vector<1x1x32xf32> to vector<1x32xf32>
    %cst_113 = arith.constant dense<0.000000e+00> : vector<16x32xf32>
    %244 = tpu.matmul %233, %235, %cst_113 {dimension_numbers = #tpu.dot_dimension_numbers<[1], [0], [0], [1], [0, 0, 1, 1], [], []>} : vector<16x32xf32>, vector<32x32xf32>, vector<16x32xf32> -> vector<16x32xf32>
    %cst_114 = arith.constant dense<0.000000e+00> : vector<16x32xf32>
    %245 = tpu.matmul %11, %237, %cst_114 {dimension_numbers = #tpu.dot_dimension_numbers<[1], [0], [0], [1], [0, 0, 1, 1], [], []>} : vector<16x32xf32>, vector<32x32xf32>, vector<16x32xf32> -> vector<16x32xf32>
    %cst_115 = arith.constant dense<0.000000e+00> : vector<16x32xf32>
    %246 = tpu.matmul %11, %239, %cst_115 {dimension_numbers = #tpu.dot_dimension_numbers<[1], [0], [0], [1], [0, 0, 1, 1], [], []>} : vector<16x32xf32>, vector<32x32xf32>, vector<16x32xf32> -> vector<16x32xf32>
    %247 = vector.extract_strided_slice %244 {offsets = [0, 0], sizes = [8, 32], strides = [1, 1]} : vector<16x32xf32> to vector<8x32xf32>
    %248 = vector.extract_strided_slice %245 {offsets = [0, 0], sizes = [8, 32], strides = [1, 1]} : vector<16x32xf32> to vector<8x32xf32>
    %249 = vector.extract_strided_slice %246 {offsets = [0, 0], sizes = [8, 32], strides = [1, 1]} : vector<16x32xf32> to vector<8x32xf32>
    %c0_116 = arith.constant 0 : index
    %c0_117 = arith.constant 0 : index
    %c0_118 = arith.constant 0 : index
    %250 = vector.load %arg5[%c0_116, %c0_117, %c0_118] : memref<2x1x8xf32, #tpu.memory_space<vmem>>, vector<1x1x8xf32>
    %251 = vector.shape_cast %250 : vector<1x1x8xf32> to vector<1x8xf32>
    %252 = vector.extract_strided_slice %247 {offsets = [0, 0], sizes = [8, 8], strides = [1, 1]} : vector<8x32xf32> to vector<8x8xf32>
    %253 = vector.extract_strided_slice %248 {offsets = [0, 0], sizes = [8, 8], strides = [1, 1]} : vector<8x32xf32> to vector<8x8xf32>
    %254 = vector.extract_strided_slice %249 {offsets = [0, 0], sizes = [8, 8], strides = [1, 1]} : vector<8x32xf32> to vector<8x8xf32>
    %cst_119 = arith.constant dense<0.000000e+00> : vector<8x8xf32>
    %255 = tpu.matmul %252, %253, %cst_119 {dimension_numbers = #tpu.dot_dimension_numbers<[1], [1], [0], [0], [0, 0, 1, 0], [], []>} : vector<8x8xf32>, vector<8x8xf32>, vector<8x8xf32> -> vector<8x8xf32>
    %cst_120 = arith.constant 0.000000e+00 : f32
    %256 = vector.broadcast %cst_120 : f32 to vector<1x8xf32>
    %257 = arith.cmpf oeq, %251, %256 : vector<1x8xf32>
    %cst_121 = arith.constant -1.000000e+20 : f32
    %258 = vector.shape_cast %257 : vector<1x8xi1> to vector<1x8xi1>
    %259 = vector.broadcast %258 : vector<1x8xi1> to vector<8x8xi1>
    %260 = vector.broadcast %cst_121 : f32 to vector<8x8xf32>
    %261 = arith.select %259, %260, %255 : vector<8x8xi1>, vector<8x8xf32>
    %cst_122 = arith.constant 0.176776692 : f32
    %262 = vector.broadcast %cst_122 : f32 to vector<8x8xf32>
    %263 = arith.mulf %261, %262 : vector<8x8xf32>
    %cst_123 = arith.constant dense<0xFF800000> : vector<8xf32>
    %264 = vector.multi_reduction <maximumf>, %263, %cst_123 [1] : vector<8x8xf32> to vector<8xf32>
    %265 = vector.shape_cast %264 : vector<8xf32> to vector<8x1xf32>
    %266 = vector.broadcast %265 : vector<8x1xf32> to vector<8x8xf32>
    %267 = arith.subf %263, %266 : vector<8x8xf32>
    %268 = math.exp %267 : vector<8x8xf32>
    %cst_124 = arith.constant dense<0.000000e+00> : vector<8xf32>
    %269 = vector.multi_reduction <add>, %268, %cst_124 [1] : vector<8x8xf32> to vector<8xf32>
    %270 = vector.shape_cast %269 : vector<8xf32> to vector<8x1xf32>
    %271 = tpu.reciprocal %270 {approx = true} : vector<8x1xf32> -> vector<8x1xf32>
    %272 = vector.broadcast %271 : vector<8x1xf32> to vector<8x8xf32>
    %273 = arith.mulf %268, %272 : vector<8x8xf32>
    %cst_125 = arith.constant dense<0.000000e+00> : vector<8x8xf32>
    %274 = tpu.matmul %273, %254, %cst_125 {dimension_numbers = #tpu.dot_dimension_numbers<[1], [0], [0], [1], [0, 0, 1, 1], [], []>} : vector<8x8xf32>, vector<8x8xf32>, vector<8x8xf32> -> vector<8x8xf32>
    %275 = vector.extract_strided_slice %247 {offsets = [0, 8], sizes = [8, 8], strides = [1, 1]} : vector<8x32xf32> to vector<8x8xf32>
    %276 = vector.extract_strided_slice %248 {offsets = [0, 8], sizes = [8, 8], strides = [1, 1]} : vector<8x32xf32> to vector<8x8xf32>
    %277 = vector.extract_strided_slice %249 {offsets = [0, 8], sizes = [8, 8], strides = [1, 1]} : vector<8x32xf32> to vector<8x8xf32>
    %cst_126 = arith.constant dense<0.000000e+00> : vector<8x8xf32>
    %278 = tpu.matmul %275, %276, %cst_126 {dimension_numbers = #tpu.dot_dimension_numbers<[1], [1], [0], [0], [0, 0, 1, 0], [], []>} : vector<8x8xf32>, vector<8x8xf32>, vector<8x8xf32> -> vector<8x8xf32>
    %cst_127 = arith.constant 0.000000e+00 : f32
    %279 = vector.broadcast %cst_127 : f32 to vector<1x8xf32>
    %280 = arith.cmpf oeq, %251, %279 : vector<1x8xf32>
    %cst_128 = arith.constant -1.000000e+20 : f32
    %281 = vector.shape_cast %280 : vector<1x8xi1> to vector<1x8xi1>
    %282 = vector.broadcast %281 : vector<1x8xi1> to vector<8x8xi1>
    %283 = vector.broadcast %cst_128 : f32 to vector<8x8xf32>
    %284 = arith.select %282, %283, %278 : vector<8x8xi1>, vector<8x8xf32>
    %cst_129 = arith.constant 0.176776692 : f32
    %285 = vector.broadcast %cst_129 : f32 to vector<8x8xf32>
    %286 = arith.mulf %284, %285 : vector<8x8xf32>
    %cst_130 = arith.constant dense<0xFF800000> : vector<8xf32>
    %287 = vector.multi_reduction <maximumf>, %286, %cst_130 [1] : vector<8x8xf32> to vector<8xf32>
    %288 = vector.shape_cast %287 : vector<8xf32> to vector<8x1xf32>
    %289 = vector.broadcast %288 : vector<8x1xf32> to vector<8x8xf32>
    %290 = arith.subf %286, %289 : vector<8x8xf32>
    %291 = math.exp %290 : vector<8x8xf32>
    %cst_131 = arith.constant dense<0.000000e+00> : vector<8xf32>
    %292 = vector.multi_reduction <add>, %291, %cst_131 [1] : vector<8x8xf32> to vector<8xf32>
    %293 = vector.shape_cast %292 : vector<8xf32> to vector<8x1xf32>
    %294 = tpu.reciprocal %293 {approx = true} : vector<8x1xf32> -> vector<8x1xf32>
    %295 = vector.broadcast %294 : vector<8x1xf32> to vector<8x8xf32>
    %296 = arith.mulf %291, %295 : vector<8x8xf32>
    %cst_132 = arith.constant dense<0.000000e+00> : vector<8x8xf32>
    %297 = tpu.matmul %296, %277, %cst_132 {dimension_numbers = #tpu.dot_dimension_numbers<[1], [0], [0], [1], [0, 0, 1, 1], [], []>} : vector<8x8xf32>, vector<8x8xf32>, vector<8x8xf32> -> vector<8x8xf32>
    %298 = vector.extract_strided_slice %247 {offsets = [0, 16], sizes = [8, 8], strides = [1, 1]} : vector<8x32xf32> to vector<8x8xf32>
    %299 = vector.extract_strided_slice %248 {offsets = [0, 16], sizes = [8, 8], strides = [1, 1]} : vector<8x32xf32> to vector<8x8xf32>
    %300 = vector.extract_strided_slice %249 {offsets = [0, 16], sizes = [8, 8], strides = [1, 1]} : vector<8x32xf32> to vector<8x8xf32>
    %cst_133 = arith.constant dense<0.000000e+00> : vector<8x8xf32>
    %301 = tpu.matmul %298, %299, %cst_133 {dimension_numbers = #tpu.dot_dimension_numbers<[1], [1], [0], [0], [0, 0, 1, 0], [], []>} : vector<8x8xf32>, vector<8x8xf32>, vector<8x8xf32> -> vector<8x8xf32>
    %cst_134 = arith.constant 0.000000e+00 : f32
    %302 = vector.broadcast %cst_134 : f32 to vector<1x8xf32>
    %303 = arith.cmpf oeq, %251, %302 : vector<1x8xf32>
    %cst_135 = arith.constant -1.000000e+20 : f32
    %304 = vector.shape_cast %303 : vector<1x8xi1> to vector<1x8xi1>
    %305 = vector.broadcast %304 : vector<1x8xi1> to vector<8x8xi1>
    %306 = vector.broadcast %cst_135 : f32 to vector<8x8xf32>
    %307 = arith.select %305, %306, %301 : vector<8x8xi1>, vector<8x8xf32>
    %cst_136 = arith.constant 0.176776692 : f32
    %308 = vector.broadcast %cst_136 : f32 to vector<8x8xf32>
    %309 = arith.mulf %307, %308 : vector<8x8xf32>
    %cst_137 = arith.constant dense<0xFF800000> : vector<8xf32>
    %310 = vector.multi_reduction <maximumf>, %309, %cst_137 [1] : vector<8x8xf32> to vector<8xf32>
    %311 = vector.shape_cast %310 : vector<8xf32> to vector<8x1xf32>
    %312 = vector.broadcast %311 : vector<8x1xf32> to vector<8x8xf32>
    %313 = arith.subf %309, %312 : vector<8x8xf32>
    %314 = math.exp %313 : vector<8x8xf32>
    %cst_138 = arith.constant dense<0.000000e+00> : vector<8xf32>
    %315 = vector.multi_reduction <add>, %314, %cst_138 [1] : vector<8x8xf32> to vector<8xf32>
    %316 = vector.shape_cast %315 : vector<8xf32> to vector<8x1xf32>
    %317 = tpu.reciprocal %316 {approx = true} : vector<8x1xf32> -> vector<8x1xf32>
    %318 = vector.broadcast %317 : vector<8x1xf32> to vector<8x8xf32>
    %319 = arith.mulf %314, %318 : vector<8x8xf32>
    %cst_139 = arith.constant dense<0.000000e+00> : vector<8x8xf32>
    %320 = tpu.matmul %319, %300, %cst_139 {dimension_numbers = #tpu.dot_dimension_numbers<[1], [0], [0], [1], [0, 0, 1, 1], [], []>} : vector<8x8xf32>, vector<8x8xf32>, vector<8x8xf32> -> vector<8x8xf32>
    %321 = vector.extract_strided_slice %247 {offsets = [0, 24], sizes = [8, 8], strides = [1, 1]} : vector<8x32xf32> to vector<8x8xf32>
    %322 = vector.extract_strided_slice %248 {offsets = [0, 24], sizes = [8, 8], strides = [1, 1]} : vector<8x32xf32> to vector<8x8xf32>
    %323 = vector.extract_strided_slice %249 {offsets = [0, 24], sizes = [8, 8], strides = [1, 1]} : vector<8x32xf32> to vector<8x8xf32>
    %cst_140 = arith.constant dense<0.000000e+00> : vector<8x8xf32>
    %324 = tpu.matmul %321, %322, %cst_140 {dimension_numbers = #tpu.dot_dimension_numbers<[1], [1], [0], [0], [0, 0, 1, 0], [], []>} : vector<8x8xf32>, vector<8x8xf32>, vector<8x8xf32> -> vector<8x8xf32>
    %cst_141 = arith.constant 0.000000e+00 : f32
    %325 = vector.broadcast %cst_141 : f32 to vector<1x8xf32>
    %326 = arith.cmpf oeq, %251, %325 : vector<1x8xf32>
    %cst_142 = arith.constant -1.000000e+20 : f32
    %327 = vector.shape_cast %326 : vector<1x8xi1> to vector<1x8xi1>
    %328 = vector.broadcast %327 : vector<1x8xi1> to vector<8x8xi1>
    %329 = vector.broadcast %cst_142 : f32 to vector<8x8xf32>
    %330 = arith.select %328, %329, %324 : vector<8x8xi1>, vector<8x8xf32>
    %cst_143 = arith.constant 0.176776692 : f32
    %331 = vector.broadcast %cst_143 : f32 to vector<8x8xf32>
    %332 = arith.mulf %330, %331 : vector<8x8xf32>
    %cst_144 = arith.constant dense<0xFF800000> : vector<8xf32>
    %333 = vector.multi_reduction <maximumf>, %332, %cst_144 [1] : vector<8x8xf32> to vector<8xf32>
    %334 = vector.shape_cast %333 : vector<8xf32> to vector<8x1xf32>
    %335 = vector.broadcast %334 : vector<8x1xf32> to vector<8x8xf32>
    %336 = arith.subf %332, %335 : vector<8x8xf32>
    %337 = math.exp %336 : vector<8x8xf32>
    %cst_145 = arith.constant dense<0.000000e+00> : vector<8xf32>
    %338 = vector.multi_reduction <add>, %337, %cst_145 [1] : vector<8x8xf32> to vector<8xf32>
    %339 = vector.shape_cast %338 : vector<8xf32> to vector<8x1xf32>
    %340 = tpu.reciprocal %339 {approx = true} : vector<8x1xf32> -> vector<8x1xf32>
    %341 = vector.broadcast %340 : vector<8x1xf32> to vector<8x8xf32>
    %342 = arith.mulf %337, %341 : vector<8x8xf32>
    %cst_146 = arith.constant dense<0.000000e+00> : vector<8x8xf32>
    %343 = tpu.matmul %342, %323, %cst_146 {dimension_numbers = #tpu.dot_dimension_numbers<[1], [0], [0], [1], [0, 0, 1, 1], [], []>} : vector<8x8xf32>, vector<8x8xf32>, vector<8x8xf32> -> vector<8x8xf32>
    %344 = tpu.concatenate %274, %297, %320, %343 in 1 : vector<8x8xf32>, vector<8x8xf32>, vector<8x8xf32>, vector<8x8xf32> -> vector<8x32xf32>
    %345 = vector.extract_strided_slice %244 {offsets = [8, 0], sizes = [8, 32], strides = [1, 1]} : vector<16x32xf32> to vector<8x32xf32>
    %346 = vector.extract_strided_slice %245 {offsets = [8, 0], sizes = [8, 32], strides = [1, 1]} : vector<16x32xf32> to vector<8x32xf32>
    %347 = vector.extract_strided_slice %246 {offsets = [8, 0], sizes = [8, 32], strides = [1, 1]} : vector<16x32xf32> to vector<8x32xf32>
    %c1_147 = arith.constant 1 : index
    %c0_148 = arith.constant 0 : index
    %c0_149 = arith.constant 0 : index
    %348 = vector.load %arg5[%c1_147, %c0_148, %c0_149] : memref<2x1x8xf32, #tpu.memory_space<vmem>>, vector<1x1x8xf32>
    %349 = vector.shape_cast %348 : vector<1x1x8xf32> to vector<1x8xf32>
    %350 = vector.extract_strided_slice %345 {offsets = [0, 0], sizes = [8, 8], strides = [1, 1]} : vector<8x32xf32> to vector<8x8xf32>
    %351 = vector.extract_strided_slice %346 {offsets = [0, 0], sizes = [8, 8], strides = [1, 1]} : vector<8x32xf32> to vector<8x8xf32>
    %352 = vector.extract_strided_slice %347 {offsets = [0, 0], sizes = [8, 8], strides = [1, 1]} : vector<8x32xf32> to vector<8x8xf32>
    %cst_150 = arith.constant dense<0.000000e+00> : vector<8x8xf32>
    %353 = tpu.matmul %350, %351, %cst_150 {dimension_numbers = #tpu.dot_dimension_numbers<[1], [1], [0], [0], [0, 0, 1, 0], [], []>} : vector<8x8xf32>, vector<8x8xf32>, vector<8x8xf32> -> vector<8x8xf32>
    %cst_151 = arith.constant 0.000000e+00 : f32
    %354 = vector.broadcast %cst_151 : f32 to vector<1x8xf32>
    %355 = arith.cmpf oeq, %349, %354 : vector<1x8xf32>
    %cst_152 = arith.constant -1.000000e+20 : f32
    %356 = vector.shape_cast %355 : vector<1x8xi1> to vector<1x8xi1>
    %357 = vector.broadcast %356 : vector<1x8xi1> to vector<8x8xi1>
    %358 = vector.broadcast %cst_152 : f32 to vector<8x8xf32>
    %359 = arith.select %357, %358, %353 : vector<8x8xi1>, vector<8x8xf32>
    %cst_153 = arith.constant 0.176776692 : f32
    %360 = vector.broadcast %cst_153 : f32 to vector<8x8xf32>
    %361 = arith.mulf %359, %360 : vector<8x8xf32>
    %cst_154 = arith.constant dense<0xFF800000> : vector<8xf32>
    %362 = vector.multi_reduction <maximumf>, %361, %cst_154 [1] : vector<8x8xf32> to vector<8xf32>
    %363 = vector.shape_cast %362 : vector<8xf32> to vector<8x1xf32>
    %364 = vector.broadcast %363 : vector<8x1xf32> to vector<8x8xf32>
    %365 = arith.subf %361, %364 : vector<8x8xf32>
    %366 = math.exp %365 : vector<8x8xf32>
    %cst_155 = arith.constant dense<0.000000e+00> : vector<8xf32>
    %367 = vector.multi_reduction <add>, %366, %cst_155 [1] : vector<8x8xf32> to vector<8xf32>
    %368 = vector.shape_cast %367 : vector<8xf32> to vector<8x1xf32>
    %369 = tpu.reciprocal %368 {approx = true} : vector<8x1xf32> -> vector<8x1xf32>
    %370 = vector.broadcast %369 : vector<8x1xf32> to vector<8x8xf32>
    %371 = arith.mulf %366, %370 : vector<8x8xf32>
    %cst_156 = arith.constant dense<0.000000e+00> : vector<8x8xf32>
    %372 = tpu.matmul %371, %352, %cst_156 {dimension_numbers = #tpu.dot_dimension_numbers<[1], [0], [0], [1], [0, 0, 1, 1], [], []>} : vector<8x8xf32>, vector<8x8xf32>, vector<8x8xf32> -> vector<8x8xf32>
    %373 = vector.extract_strided_slice %345 {offsets = [0, 8], sizes = [8, 8], strides = [1, 1]} : vector<8x32xf32> to vector<8x8xf32>
    %374 = vector.extract_strided_slice %346 {offsets = [0, 8], sizes = [8, 8], strides = [1, 1]} : vector<8x32xf32> to vector<8x8xf32>
    %375 = vector.extract_strided_slice %347 {offsets = [0, 8], sizes = [8, 8], strides = [1, 1]} : vector<8x32xf32> to vector<8x8xf32>
    %cst_157 = arith.constant dense<0.000000e+00> : vector<8x8xf32>
    %376 = tpu.matmul %373, %374, %cst_157 {dimension_numbers = #tpu.dot_dimension_numbers<[1], [1], [0], [0], [0, 0, 1, 0], [], []>} : vector<8x8xf32>, vector<8x8xf32>, vector<8x8xf32> -> vector<8x8xf32>
    %cst_158 = arith.constant 0.000000e+00 : f32
    %377 = vector.broadcast %cst_158 : f32 to vector<1x8xf32>
    %378 = arith.cmpf oeq, %349, %377 : vector<1x8xf32>
    %cst_159 = arith.constant -1.000000e+20 : f32
    %379 = vector.shape_cast %378 : vector<1x8xi1> to vector<1x8xi1>
    %380 = vector.broadcast %379 : vector<1x8xi1> to vector<8x8xi1>
    %381 = vector.broadcast %cst_159 : f32 to vector<8x8xf32>
    %382 = arith.select %380, %381, %376 : vector<8x8xi1>, vector<8x8xf32>
    %cst_160 = arith.constant 0.176776692 : f32
    %383 = vector.broadcast %cst_160 : f32 to vector<8x8xf32>
    %384 = arith.mulf %382, %383 : vector<8x8xf32>
    %cst_161 = arith.constant dense<0xFF800000> : vector<8xf32>
    %385 = vector.multi_reduction <maximumf>, %384, %cst_161 [1] : vector<8x8xf32> to vector<8xf32>
    %386 = vector.shape_cast %385 : vector<8xf32> to vector<8x1xf32>
    %387 = vector.broadcast %386 : vector<8x1xf32> to vector<8x8xf32>
    %388 = arith.subf %384, %387 : vector<8x8xf32>
    %389 = math.exp %388 : vector<8x8xf32>
    %cst_162 = arith.constant dense<0.000000e+00> : vector<8xf32>
    %390 = vector.multi_reduction <add>, %389, %cst_162 [1] : vector<8x8xf32> to vector<8xf32>
    %391 = vector.shape_cast %390 : vector<8xf32> to vector<8x1xf32>
    %392 = tpu.reciprocal %391 {approx = true} : vector<8x1xf32> -> vector<8x1xf32>
    %393 = vector.broadcast %392 : vector<8x1xf32> to vector<8x8xf32>
    %394 = arith.mulf %389, %393 : vector<8x8xf32>
    %cst_163 = arith.constant dense<0.000000e+00> : vector<8x8xf32>
    %395 = tpu.matmul %394, %375, %cst_163 {dimension_numbers = #tpu.dot_dimension_numbers<[1], [0], [0], [1], [0, 0, 1, 1], [], []>} : vector<8x8xf32>, vector<8x8xf32>, vector<8x8xf32> -> vector<8x8xf32>
    %396 = vector.extract_strided_slice %345 {offsets = [0, 16], sizes = [8, 8], strides = [1, 1]} : vector<8x32xf32> to vector<8x8xf32>
    %397 = vector.extract_strided_slice %346 {offsets = [0, 16], sizes = [8, 8], strides = [1, 1]} : vector<8x32xf32> to vector<8x8xf32>
    %398 = vector.extract_strided_slice %347 {offsets = [0, 16], sizes = [8, 8], strides = [1, 1]} : vector<8x32xf32> to vector<8x8xf32>
    %cst_164 = arith.constant dense<0.000000e+00> : vector<8x8xf32>
    %399 = tpu.matmul %396, %397, %cst_164 {dimension_numbers = #tpu.dot_dimension_numbers<[1], [1], [0], [0], [0, 0, 1, 0], [], []>} : vector<8x8xf32>, vector<8x8xf32>, vector<8x8xf32> -> vector<8x8xf32>
    %cst_165 = arith.constant 0.000000e+00 : f32
    %400 = vector.broadcast %cst_165 : f32 to vector<1x8xf32>
    %401 = arith.cmpf oeq, %349, %400 : vector<1x8xf32>
    %cst_166 = arith.constant -1.000000e+20 : f32
    %402 = vector.shape_cast %401 : vector<1x8xi1> to vector<1x8xi1>
    %403 = vector.broadcast %402 : vector<1x8xi1> to vector<8x8xi1>
    %404 = vector.broadcast %cst_166 : f32 to vector<8x8xf32>
    %405 = arith.select %403, %404, %399 : vector<8x8xi1>, vector<8x8xf32>
    %cst_167 = arith.constant 0.176776692 : f32
    %406 = vector.broadcast %cst_167 : f32 to vector<8x8xf32>
    %407 = arith.mulf %405, %406 : vector<8x8xf32>
    %cst_168 = arith.constant dense<0xFF800000> : vector<8xf32>
    %408 = vector.multi_reduction <maximumf>, %407, %cst_168 [1] : vector<8x8xf32> to vector<8xf32>
    %409 = vector.shape_cast %408 : vector<8xf32> to vector<8x1xf32>
    %410 = vector.broadcast %409 : vector<8x1xf32> to vector<8x8xf32>
    %411 = arith.subf %407, %410 : vector<8x8xf32>
    %412 = math.exp %411 : vector<8x8xf32>
    %cst_169 = arith.constant dense<0.000000e+00> : vector<8xf32>
    %413 = vector.multi_reduction <add>, %412, %cst_169 [1] : vector<8x8xf32> to vector<8xf32>
    %414 = vector.shape_cast %413 : vector<8xf32> to vector<8x1xf32>
    %415 = tpu.reciprocal %414 {approx = true} : vector<8x1xf32> -> vector<8x1xf32>
    %416 = vector.broadcast %415 : vector<8x1xf32> to vector<8x8xf32>
    %417 = arith.mulf %412, %416 : vector<8x8xf32>
    %cst_170 = arith.constant dense<0.000000e+00> : vector<8x8xf32>
    %418 = tpu.matmul %417, %398, %cst_170 {dimension_numbers = #tpu.dot_dimension_numbers<[1], [0], [0], [1], [0, 0, 1, 1], [], []>} : vector<8x8xf32>, vector<8x8xf32>, vector<8x8xf32> -> vector<8x8xf32>
    %419 = vector.extract_strided_slice %345 {offsets = [0, 24], sizes = [8, 8], strides = [1, 1]} : vector<8x32xf32> to vector<8x8xf32>
    %420 = vector.extract_strided_slice %346 {offsets = [0, 24], sizes = [8, 8], strides = [1, 1]} : vector<8x32xf32> to vector<8x8xf32>
    %421 = vector.extract_strided_slice %347 {offsets = [0, 24], sizes = [8, 8], strides = [1, 1]} : vector<8x32xf32> to vector<8x8xf32>
    %cst_171 = arith.constant dense<0.000000e+00> : vector<8x8xf32>
    %422 = tpu.matmul %419, %420, %cst_171 {dimension_numbers = #tpu.dot_dimension_numbers<[1], [1], [0], [0], [0, 0, 1, 0], [], []>} : vector<8x8xf32>, vector<8x8xf32>, vector<8x8xf32> -> vector<8x8xf32>
    %cst_172 = arith.constant 0.000000e+00 : f32
    %423 = vector.broadcast %cst_172 : f32 to vector<1x8xf32>
    %424 = arith.cmpf oeq, %349, %423 : vector<1x8xf32>
    %cst_173 = arith.constant -1.000000e+20 : f32
    %425 = vector.shape_cast %424 : vector<1x8xi1> to vector<1x8xi1>
    %426 = vector.broadcast %425 : vector<1x8xi1> to vector<8x8xi1>
    %427 = vector.broadcast %cst_173 : f32 to vector<8x8xf32>
    %428 = arith.select %426, %427, %422 : vector<8x8xi1>, vector<8x8xf32>
    %cst_174 = arith.constant 0.176776692 : f32
    %429 = vector.broadcast %cst_174 : f32 to vector<8x8xf32>
    %430 = arith.mulf %428, %429 : vector<8x8xf32>
    %cst_175 = arith.constant dense<0xFF800000> : vector<8xf32>
    %431 = vector.multi_reduction <maximumf>, %430, %cst_175 [1] : vector<8x8xf32> to vector<8xf32>
    %432 = vector.shape_cast %431 : vector<8xf32> to vector<8x1xf32>
    %433 = vector.broadcast %432 : vector<8x1xf32> to vector<8x8xf32>
    %434 = arith.subf %430, %433 : vector<8x8xf32>
    %435 = math.exp %434 : vector<8x8xf32>
    %cst_176 = arith.constant dense<0.000000e+00> : vector<8xf32>
    %436 = vector.multi_reduction <add>, %435, %cst_176 [1] : vector<8x8xf32> to vector<8xf32>
    %437 = vector.shape_cast %436 : vector<8xf32> to vector<8x1xf32>
    %438 = tpu.reciprocal %437 {approx = true} : vector<8x1xf32> -> vector<8x1xf32>
    %439 = vector.broadcast %438 : vector<8x1xf32> to vector<8x8xf32>
    %440 = arith.mulf %435, %439 : vector<8x8xf32>
    %cst_177 = arith.constant dense<0.000000e+00> : vector<8x8xf32>
    %441 = tpu.matmul %440, %421, %cst_177 {dimension_numbers = #tpu.dot_dimension_numbers<[1], [0], [0], [1], [0, 0, 1, 1], [], []>} : vector<8x8xf32>, vector<8x8xf32>, vector<8x8xf32> -> vector<8x8xf32>
    %442 = tpu.concatenate %372, %395, %418, %441 in 1 : vector<8x8xf32>, vector<8x8xf32>, vector<8x8xf32>, vector<8x8xf32> -> vector<8x32xf32>
    %443 = tpu.concatenate %344, %442 in 0 : vector<8x32xf32>, vector<8x32xf32> -> vector<16x32xf32>
    %cst_178 = arith.constant dense<0.000000e+00> : vector<16x32xf32>
    %444 = tpu.matmul %443, %241, %cst_178 {dimension_numbers = #tpu.dot_dimension_numbers<[1], [0], [0], [1], [0, 0, 1, 1], [], []>} : vector<16x32xf32>, vector<32x32xf32>, vector<16x32xf32> -> vector<16x32xf32>
    %445 = vector.broadcast %243 : vector<1x32xf32> to vector<16x32xf32>
    %446 = arith.addf %444, %445 : vector<16x32xf32>
    %447 = arith.addf %446, %233 : vector<16x32xf32>
    %c0_179 = arith.constant 0 : index
    %c0_180 = arith.constant 0 : index
    %c0_181 = arith.constant 0 : index
    %448 = vector.load %arg18[%c0_179, %c0_180, %c0_181] : memref<2x1x32xf32, #tpu.memory_space<vmem>>, vector<1x1x32xf32>
    %449 = vector.shape_cast %448 : vector<1x1x32xf32> to vector<1x32xf32>
    %c0_182 = arith.constant 0 : index
    %c0_183 = arith.constant 0 : index
    %c0_184 = arith.constant 0 : index
    %450 = vector.load %arg19[%c0_182, %c0_183, %c0_184] : memref<2x1x32xf32, #tpu.memory_space<vmem>>, vector<1x1x32xf32>
    %451 = vector.shape_cast %450 : vector<1x1x32xf32> to vector<1x32xf32>
    %cst_185 = arith.constant dense<0.000000e+00> : vector<16xf32>
    %452 = vector.multi_reduction <add>, %447, %cst_185 [1] : vector<16x32xf32> to vector<16xf32>
    %453 = vector.shape_cast %452 : vector<16xf32> to vector<16x1xf32>
    %cst_186 = arith.constant 3.200000e+01 : f32
    %454 = vector.broadcast %cst_186 : f32 to vector<16x1xf32>
    %455 = arith.divf %453, %454 : vector<16x1xf32>
    %456 = vector.broadcast %455 : vector<16x1xf32> to vector<16x32xf32>
    %457 = arith.subf %447, %456 : vector<16x32xf32>
    %458 = arith.mulf %457, %457 : vector<16x32xf32>
    %cst_187 = arith.constant dense<0.000000e+00> : vector<16xf32>
    %459 = vector.multi_reduction <add>, %458, %cst_187 [1] : vector<16x32xf32> to vector<16xf32>
    %460 = vector.shape_cast %459 : vector<16xf32> to vector<16x1xf32>
    %cst_188 = arith.constant 3.200000e+01 : f32
    %461 = vector.broadcast %cst_188 : f32 to vector<16x1xf32>
    %462 = arith.divf %460, %461 : vector<16x1xf32>
    %cst_189 = arith.constant 9.99999974E-6 : f32
    %463 = vector.broadcast %cst_189 : f32 to vector<16x1xf32>
    %464 = arith.addf %462, %463 : vector<16x1xf32>
    %465 = math.rsqrt %464 : vector<16x1xf32>
    %466 = vector.broadcast %465 : vector<16x1xf32> to vector<16x32xf32>
    %467 = arith.mulf %457, %466 : vector<16x32xf32>
    %468 = vector.broadcast %449 : vector<1x32xf32> to vector<16x32xf32>
    %469 = arith.mulf %467, %468 : vector<16x32xf32>
    %470 = vector.broadcast %451 : vector<1x32xf32> to vector<16x32xf32>
    %471 = arith.addf %469, %470 : vector<16x32xf32>
    %c0_190 = arith.constant 0 : index
    %c0_191 = arith.constant 0 : index
    %c0_192 = arith.constant 0 : index
    %472 = vector.load %arg20[%c0_190, %c0_191, %c0_192] : memref<2x32x64xf32, #tpu.memory_space<vmem>>, vector<1x32x64xf32>
    %473 = vector.shape_cast %472 : vector<1x32x64xf32> to vector<32x64xf32>
    %cst_193 = arith.constant dense<0.000000e+00> : vector<16x64xf32>
    %474 = tpu.matmul %471, %473, %cst_193 {dimension_numbers = #tpu.dot_dimension_numbers<[1], [0], [0], [1], [0, 0, 1, 1], [], []>} : vector<16x32xf32>, vector<32x64xf32>, vector<16x64xf32> -> vector<16x64xf32>
    %c0_194 = arith.constant 0 : index
    %c0_195 = arith.constant 0 : index
    %c0_196 = arith.constant 0 : index
    %475 = vector.load %arg21[%c0_194, %c0_195, %c0_196] : memref<2x1x64xf32, #tpu.memory_space<vmem>>, vector<1x1x64xf32>
    %476 = vector.shape_cast %475 : vector<1x1x64xf32> to vector<1x64xf32>
    %477 = vector.broadcast %476 : vector<1x64xf32> to vector<16x64xf32>
    %478 = arith.addf %474, %477 : vector<16x64xf32>
    %cst_197 = arith.constant 0.000000e+00 : f32
    %479 = vector.broadcast %cst_197 : f32 to vector<16x64xf32>
    %480 = arith.maximumf %478, %479 : vector<16x64xf32>
    %c0_198 = arith.constant 0 : index
    %c0_199 = arith.constant 0 : index
    %c0_200 = arith.constant 0 : index
    %481 = vector.load %arg22[%c0_198, %c0_199, %c0_200] : memref<2x64x32xf32, #tpu.memory_space<vmem>>, vector<1x64x32xf32>
    %482 = vector.shape_cast %481 : vector<1x64x32xf32> to vector<64x32xf32>
    %cst_201 = arith.constant dense<0.000000e+00> : vector<16x32xf32>
    %483 = tpu.matmul %480, %482, %cst_201 {dimension_numbers = #tpu.dot_dimension_numbers<[1], [0], [0], [1], [0, 0, 1, 1], [], []>} : vector<16x64xf32>, vector<64x32xf32>, vector<16x32xf32> -> vector<16x32xf32>
    %c0_202 = arith.constant 0 : index
    %c0_203 = arith.constant 0 : index
    %c0_204 = arith.constant 0 : index
    %484 = vector.load %arg23[%c0_202, %c0_203, %c0_204] : memref<2x1x32xf32, #tpu.memory_space<vmem>>, vector<1x1x32xf32>
    %485 = vector.shape_cast %484 : vector<1x1x32xf32> to vector<1x32xf32>
    %486 = vector.broadcast %485 : vector<1x32xf32> to vector<16x32xf32>
    %487 = arith.addf %483, %486 : vector<16x32xf32>
    %488 = arith.addf %487, %471 : vector<16x32xf32>
    %c0_205 = arith.constant 0 : index
    %c0_206 = arith.constant 0 : index
    %c0_207 = arith.constant 0 : index
    %489 = vector.load %arg24[%c0_205, %c0_206, %c0_207] : memref<2x1x32xf32, #tpu.memory_space<vmem>>, vector<1x1x32xf32>
    %490 = vector.shape_cast %489 : vector<1x1x32xf32> to vector<1x32xf32>
    %c0_208 = arith.constant 0 : index
    %c0_209 = arith.constant 0 : index
    %c0_210 = arith.constant 0 : index
    %491 = vector.load %arg25[%c0_208, %c0_209, %c0_210] : memref<2x1x32xf32, #tpu.memory_space<vmem>>, vector<1x1x32xf32>
    %492 = vector.shape_cast %491 : vector<1x1x32xf32> to vector<1x32xf32>
    %cst_211 = arith.constant dense<0.000000e+00> : vector<16xf32>
    %493 = vector.multi_reduction <add>, %488, %cst_211 [1] : vector<16x32xf32> to vector<16xf32>
    %494 = vector.shape_cast %493 : vector<16xf32> to vector<16x1xf32>
    %cst_212 = arith.constant 3.200000e+01 : f32
    %495 = vector.broadcast %cst_212 : f32 to vector<16x1xf32>
    %496 = arith.divf %494, %495 : vector<16x1xf32>
    %497 = vector.broadcast %496 : vector<16x1xf32> to vector<16x32xf32>
    %498 = arith.subf %488, %497 : vector<16x32xf32>
    %499 = arith.mulf %498, %498 : vector<16x32xf32>
    %cst_213 = arith.constant dense<0.000000e+00> : vector<16xf32>
    %500 = vector.multi_reduction <add>, %499, %cst_213 [1] : vector<16x32xf32> to vector<16xf32>
    %501 = vector.shape_cast %500 : vector<16xf32> to vector<16x1xf32>
    %cst_214 = arith.constant 3.200000e+01 : f32
    %502 = vector.broadcast %cst_214 : f32 to vector<16x1xf32>
    %503 = arith.divf %501, %502 : vector<16x1xf32>
    %cst_215 = arith.constant 9.99999974E-6 : f32
    %504 = vector.broadcast %cst_215 : f32 to vector<16x1xf32>
    %505 = arith.addf %503, %504 : vector<16x1xf32>
    %506 = math.rsqrt %505 : vector<16x1xf32>
    %507 = vector.broadcast %506 : vector<16x1xf32> to vector<16x32xf32>
    %508 = arith.mulf %498, %507 : vector<16x32xf32>
    %509 = vector.broadcast %490 : vector<1x32xf32> to vector<16x32xf32>
    %510 = arith.mulf %508, %509 : vector<16x32xf32>
    %511 = vector.broadcast %492 : vector<1x32xf32> to vector<16x32xf32>
    %512 = arith.addf %510, %511 : vector<16x32xf32>
    %c1_216 = arith.constant 1 : index
    %c0_217 = arith.constant 0 : index
    %c0_218 = arith.constant 0 : index
    %513 = vector.load %arg6[%c1_216, %c0_217, %c0_218] : memref<2x32x32xf32, #tpu.memory_space<vmem>>, vector<1x32x32xf32>
    %514 = vector.shape_cast %513 : vector<1x32x32xf32> to vector<32x32xf32>
    %c1_219 = arith.constant 1 : index
    %c0_220 = arith.constant 0 : index
    %c0_221 = arith.constant 0 : index
    %515 = vector.load %arg7[%c1_219, %c0_220, %c0_221] : memref<2x32x32xf32, #tpu.memory_space<vmem>>, vector<1x32x32xf32>
    %516 = vector.shape_cast %515 : vector<1x32x32xf32> to vector<32x32xf32>
    %c1_222 = arith.constant 1 : index
    %c0_223 = arith.constant 0 : index
    %c0_224 = arith.constant 0 : index
    %517 = vector.load %arg8[%c1_222, %c0_223, %c0_224] : memref<2x32x32xf32, #tpu.memory_space<vmem>>, vector<1x32x32xf32>
    %518 = vector.shape_cast %517 : vector<1x32x32xf32> to vector<32x32xf32>
    %c1_225 = arith.constant 1 : index
    %c0_226 = arith.constant 0 : index
    %c0_227 = arith.constant 0 : index
    %519 = vector.load %arg9[%c1_225, %c0_226, %c0_227] : memref<2x32x32xf32, #tpu.memory_space<vmem>>, vector<1x32x32xf32>
    %520 = vector.shape_cast %519 : vector<1x32x32xf32> to vector<32x32xf32>
    %c1_228 = arith.constant 1 : index
    %c0_229 = arith.constant 0 : index
    %c0_230 = arith.constant 0 : index
    %521 = vector.load %arg10[%c1_228, %c0_229, %c0_230] : memref<2x1x32xf32, #tpu.memory_space<vmem>>, vector<1x1x32xf32>
    %522 = vector.shape_cast %521 : vector<1x1x32xf32> to vector<1x32xf32>
    %cst_231 = arith.constant dense<0.000000e+00> : vector<16x32xf32>
    %523 = tpu.matmul %512, %514, %cst_231 {dimension_numbers = #tpu.dot_dimension_numbers<[1], [0], [0], [1], [0, 0, 1, 1], [], []>} : vector<16x32xf32>, vector<32x32xf32>, vector<16x32xf32> -> vector<16x32xf32>
    %cst_232 = arith.constant dense<0.000000e+00> : vector<16x32xf32>
    %524 = tpu.matmul %512, %516, %cst_232 {dimension_numbers = #tpu.dot_dimension_numbers<[1], [0], [0], [1], [0, 0, 1, 1], [], []>} : vector<16x32xf32>, vector<32x32xf32>, vector<16x32xf32> -> vector<16x32xf32>
    %cst_233 = arith.constant dense<0.000000e+00> : vector<16x32xf32>
    %525 = tpu.matmul %512, %518, %cst_233 {dimension_numbers = #tpu.dot_dimension_numbers<[1], [0], [0], [1], [0, 0, 1, 1], [], []>} : vector<16x32xf32>, vector<32x32xf32>, vector<16x32xf32> -> vector<16x32xf32>
    %526 = vector.extract_strided_slice %523 {offsets = [0, 0], sizes = [8, 32], strides = [1, 1]} : vector<16x32xf32> to vector<8x32xf32>
    %527 = vector.extract_strided_slice %524 {offsets = [0, 0], sizes = [8, 32], strides = [1, 1]} : vector<16x32xf32> to vector<8x32xf32>
    %528 = vector.extract_strided_slice %525 {offsets = [0, 0], sizes = [8, 32], strides = [1, 1]} : vector<16x32xf32> to vector<8x32xf32>
    %c0_234 = arith.constant 0 : index
    %c0_235 = arith.constant 0 : index
    %c0_236 = arith.constant 0 : index
    %529 = vector.load %arg4[%c0_234, %c0_235, %c0_236] : memref<2x8x8xf32, #tpu.memory_space<vmem>>, vector<1x8x8xf32>
    %530 = vector.shape_cast %529 : vector<1x8x8xf32> to vector<8x8xf32>
    %531 = vector.extract_strided_slice %526 {offsets = [0, 0], sizes = [8, 8], strides = [1, 1]} : vector<8x32xf32> to vector<8x8xf32>
    %532 = vector.extract_strided_slice %527 {offsets = [0, 0], sizes = [8, 8], strides = [1, 1]} : vector<8x32xf32> to vector<8x8xf32>
    %533 = vector.extract_strided_slice %528 {offsets = [0, 0], sizes = [8, 8], strides = [1, 1]} : vector<8x32xf32> to vector<8x8xf32>
    %cst_237 = arith.constant dense<0.000000e+00> : vector<8x8xf32>
    %534 = tpu.matmul %531, %532, %cst_237 {dimension_numbers = #tpu.dot_dimension_numbers<[1], [1], [0], [0], [0, 0, 1, 0], [], []>} : vector<8x8xf32>, vector<8x8xf32>, vector<8x8xf32> -> vector<8x8xf32>
    %cst_238 = arith.constant 0.000000e+00 : f32
    %535 = vector.broadcast %cst_238 : f32 to vector<8x8xf32>
    %536 = arith.cmpf oeq, %530, %535 : vector<8x8xf32>
    %cst_239 = arith.constant -1.000000e+20 : f32
    %537 = vector.broadcast %cst_239 : f32 to vector<8x8xf32>
    %538 = arith.select %536, %537, %534 : vector<8x8xi1>, vector<8x8xf32>
    %cst_240 = arith.constant 0.176776692 : f32
    %539 = vector.broadcast %cst_240 : f32 to vector<8x8xf32>
    %540 = arith.mulf %538, %539 : vector<8x8xf32>
    %cst_241 = arith.constant dense<0xFF800000> : vector<8xf32>
    %541 = vector.multi_reduction <maximumf>, %540, %cst_241 [1] : vector<8x8xf32> to vector<8xf32>
    %542 = vector.shape_cast %541 : vector<8xf32> to vector<8x1xf32>
    %543 = vector.broadcast %542 : vector<8x1xf32> to vector<8x8xf32>
    %544 = arith.subf %540, %543 : vector<8x8xf32>
    %545 = math.exp %544 : vector<8x8xf32>
    %cst_242 = arith.constant dense<0.000000e+00> : vector<8xf32>
    %546 = vector.multi_reduction <add>, %545, %cst_242 [1] : vector<8x8xf32> to vector<8xf32>
    %547 = vector.shape_cast %546 : vector<8xf32> to vector<8x1xf32>
    %548 = tpu.reciprocal %547 {approx = true} : vector<8x1xf32> -> vector<8x1xf32>
    %549 = vector.broadcast %548 : vector<8x1xf32> to vector<8x8xf32>
    %550 = arith.mulf %545, %549 : vector<8x8xf32>
    %cst_243 = arith.constant dense<0.000000e+00> : vector<8x8xf32>
    %551 = tpu.matmul %550, %533, %cst_243 {dimension_numbers = #tpu.dot_dimension_numbers<[1], [0], [0], [1], [0, 0, 1, 1], [], []>} : vector<8x8xf32>, vector<8x8xf32>, vector<8x8xf32> -> vector<8x8xf32>
    %552 = vector.extract_strided_slice %526 {offsets = [0, 8], sizes = [8, 8], strides = [1, 1]} : vector<8x32xf32> to vector<8x8xf32>
    %553 = vector.extract_strided_slice %527 {offsets = [0, 8], sizes = [8, 8], strides = [1, 1]} : vector<8x32xf32> to vector<8x8xf32>
    %554 = vector.extract_strided_slice %528 {offsets = [0, 8], sizes = [8, 8], strides = [1, 1]} : vector<8x32xf32> to vector<8x8xf32>
    %cst_244 = arith.constant dense<0.000000e+00> : vector<8x8xf32>
    %555 = tpu.matmul %552, %553, %cst_244 {dimension_numbers = #tpu.dot_dimension_numbers<[1], [1], [0], [0], [0, 0, 1, 0], [], []>} : vector<8x8xf32>, vector<8x8xf32>, vector<8x8xf32> -> vector<8x8xf32>
    %cst_245 = arith.constant 0.000000e+00 : f32
    %556 = vector.broadcast %cst_245 : f32 to vector<8x8xf32>
    %557 = arith.cmpf oeq, %530, %556 : vector<8x8xf32>
    %cst_246 = arith.constant -1.000000e+20 : f32
    %558 = vector.broadcast %cst_246 : f32 to vector<8x8xf32>
    %559 = arith.select %557, %558, %555 : vector<8x8xi1>, vector<8x8xf32>
    %cst_247 = arith.constant 0.176776692 : f32
    %560 = vector.broadcast %cst_247 : f32 to vector<8x8xf32>
    %561 = arith.mulf %559, %560 : vector<8x8xf32>
    %cst_248 = arith.constant dense<0xFF800000> : vector<8xf32>
    %562 = vector.multi_reduction <maximumf>, %561, %cst_248 [1] : vector<8x8xf32> to vector<8xf32>
    %563 = vector.shape_cast %562 : vector<8xf32> to vector<8x1xf32>
    %564 = vector.broadcast %563 : vector<8x1xf32> to vector<8x8xf32>
    %565 = arith.subf %561, %564 : vector<8x8xf32>
    %566 = math.exp %565 : vector<8x8xf32>
    %cst_249 = arith.constant dense<0.000000e+00> : vector<8xf32>
    %567 = vector.multi_reduction <add>, %566, %cst_249 [1] : vector<8x8xf32> to vector<8xf32>
    %568 = vector.shape_cast %567 : vector<8xf32> to vector<8x1xf32>
    %569 = tpu.reciprocal %568 {approx = true} : vector<8x1xf32> -> vector<8x1xf32>
    %570 = vector.broadcast %569 : vector<8x1xf32> to vector<8x8xf32>
    %571 = arith.mulf %566, %570 : vector<8x8xf32>
    %cst_250 = arith.constant dense<0.000000e+00> : vector<8x8xf32>
    %572 = tpu.matmul %571, %554, %cst_250 {dimension_numbers = #tpu.dot_dimension_numbers<[1], [0], [0], [1], [0, 0, 1, 1], [], []>} : vector<8x8xf32>, vector<8x8xf32>, vector<8x8xf32> -> vector<8x8xf32>
    %573 = vector.extract_strided_slice %526 {offsets = [0, 16], sizes = [8, 8], strides = [1, 1]} : vector<8x32xf32> to vector<8x8xf32>
    %574 = vector.extract_strided_slice %527 {offsets = [0, 16], sizes = [8, 8], strides = [1, 1]} : vector<8x32xf32> to vector<8x8xf32>
    %575 = vector.extract_strided_slice %528 {offsets = [0, 16], sizes = [8, 8], strides = [1, 1]} : vector<8x32xf32> to vector<8x8xf32>
    %cst_251 = arith.constant dense<0.000000e+00> : vector<8x8xf32>
    %576 = tpu.matmul %573, %574, %cst_251 {dimension_numbers = #tpu.dot_dimension_numbers<[1], [1], [0], [0], [0, 0, 1, 0], [], []>} : vector<8x8xf32>, vector<8x8xf32>, vector<8x8xf32> -> vector<8x8xf32>
    %cst_252 = arith.constant 0.000000e+00 : f32
    %577 = vector.broadcast %cst_252 : f32 to vector<8x8xf32>
    %578 = arith.cmpf oeq, %530, %577 : vector<8x8xf32>
    %cst_253 = arith.constant -1.000000e+20 : f32
    %579 = vector.broadcast %cst_253 : f32 to vector<8x8xf32>
    %580 = arith.select %578, %579, %576 : vector<8x8xi1>, vector<8x8xf32>
    %cst_254 = arith.constant 0.176776692 : f32
    %581 = vector.broadcast %cst_254 : f32 to vector<8x8xf32>
    %582 = arith.mulf %580, %581 : vector<8x8xf32>
    %cst_255 = arith.constant dense<0xFF800000> : vector<8xf32>
    %583 = vector.multi_reduction <maximumf>, %582, %cst_255 [1] : vector<8x8xf32> to vector<8xf32>
    %584 = vector.shape_cast %583 : vector<8xf32> to vector<8x1xf32>
    %585 = vector.broadcast %584 : vector<8x1xf32> to vector<8x8xf32>
    %586 = arith.subf %582, %585 : vector<8x8xf32>
    %587 = math.exp %586 : vector<8x8xf32>
    %cst_256 = arith.constant dense<0.000000e+00> : vector<8xf32>
    %588 = vector.multi_reduction <add>, %587, %cst_256 [1] : vector<8x8xf32> to vector<8xf32>
    %589 = vector.shape_cast %588 : vector<8xf32> to vector<8x1xf32>
    %590 = tpu.reciprocal %589 {approx = true} : vector<8x1xf32> -> vector<8x1xf32>
    %591 = vector.broadcast %590 : vector<8x1xf32> to vector<8x8xf32>
    %592 = arith.mulf %587, %591 : vector<8x8xf32>
    %cst_257 = arith.constant dense<0.000000e+00> : vector<8x8xf32>
    %593 = tpu.matmul %592, %575, %cst_257 {dimension_numbers = #tpu.dot_dimension_numbers<[1], [0], [0], [1], [0, 0, 1, 1], [], []>} : vector<8x8xf32>, vector<8x8xf32>, vector<8x8xf32> -> vector<8x8xf32>
    %594 = vector.extract_strided_slice %526 {offsets = [0, 24], sizes = [8, 8], strides = [1, 1]} : vector<8x32xf32> to vector<8x8xf32>
    %595 = vector.extract_strided_slice %527 {offsets = [0, 24], sizes = [8, 8], strides = [1, 1]} : vector<8x32xf32> to vector<8x8xf32>
    %596 = vector.extract_strided_slice %528 {offsets = [0, 24], sizes = [8, 8], strides = [1, 1]} : vector<8x32xf32> to vector<8x8xf32>
    %cst_258 = arith.constant dense<0.000000e+00> : vector<8x8xf32>
    %597 = tpu.matmul %594, %595, %cst_258 {dimension_numbers = #tpu.dot_dimension_numbers<[1], [1], [0], [0], [0, 0, 1, 0], [], []>} : vector<8x8xf32>, vector<8x8xf32>, vector<8x8xf32> -> vector<8x8xf32>
    %cst_259 = arith.constant 0.000000e+00 : f32
    %598 = vector.broadcast %cst_259 : f32 to vector<8x8xf32>
    %599 = arith.cmpf oeq, %530, %598 : vector<8x8xf32>
    %cst_260 = arith.constant -1.000000e+20 : f32
    %600 = vector.broadcast %cst_260 : f32 to vector<8x8xf32>
    %601 = arith.select %599, %600, %597 : vector<8x8xi1>, vector<8x8xf32>
    %cst_261 = arith.constant 0.176776692 : f32
    %602 = vector.broadcast %cst_261 : f32 to vector<8x8xf32>
    %603 = arith.mulf %601, %602 : vector<8x8xf32>
    %cst_262 = arith.constant dense<0xFF800000> : vector<8xf32>
    %604 = vector.multi_reduction <maximumf>, %603, %cst_262 [1] : vector<8x8xf32> to vector<8xf32>
    %605 = vector.shape_cast %604 : vector<8xf32> to vector<8x1xf32>
    %606 = vector.broadcast %605 : vector<8x1xf32> to vector<8x8xf32>
    %607 = arith.subf %603, %606 : vector<8x8xf32>
    %608 = math.exp %607 : vector<8x8xf32>
    %cst_263 = arith.constant dense<0.000000e+00> : vector<8xf32>
    %609 = vector.multi_reduction <add>, %608, %cst_263 [1] : vector<8x8xf32> to vector<8xf32>
    %610 = vector.shape_cast %609 : vector<8xf32> to vector<8x1xf32>
    %611 = tpu.reciprocal %610 {approx = true} : vector<8x1xf32> -> vector<8x1xf32>
    %612 = vector.broadcast %611 : vector<8x1xf32> to vector<8x8xf32>
    %613 = arith.mulf %608, %612 : vector<8x8xf32>
    %cst_264 = arith.constant dense<0.000000e+00> : vector<8x8xf32>
    %614 = tpu.matmul %613, %596, %cst_264 {dimension_numbers = #tpu.dot_dimension_numbers<[1], [0], [0], [1], [0, 0, 1, 1], [], []>} : vector<8x8xf32>, vector<8x8xf32>, vector<8x8xf32> -> vector<8x8xf32>
    %615 = tpu.concatenate %551, %572, %593, %614 in 1 : vector<8x8xf32>, vector<8x8xf32>, vector<8x8xf32>, vector<8x8xf32> -> vector<8x32xf32>
    %616 = vector.extract_strided_slice %523 {offsets = [8, 0], sizes = [8, 32], strides = [1, 1]} : vector<16x32xf32> to vector<8x32xf32>
    %617 = vector.extract_strided_slice %524 {offsets = [8, 0], sizes = [8, 32], strides = [1, 1]} : vector<16x32xf32> to vector<8x32xf32>
    %618 = vector.extract_strided_slice %525 {offsets = [8, 0], sizes = [8, 32], strides = [1, 1]} : vector<16x32xf32> to vector<8x32xf32>
    %c1_265 = arith.constant 1 : index
    %c0_266 = arith.constant 0 : index
    %c0_267 = arith.constant 0 : index
    %619 = vector.load %arg4[%c1_265, %c0_266, %c0_267] : memref<2x8x8xf32, #tpu.memory_space<vmem>>, vector<1x8x8xf32>
    %620 = vector.shape_cast %619 : vector<1x8x8xf32> to vector<8x8xf32>
    %621 = vector.extract_strided_slice %616 {offsets = [0, 0], sizes = [8, 8], strides = [1, 1]} : vector<8x32xf32> to vector<8x8xf32>
    %622 = vector.extract_strided_slice %617 {offsets = [0, 0], sizes = [8, 8], strides = [1, 1]} : vector<8x32xf32> to vector<8x8xf32>
    %623 = vector.extract_strided_slice %618 {offsets = [0, 0], sizes = [8, 8], strides = [1, 1]} : vector<8x32xf32> to vector<8x8xf32>
    %cst_268 = arith.constant dense<0.000000e+00> : vector<8x8xf32>
    %624 = tpu.matmul %621, %622, %cst_268 {dimension_numbers = #tpu.dot_dimension_numbers<[1], [1], [0], [0], [0, 0, 1, 0], [], []>} : vector<8x8xf32>, vector<8x8xf32>, vector<8x8xf32> -> vector<8x8xf32>
    %cst_269 = arith.constant 0.000000e+00 : f32
    %625 = vector.broadcast %cst_269 : f32 to vector<8x8xf32>
    %626 = arith.cmpf oeq, %620, %625 : vector<8x8xf32>
    %cst_270 = arith.constant -1.000000e+20 : f32
    %627 = vector.broadcast %cst_270 : f32 to vector<8x8xf32>
    %628 = arith.select %626, %627, %624 : vector<8x8xi1>, vector<8x8xf32>
    %cst_271 = arith.constant 0.176776692 : f32
    %629 = vector.broadcast %cst_271 : f32 to vector<8x8xf32>
    %630 = arith.mulf %628, %629 : vector<8x8xf32>
    %cst_272 = arith.constant dense<0xFF800000> : vector<8xf32>
    %631 = vector.multi_reduction <maximumf>, %630, %cst_272 [1] : vector<8x8xf32> to vector<8xf32>
    %632 = vector.shape_cast %631 : vector<8xf32> to vector<8x1xf32>
    %633 = vector.broadcast %632 : vector<8x1xf32> to vector<8x8xf32>
    %634 = arith.subf %630, %633 : vector<8x8xf32>
    %635 = math.exp %634 : vector<8x8xf32>
    %cst_273 = arith.constant dense<0.000000e+00> : vector<8xf32>
    %636 = vector.multi_reduction <add>, %635, %cst_273 [1] : vector<8x8xf32> to vector<8xf32>
    %637 = vector.shape_cast %636 : vector<8xf32> to vector<8x1xf32>
    %638 = tpu.reciprocal %637 {approx = true} : vector<8x1xf32> -> vector<8x1xf32>
    %639 = vector.broadcast %638 : vector<8x1xf32> to vector<8x8xf32>
    %640 = arith.mulf %635, %639 : vector<8x8xf32>
    %cst_274 = arith.constant dense<0.000000e+00> : vector<8x8xf32>
    %641 = tpu.matmul %640, %623, %cst_274 {dimension_numbers = #tpu.dot_dimension_numbers<[1], [0], [0], [1], [0, 0, 1, 1], [], []>} : vector<8x8xf32>, vector<8x8xf32>, vector<8x8xf32> -> vector<8x8xf32>
    %642 = vector.extract_strided_slice %616 {offsets = [0, 8], sizes = [8, 8], strides = [1, 1]} : vector<8x32xf32> to vector<8x8xf32>
    %643 = vector.extract_strided_slice %617 {offsets = [0, 8], sizes = [8, 8], strides = [1, 1]} : vector<8x32xf32> to vector<8x8xf32>
    %644 = vector.extract_strided_slice %618 {offsets = [0, 8], sizes = [8, 8], strides = [1, 1]} : vector<8x32xf32> to vector<8x8xf32>
    %cst_275 = arith.constant dense<0.000000e+00> : vector<8x8xf32>
    %645 = tpu.matmul %642, %643, %cst_275 {dimension_numbers = #tpu.dot_dimension_numbers<[1], [1], [0], [0], [0, 0, 1, 0], [], []>} : vector<8x8xf32>, vector<8x8xf32>, vector<8x8xf32> -> vector<8x8xf32>
    %cst_276 = arith.constant 0.000000e+00 : f32
    %646 = vector.broadcast %cst_276 : f32 to vector<8x8xf32>
    %647 = arith.cmpf oeq, %620, %646 : vector<8x8xf32>
    %cst_277 = arith.constant -1.000000e+20 : f32
    %648 = vector.broadcast %cst_277 : f32 to vector<8x8xf32>
    %649 = arith.select %647, %648, %645 : vector<8x8xi1>, vector<8x8xf32>
    %cst_278 = arith.constant 0.176776692 : f32
    %650 = vector.broadcast %cst_278 : f32 to vector<8x8xf32>
    %651 = arith.mulf %649, %650 : vector<8x8xf32>
    %cst_279 = arith.constant dense<0xFF800000> : vector<8xf32>
    %652 = vector.multi_reduction <maximumf>, %651, %cst_279 [1] : vector<8x8xf32> to vector<8xf32>
    %653 = vector.shape_cast %652 : vector<8xf32> to vector<8x1xf32>
    %654 = vector.broadcast %653 : vector<8x1xf32> to vector<8x8xf32>
    %655 = arith.subf %651, %654 : vector<8x8xf32>
    %656 = math.exp %655 : vector<8x8xf32>
    %cst_280 = arith.constant dense<0.000000e+00> : vector<8xf32>
    %657 = vector.multi_reduction <add>, %656, %cst_280 [1] : vector<8x8xf32> to vector<8xf32>
    %658 = vector.shape_cast %657 : vector<8xf32> to vector<8x1xf32>
    %659 = tpu.reciprocal %658 {approx = true} : vector<8x1xf32> -> vector<8x1xf32>
    %660 = vector.broadcast %659 : vector<8x1xf32> to vector<8x8xf32>
    %661 = arith.mulf %656, %660 : vector<8x8xf32>
    %cst_281 = arith.constant dense<0.000000e+00> : vector<8x8xf32>
    %662 = tpu.matmul %661, %644, %cst_281 {dimension_numbers = #tpu.dot_dimension_numbers<[1], [0], [0], [1], [0, 0, 1, 1], [], []>} : vector<8x8xf32>, vector<8x8xf32>, vector<8x8xf32> -> vector<8x8xf32>
    %663 = vector.extract_strided_slice %616 {offsets = [0, 16], sizes = [8, 8], strides = [1, 1]} : vector<8x32xf32> to vector<8x8xf32>
    %664 = vector.extract_strided_slice %617 {offsets = [0, 16], sizes = [8, 8], strides = [1, 1]} : vector<8x32xf32> to vector<8x8xf32>
    %665 = vector.extract_strided_slice %618 {offsets = [0, 16], sizes = [8, 8], strides = [1, 1]} : vector<8x32xf32> to vector<8x8xf32>
    %cst_282 = arith.constant dense<0.000000e+00> : vector<8x8xf32>
    %666 = tpu.matmul %663, %664, %cst_282 {dimension_numbers = #tpu.dot_dimension_numbers<[1], [1], [0], [0], [0, 0, 1, 0], [], []>} : vector<8x8xf32>, vector<8x8xf32>, vector<8x8xf32> -> vector<8x8xf32>
    %cst_283 = arith.constant 0.000000e+00 : f32
    %667 = vector.broadcast %cst_283 : f32 to vector<8x8xf32>
    %668 = arith.cmpf oeq, %620, %667 : vector<8x8xf32>
    %cst_284 = arith.constant -1.000000e+20 : f32
    %669 = vector.broadcast %cst_284 : f32 to vector<8x8xf32>
    %670 = arith.select %668, %669, %666 : vector<8x8xi1>, vector<8x8xf32>
    %cst_285 = arith.constant 0.176776692 : f32
    %671 = vector.broadcast %cst_285 : f32 to vector<8x8xf32>
    %672 = arith.mulf %670, %671 : vector<8x8xf32>
    %cst_286 = arith.constant dense<0xFF800000> : vector<8xf32>
    %673 = vector.multi_reduction <maximumf>, %672, %cst_286 [1] : vector<8x8xf32> to vector<8xf32>
    %674 = vector.shape_cast %673 : vector<8xf32> to vector<8x1xf32>
    %675 = vector.broadcast %674 : vector<8x1xf32> to vector<8x8xf32>
    %676 = arith.subf %672, %675 : vector<8x8xf32>
    %677 = math.exp %676 : vector<8x8xf32>
    %cst_287 = arith.constant dense<0.000000e+00> : vector<8xf32>
    %678 = vector.multi_reduction <add>, %677, %cst_287 [1] : vector<8x8xf32> to vector<8xf32>
    %679 = vector.shape_cast %678 : vector<8xf32> to vector<8x1xf32>
    %680 = tpu.reciprocal %679 {approx = true} : vector<8x1xf32> -> vector<8x1xf32>
    %681 = vector.broadcast %680 : vector<8x1xf32> to vector<8x8xf32>
    %682 = arith.mulf %677, %681 : vector<8x8xf32>
    %cst_288 = arith.constant dense<0.000000e+00> : vector<8x8xf32>
    %683 = tpu.matmul %682, %665, %cst_288 {dimension_numbers = #tpu.dot_dimension_numbers<[1], [0], [0], [1], [0, 0, 1, 1], [], []>} : vector<8x8xf32>, vector<8x8xf32>, vector<8x8xf32> -> vector<8x8xf32>
    %684 = vector.extract_strided_slice %616 {offsets = [0, 24], sizes = [8, 8], strides = [1, 1]} : vector<8x32xf32> to vector<8x8xf32>
    %685 = vector.extract_strided_slice %617 {offsets = [0, 24], sizes = [8, 8], strides = [1, 1]} : vector<8x32xf32> to vector<8x8xf32>
    %686 = vector.extract_strided_slice %618 {offsets = [0, 24], sizes = [8, 8], strides = [1, 1]} : vector<8x32xf32> to vector<8x8xf32>
    %cst_289 = arith.constant dense<0.000000e+00> : vector<8x8xf32>
    %687 = tpu.matmul %684, %685, %cst_289 {dimension_numbers = #tpu.dot_dimension_numbers<[1], [1], [0], [0], [0, 0, 1, 0], [], []>} : vector<8x8xf32>, vector<8x8xf32>, vector<8x8xf32> -> vector<8x8xf32>
    %cst_290 = arith.constant 0.000000e+00 : f32
    %688 = vector.broadcast %cst_290 : f32 to vector<8x8xf32>
    %689 = arith.cmpf oeq, %620, %688 : vector<8x8xf32>
    %cst_291 = arith.constant -1.000000e+20 : f32
    %690 = vector.broadcast %cst_291 : f32 to vector<8x8xf32>
    %691 = arith.select %689, %690, %687 : vector<8x8xi1>, vector<8x8xf32>
    %cst_292 = arith.constant 0.176776692 : f32
    %692 = vector.broadcast %cst_292 : f32 to vector<8x8xf32>
    %693 = arith.mulf %691, %692 : vector<8x8xf32>
    %cst_293 = arith.constant dense<0xFF800000> : vector<8xf32>
    %694 = vector.multi_reduction <maximumf>, %693, %cst_293 [1] : vector<8x8xf32> to vector<8xf32>
    %695 = vector.shape_cast %694 : vector<8xf32> to vector<8x1xf32>
    %696 = vector.broadcast %695 : vector<8x1xf32> to vector<8x8xf32>
    %697 = arith.subf %693, %696 : vector<8x8xf32>
    %698 = math.exp %697 : vector<8x8xf32>
    %cst_294 = arith.constant dense<0.000000e+00> : vector<8xf32>
    %699 = vector.multi_reduction <add>, %698, %cst_294 [1] : vector<8x8xf32> to vector<8xf32>
    %700 = vector.shape_cast %699 : vector<8xf32> to vector<8x1xf32>
    %701 = tpu.reciprocal %700 {approx = true} : vector<8x1xf32> -> vector<8x1xf32>
    %702 = vector.broadcast %701 : vector<8x1xf32> to vector<8x8xf32>
    %703 = arith.mulf %698, %702 : vector<8x8xf32>
    %cst_295 = arith.constant dense<0.000000e+00> : vector<8x8xf32>
    %704 = tpu.matmul %703, %686, %cst_295 {dimension_numbers = #tpu.dot_dimension_numbers<[1], [0], [0], [1], [0, 0, 1, 1], [], []>} : vector<8x8xf32>, vector<8x8xf32>, vector<8x8xf32> -> vector<8x8xf32>
    %705 = tpu.concatenate %641, %662, %683, %704 in 1 : vector<8x8xf32>, vector<8x8xf32>, vector<8x8xf32>, vector<8x8xf32> -> vector<8x32xf32>
    %706 = tpu.concatenate %615, %705 in 0 : vector<8x32xf32>, vector<8x32xf32> -> vector<16x32xf32>
    %cst_296 = arith.constant dense<0.000000e+00> : vector<16x32xf32>
    %707 = tpu.matmul %706, %520, %cst_296 {dimension_numbers = #tpu.dot_dimension_numbers<[1], [0], [0], [1], [0, 0, 1, 1], [], []>} : vector<16x32xf32>, vector<32x32xf32>, vector<16x32xf32> -> vector<16x32xf32>
    %708 = vector.broadcast %522 : vector<1x32xf32> to vector<16x32xf32>
    %709 = arith.addf %707, %708 : vector<16x32xf32>
    %710 = arith.addf %709, %512 : vector<16x32xf32>
    %c1_297 = arith.constant 1 : index
    %c0_298 = arith.constant 0 : index
    %c0_299 = arith.constant 0 : index
    %711 = vector.load %arg11[%c1_297, %c0_298, %c0_299] : memref<2x1x32xf32, #tpu.memory_space<vmem>>, vector<1x1x32xf32>
    %712 = vector.shape_cast %711 : vector<1x1x32xf32> to vector<1x32xf32>
    %c1_300 = arith.constant 1 : index
    %c0_301 = arith.constant 0 : index
    %c0_302 = arith.constant 0 : index
    %713 = vector.load %arg12[%c1_300, %c0_301, %c0_302] : memref<2x1x32xf32, #tpu.memory_space<vmem>>, vector<1x1x32xf32>
    %714 = vector.shape_cast %713 : vector<1x1x32xf32> to vector<1x32xf32>
    %cst_303 = arith.constant dense<0.000000e+00> : vector<16xf32>
    %715 = vector.multi_reduction <add>, %710, %cst_303 [1] : vector<16x32xf32> to vector<16xf32>
    %716 = vector.shape_cast %715 : vector<16xf32> to vector<16x1xf32>
    %cst_304 = arith.constant 3.200000e+01 : f32
    %717 = vector.broadcast %cst_304 : f32 to vector<16x1xf32>
    %718 = arith.divf %716, %717 : vector<16x1xf32>
    %719 = vector.broadcast %718 : vector<16x1xf32> to vector<16x32xf32>
    %720 = arith.subf %710, %719 : vector<16x32xf32>
    %721 = arith.mulf %720, %720 : vector<16x32xf32>
    %cst_305 = arith.constant dense<0.000000e+00> : vector<16xf32>
    %722 = vector.multi_reduction <add>, %721, %cst_305 [1] : vector<16x32xf32> to vector<16xf32>
    %723 = vector.shape_cast %722 : vector<16xf32> to vector<16x1xf32>
    %cst_306 = arith.constant 3.200000e+01 : f32
    %724 = vector.broadcast %cst_306 : f32 to vector<16x1xf32>
    %725 = arith.divf %723, %724 : vector<16x1xf32>
    %cst_307 = arith.constant 9.99999974E-6 : f32
    %726 = vector.broadcast %cst_307 : f32 to vector<16x1xf32>
    %727 = arith.addf %725, %726 : vector<16x1xf32>
    %728 = math.rsqrt %727 : vector<16x1xf32>
    %729 = vector.broadcast %728 : vector<16x1xf32> to vector<16x32xf32>
    %730 = arith.mulf %720, %729 : vector<16x32xf32>
    %731 = vector.broadcast %712 : vector<1x32xf32> to vector<16x32xf32>
    %732 = arith.mulf %730, %731 : vector<16x32xf32>
    %733 = vector.broadcast %714 : vector<1x32xf32> to vector<16x32xf32>
    %734 = arith.addf %732, %733 : vector<16x32xf32>
    %c1_308 = arith.constant 1 : index
    %c0_309 = arith.constant 0 : index
    %c0_310 = arith.constant 0 : index
    %735 = vector.load %arg13[%c1_308, %c0_309, %c0_310] : memref<2x32x32xf32, #tpu.memory_space<vmem>>, vector<1x32x32xf32>
    %736 = vector.shape_cast %735 : vector<1x32x32xf32> to vector<32x32xf32>
    %c1_311 = arith.constant 1 : index
    %c0_312 = arith.constant 0 : index
    %c0_313 = arith.constant 0 : index
    %737 = vector.load %arg14[%c1_311, %c0_312, %c0_313] : memref<2x32x32xf32, #tpu.memory_space<vmem>>, vector<1x32x32xf32>
    %738 = vector.shape_cast %737 : vector<1x32x32xf32> to vector<32x32xf32>
    %c1_314 = arith.constant 1 : index
    %c0_315 = arith.constant 0 : index
    %c0_316 = arith.constant 0 : index
    %739 = vector.load %arg15[%c1_314, %c0_315, %c0_316] : memref<2x32x32xf32, #tpu.memory_space<vmem>>, vector<1x32x32xf32>
    %740 = vector.shape_cast %739 : vector<1x32x32xf32> to vector<32x32xf32>
    %c1_317 = arith.constant 1 : index
    %c0_318 = arith.constant 0 : index
    %c0_319 = arith.constant 0 : index
    %741 = vector.load %arg16[%c1_317, %c0_318, %c0_319] : memref<2x32x32xf32, #tpu.memory_space<vmem>>, vector<1x32x32xf32>
    %742 = vector.shape_cast %741 : vector<1x32x32xf32> to vector<32x32xf32>
    %c1_320 = arith.constant 1 : index
    %c0_321 = arith.constant 0 : index
    %c0_322 = arith.constant 0 : index
    %743 = vector.load %arg17[%c1_320, %c0_321, %c0_322] : memref<2x1x32xf32, #tpu.memory_space<vmem>>, vector<1x1x32xf32>
    %744 = vector.shape_cast %743 : vector<1x1x32xf32> to vector<1x32xf32>
    %cst_323 = arith.constant dense<0.000000e+00> : vector<16x32xf32>
    %745 = tpu.matmul %734, %736, %cst_323 {dimension_numbers = #tpu.dot_dimension_numbers<[1], [0], [0], [1], [0, 0, 1, 1], [], []>} : vector<16x32xf32>, vector<32x32xf32>, vector<16x32xf32> -> vector<16x32xf32>
    %cst_324 = arith.constant dense<0.000000e+00> : vector<16x32xf32>
    %746 = tpu.matmul %11, %738, %cst_324 {dimension_numbers = #tpu.dot_dimension_numbers<[1], [0], [0], [1], [0, 0, 1, 1], [], []>} : vector<16x32xf32>, vector<32x32xf32>, vector<16x32xf32> -> vector<16x32xf32>
    %cst_325 = arith.constant dense<0.000000e+00> : vector<16x32xf32>
    %747 = tpu.matmul %11, %740, %cst_325 {dimension_numbers = #tpu.dot_dimension_numbers<[1], [0], [0], [1], [0, 0, 1, 1], [], []>} : vector<16x32xf32>, vector<32x32xf32>, vector<16x32xf32> -> vector<16x32xf32>
    %748 = vector.extract_strided_slice %745 {offsets = [0, 0], sizes = [8, 32], strides = [1, 1]} : vector<16x32xf32> to vector<8x32xf32>
    %749 = vector.extract_strided_slice %746 {offsets = [0, 0], sizes = [8, 32], strides = [1, 1]} : vector<16x32xf32> to vector<8x32xf32>
    %750 = vector.extract_strided_slice %747 {offsets = [0, 0], sizes = [8, 32], strides = [1, 1]} : vector<16x32xf32> to vector<8x32xf32>
    %c0_326 = arith.constant 0 : index
    %c0_327 = arith.constant 0 : index
    %c0_328 = arith.constant 0 : index
    %751 = vector.load %arg5[%c0_326, %c0_327, %c0_328] : memref<2x1x8xf32, #tpu.memory_space<vmem>>, vector<1x1x8xf32>
    %752 = vector.shape_cast %751 : vector<1x1x8xf32> to vector<1x8xf32>
    %753 = vector.extract_strided_slice %748 {offsets = [0, 0], sizes = [8, 8], strides = [1, 1]} : vector<8x32xf32> to vector<8x8xf32>
    %754 = vector.extract_strided_slice %749 {offsets = [0, 0], sizes = [8, 8], strides = [1, 1]} : vector<8x32xf32> to vector<8x8xf32>
    %755 = vector.extract_strided_slice %750 {offsets = [0, 0], sizes = [8, 8], strides = [1, 1]} : vector<8x32xf32> to vector<8x8xf32>
    %cst_329 = arith.constant dense<0.000000e+00> : vector<8x8xf32>
    %756 = tpu.matmul %753, %754, %cst_329 {dimension_numbers = #tpu.dot_dimension_numbers<[1], [1], [0], [0], [0, 0, 1, 0], [], []>} : vector<8x8xf32>, vector<8x8xf32>, vector<8x8xf32> -> vector<8x8xf32>
    %cst_330 = arith.constant 0.000000e+00 : f32
    %757 = vector.broadcast %cst_330 : f32 to vector<1x8xf32>
    %758 = arith.cmpf oeq, %752, %757 : vector<1x8xf32>
    %cst_331 = arith.constant -1.000000e+20 : f32
    %759 = vector.shape_cast %758 : vector<1x8xi1> to vector<1x8xi1>
    %760 = vector.broadcast %759 : vector<1x8xi1> to vector<8x8xi1>
    %761 = vector.broadcast %cst_331 : f32 to vector<8x8xf32>
    %762 = arith.select %760, %761, %756 : vector<8x8xi1>, vector<8x8xf32>
    %cst_332 = arith.constant 0.176776692 : f32
    %763 = vector.broadcast %cst_332 : f32 to vector<8x8xf32>
    %764 = arith.mulf %762, %763 : vector<8x8xf32>
    %cst_333 = arith.constant dense<0xFF800000> : vector<8xf32>
    %765 = vector.multi_reduction <maximumf>, %764, %cst_333 [1] : vector<8x8xf32> to vector<8xf32>
    %766 = vector.shape_cast %765 : vector<8xf32> to vector<8x1xf32>
    %767 = vector.broadcast %766 : vector<8x1xf32> to vector<8x8xf32>
    %768 = arith.subf %764, %767 : vector<8x8xf32>
    %769 = math.exp %768 : vector<8x8xf32>
    %cst_334 = arith.constant dense<0.000000e+00> : vector<8xf32>
    %770 = vector.multi_reduction <add>, %769, %cst_334 [1] : vector<8x8xf32> to vector<8xf32>
    %771 = vector.shape_cast %770 : vector<8xf32> to vector<8x1xf32>
    %772 = tpu.reciprocal %771 {approx = true} : vector<8x1xf32> -> vector<8x1xf32>
    %773 = vector.broadcast %772 : vector<8x1xf32> to vector<8x8xf32>
    %774 = arith.mulf %769, %773 : vector<8x8xf32>
    %cst_335 = arith.constant dense<0.000000e+00> : vector<8x8xf32>
    %775 = tpu.matmul %774, %755, %cst_335 {dimension_numbers = #tpu.dot_dimension_numbers<[1], [0], [0], [1], [0, 0, 1, 1], [], []>} : vector<8x8xf32>, vector<8x8xf32>, vector<8x8xf32> -> vector<8x8xf32>
    %776 = vector.extract_strided_slice %748 {offsets = [0, 8], sizes = [8, 8], strides = [1, 1]} : vector<8x32xf32> to vector<8x8xf32>
    %777 = vector.extract_strided_slice %749 {offsets = [0, 8], sizes = [8, 8], strides = [1, 1]} : vector<8x32xf32> to vector<8x8xf32>
    %778 = vector.extract_strided_slice %750 {offsets = [0, 8], sizes = [8, 8], strides = [1, 1]} : vector<8x32xf32> to vector<8x8xf32>
    %cst_336 = arith.constant dense<0.000000e+00> : vector<8x8xf32>
    %779 = tpu.matmul %776, %777, %cst_336 {dimension_numbers = #tpu.dot_dimension_numbers<[1], [1], [0], [0], [0, 0, 1, 0], [], []>} : vector<8x8xf32>, vector<8x8xf32>, vector<8x8xf32> -> vector<8x8xf32>
    %cst_337 = arith.constant 0.000000e+00 : f32
    %780 = vector.broadcast %cst_337 : f32 to vector<1x8xf32>
    %781 = arith.cmpf oeq, %752, %780 : vector<1x8xf32>
    %cst_338 = arith.constant -1.000000e+20 : f32
    %782 = vector.shape_cast %781 : vector<1x8xi1> to vector<1x8xi1>
    %783 = vector.broadcast %782 : vector<1x8xi1> to vector<8x8xi1>
    %784 = vector.broadcast %cst_338 : f32 to vector<8x8xf32>
    %785 = arith.select %783, %784, %779 : vector<8x8xi1>, vector<8x8xf32>
    %cst_339 = arith.constant 0.176776692 : f32
    %786 = vector.broadcast %cst_339 : f32 to vector<8x8xf32>
    %787 = arith.mulf %785, %786 : vector<8x8xf32>
    %cst_340 = arith.constant dense<0xFF800000> : vector<8xf32>
    %788 = vector.multi_reduction <maximumf>, %787, %cst_340 [1] : vector<8x8xf32> to vector<8xf32>
    %789 = vector.shape_cast %788 : vector<8xf32> to vector<8x1xf32>
    %790 = vector.broadcast %789 : vector<8x1xf32> to vector<8x8xf32>
    %791 = arith.subf %787, %790 : vector<8x8xf32>
    %792 = math.exp %791 : vector<8x8xf32>
    %cst_341 = arith.constant dense<0.000000e+00> : vector<8xf32>
    %793 = vector.multi_reduction <add>, %792, %cst_341 [1] : vector<8x8xf32> to vector<8xf32>
    %794 = vector.shape_cast %793 : vector<8xf32> to vector<8x1xf32>
    %795 = tpu.reciprocal %794 {approx = true} : vector<8x1xf32> -> vector<8x1xf32>
    %796 = vector.broadcast %795 : vector<8x1xf32> to vector<8x8xf32>
    %797 = arith.mulf %792, %796 : vector<8x8xf32>
    %cst_342 = arith.constant dense<0.000000e+00> : vector<8x8xf32>
    %798 = tpu.matmul %797, %778, %cst_342 {dimension_numbers = #tpu.dot_dimension_numbers<[1], [0], [0], [1], [0, 0, 1, 1], [], []>} : vector<8x8xf32>, vector<8x8xf32>, vector<8x8xf32> -> vector<8x8xf32>
    %799 = vector.extract_strided_slice %748 {offsets = [0, 16], sizes = [8, 8], strides = [1, 1]} : vector<8x32xf32> to vector<8x8xf32>
    %800 = vector.extract_strided_slice %749 {offsets = [0, 16], sizes = [8, 8], strides = [1, 1]} : vector<8x32xf32> to vector<8x8xf32>
    %801 = vector.extract_strided_slice %750 {offsets = [0, 16], sizes = [8, 8], strides = [1, 1]} : vector<8x32xf32> to vector<8x8xf32>
    %cst_343 = arith.constant dense<0.000000e+00> : vector<8x8xf32>
    %802 = tpu.matmul %799, %800, %cst_343 {dimension_numbers = #tpu.dot_dimension_numbers<[1], [1], [0], [0], [0, 0, 1, 0], [], []>} : vector<8x8xf32>, vector<8x8xf32>, vector<8x8xf32> -> vector<8x8xf32>
    %cst_344 = arith.constant 0.000000e+00 : f32
    %803 = vector.broadcast %cst_344 : f32 to vector<1x8xf32>
    %804 = arith.cmpf oeq, %752, %803 : vector<1x8xf32>
    %cst_345 = arith.constant -1.000000e+20 : f32
    %805 = vector.shape_cast %804 : vector<1x8xi1> to vector<1x8xi1>
    %806 = vector.broadcast %805 : vector<1x8xi1> to vector<8x8xi1>
    %807 = vector.broadcast %cst_345 : f32 to vector<8x8xf32>
    %808 = arith.select %806, %807, %802 : vector<8x8xi1>, vector<8x8xf32>
    %cst_346 = arith.constant 0.176776692 : f32
    %809 = vector.broadcast %cst_346 : f32 to vector<8x8xf32>
    %810 = arith.mulf %808, %809 : vector<8x8xf32>
    %cst_347 = arith.constant dense<0xFF800000> : vector<8xf32>
    %811 = vector.multi_reduction <maximumf>, %810, %cst_347 [1] : vector<8x8xf32> to vector<8xf32>
    %812 = vector.shape_cast %811 : vector<8xf32> to vector<8x1xf32>
    %813 = vector.broadcast %812 : vector<8x1xf32> to vector<8x8xf32>
    %814 = arith.subf %810, %813 : vector<8x8xf32>
    %815 = math.exp %814 : vector<8x8xf32>
    %cst_348 = arith.constant dense<0.000000e+00> : vector<8xf32>
    %816 = vector.multi_reduction <add>, %815, %cst_348 [1] : vector<8x8xf32> to vector<8xf32>
    %817 = vector.shape_cast %816 : vector<8xf32> to vector<8x1xf32>
    %818 = tpu.reciprocal %817 {approx = true} : vector<8x1xf32> -> vector<8x1xf32>
    %819 = vector.broadcast %818 : vector<8x1xf32> to vector<8x8xf32>
    %820 = arith.mulf %815, %819 : vector<8x8xf32>
    %cst_349 = arith.constant dense<0.000000e+00> : vector<8x8xf32>
    %821 = tpu.matmul %820, %801, %cst_349 {dimension_numbers = #tpu.dot_dimension_numbers<[1], [0], [0], [1], [0, 0, 1, 1], [], []>} : vector<8x8xf32>, vector<8x8xf32>, vector<8x8xf32> -> vector<8x8xf32>
    %822 = vector.extract_strided_slice %748 {offsets = [0, 24], sizes = [8, 8], strides = [1, 1]} : vector<8x32xf32> to vector<8x8xf32>
    %823 = vector.extract_strided_slice %749 {offsets = [0, 24], sizes = [8, 8], strides = [1, 1]} : vector<8x32xf32> to vector<8x8xf32>
    %824 = vector.extract_strided_slice %750 {offsets = [0, 24], sizes = [8, 8], strides = [1, 1]} : vector<8x32xf32> to vector<8x8xf32>
    %cst_350 = arith.constant dense<0.000000e+00> : vector<8x8xf32>
    %825 = tpu.matmul %822, %823, %cst_350 {dimension_numbers = #tpu.dot_dimension_numbers<[1], [1], [0], [0], [0, 0, 1, 0], [], []>} : vector<8x8xf32>, vector<8x8xf32>, vector<8x8xf32> -> vector<8x8xf32>
    %cst_351 = arith.constant 0.000000e+00 : f32
    %826 = vector.broadcast %cst_351 : f32 to vector<1x8xf32>
    %827 = arith.cmpf oeq, %752, %826 : vector<1x8xf32>
    %cst_352 = arith.constant -1.000000e+20 : f32
    %828 = vector.shape_cast %827 : vector<1x8xi1> to vector<1x8xi1>
    %829 = vector.broadcast %828 : vector<1x8xi1> to vector<8x8xi1>
    %830 = vector.broadcast %cst_352 : f32 to vector<8x8xf32>
    %831 = arith.select %829, %830, %825 : vector<8x8xi1>, vector<8x8xf32>
    %cst_353 = arith.constant 0.176776692 : f32
    %832 = vector.broadcast %cst_353 : f32 to vector<8x8xf32>
    %833 = arith.mulf %831, %832 : vector<8x8xf32>
    %cst_354 = arith.constant dense<0xFF800000> : vector<8xf32>
    %834 = vector.multi_reduction <maximumf>, %833, %cst_354 [1] : vector<8x8xf32> to vector<8xf32>
    %835 = vector.shape_cast %834 : vector<8xf32> to vector<8x1xf32>
    %836 = vector.broadcast %835 : vector<8x1xf32> to vector<8x8xf32>
    %837 = arith.subf %833, %836 : vector<8x8xf32>
    %838 = math.exp %837 : vector<8x8xf32>
    %cst_355 = arith.constant dense<0.000000e+00> : vector<8xf32>
    %839 = vector.multi_reduction <add>, %838, %cst_355 [1] : vector<8x8xf32> to vector<8xf32>
    %840 = vector.shape_cast %839 : vector<8xf32> to vector<8x1xf32>
    %841 = tpu.reciprocal %840 {approx = true} : vector<8x1xf32> -> vector<8x1xf32>
    %842 = vector.broadcast %841 : vector<8x1xf32> to vector<8x8xf32>
    %843 = arith.mulf %838, %842 : vector<8x8xf32>
    %cst_356 = arith.constant dense<0.000000e+00> : vector<8x8xf32>
    %844 = tpu.matmul %843, %824, %cst_356 {dimension_numbers = #tpu.dot_dimension_numbers<[1], [0], [0], [1], [0, 0, 1, 1], [], []>} : vector<8x8xf32>, vector<8x8xf32>, vector<8x8xf32> -> vector<8x8xf32>
    %845 = tpu.concatenate %775, %798, %821, %844 in 1 : vector<8x8xf32>, vector<8x8xf32>, vector<8x8xf32>, vector<8x8xf32> -> vector<8x32xf32>
    %846 = vector.extract_strided_slice %745 {offsets = [8, 0], sizes = [8, 32], strides = [1, 1]} : vector<16x32xf32> to vector<8x32xf32>
    %847 = vector.extract_strided_slice %746 {offsets = [8, 0], sizes = [8, 32], strides = [1, 1]} : vector<16x32xf32> to vector<8x32xf32>
    %848 = vector.extract_strided_slice %747 {offsets = [8, 0], sizes = [8, 32], strides = [1, 1]} : vector<16x32xf32> to vector<8x32xf32>
    %c1_357 = arith.constant 1 : index
    %c0_358 = arith.constant 0 : index
    %c0_359 = arith.constant 0 : index
    %849 = vector.load %arg5[%c1_357, %c0_358, %c0_359] : memref<2x1x8xf32, #tpu.memory_space<vmem>>, vector<1x1x8xf32>
    %850 = vector.shape_cast %849 : vector<1x1x8xf32> to vector<1x8xf32>
    %851 = vector.extract_strided_slice %846 {offsets = [0, 0], sizes = [8, 8], strides = [1, 1]} : vector<8x32xf32> to vector<8x8xf32>
    %852 = vector.extract_strided_slice %847 {offsets = [0, 0], sizes = [8, 8], strides = [1, 1]} : vector<8x32xf32> to vector<8x8xf32>
    %853 = vector.extract_strided_slice %848 {offsets = [0, 0], sizes = [8, 8], strides = [1, 1]} : vector<8x32xf32> to vector<8x8xf32>
    %cst_360 = arith.constant dense<0.000000e+00> : vector<8x8xf32>
    %854 = tpu.matmul %851, %852, %cst_360 {dimension_numbers = #tpu.dot_dimension_numbers<[1], [1], [0], [0], [0, 0, 1, 0], [], []>} : vector<8x8xf32>, vector<8x8xf32>, vector<8x8xf32> -> vector<8x8xf32>
    %cst_361 = arith.constant 0.000000e+00 : f32
    %855 = vector.broadcast %cst_361 : f32 to vector<1x8xf32>
    %856 = arith.cmpf oeq, %850, %855 : vector<1x8xf32>
    %cst_362 = arith.constant -1.000000e+20 : f32
    %857 = vector.shape_cast %856 : vector<1x8xi1> to vector<1x8xi1>
    %858 = vector.broadcast %857 : vector<1x8xi1> to vector<8x8xi1>
    %859 = vector.broadcast %cst_362 : f32 to vector<8x8xf32>
    %860 = arith.select %858, %859, %854 : vector<8x8xi1>, vector<8x8xf32>
    %cst_363 = arith.constant 0.176776692 : f32
    %861 = vector.broadcast %cst_363 : f32 to vector<8x8xf32>
    %862 = arith.mulf %860, %861 : vector<8x8xf32>
    %cst_364 = arith.constant dense<0xFF800000> : vector<8xf32>
    %863 = vector.multi_reduction <maximumf>, %862, %cst_364 [1] : vector<8x8xf32> to vector<8xf32>
    %864 = vector.shape_cast %863 : vector<8xf32> to vector<8x1xf32>
    %865 = vector.broadcast %864 : vector<8x1xf32> to vector<8x8xf32>
    %866 = arith.subf %862, %865 : vector<8x8xf32>
    %867 = math.exp %866 : vector<8x8xf32>
    %cst_365 = arith.constant dense<0.000000e+00> : vector<8xf32>
    %868 = vector.multi_reduction <add>, %867, %cst_365 [1] : vector<8x8xf32> to vector<8xf32>
    %869 = vector.shape_cast %868 : vector<8xf32> to vector<8x1xf32>
    %870 = tpu.reciprocal %869 {approx = true} : vector<8x1xf32> -> vector<8x1xf32>
    %871 = vector.broadcast %870 : vector<8x1xf32> to vector<8x8xf32>
    %872 = arith.mulf %867, %871 : vector<8x8xf32>
    %cst_366 = arith.constant dense<0.000000e+00> : vector<8x8xf32>
    %873 = tpu.matmul %872, %853, %cst_366 {dimension_numbers = #tpu.dot_dimension_numbers<[1], [0], [0], [1], [0, 0, 1, 1], [], []>} : vector<8x8xf32>, vector<8x8xf32>, vector<8x8xf32> -> vector<8x8xf32>
    %874 = vector.extract_strided_slice %846 {offsets = [0, 8], sizes = [8, 8], strides = [1, 1]} : vector<8x32xf32> to vector<8x8xf32>
    %875 = vector.extract_strided_slice %847 {offsets = [0, 8], sizes = [8, 8], strides = [1, 1]} : vector<8x32xf32> to vector<8x8xf32>
    %876 = vector.extract_strided_slice %848 {offsets = [0, 8], sizes = [8, 8], strides = [1, 1]} : vector<8x32xf32> to vector<8x8xf32>
    %cst_367 = arith.constant dense<0.000000e+00> : vector<8x8xf32>
    %877 = tpu.matmul %874, %875, %cst_367 {dimension_numbers = #tpu.dot_dimension_numbers<[1], [1], [0], [0], [0, 0, 1, 0], [], []>} : vector<8x8xf32>, vector<8x8xf32>, vector<8x8xf32> -> vector<8x8xf32>
    %cst_368 = arith.constant 0.000000e+00 : f32
    %878 = vector.broadcast %cst_368 : f32 to vector<1x8xf32>
    %879 = arith.cmpf oeq, %850, %878 : vector<1x8xf32>
    %cst_369 = arith.constant -1.000000e+20 : f32
    %880 = vector.shape_cast %879 : vector<1x8xi1> to vector<1x8xi1>
    %881 = vector.broadcast %880 : vector<1x8xi1> to vector<8x8xi1>
    %882 = vector.broadcast %cst_369 : f32 to vector<8x8xf32>
    %883 = arith.select %881, %882, %877 : vector<8x8xi1>, vector<8x8xf32>
    %cst_370 = arith.constant 0.176776692 : f32
    %884 = vector.broadcast %cst_370 : f32 to vector<8x8xf32>
    %885 = arith.mulf %883, %884 : vector<8x8xf32>
    %cst_371 = arith.constant dense<0xFF800000> : vector<8xf32>
    %886 = vector.multi_reduction <maximumf>, %885, %cst_371 [1] : vector<8x8xf32> to vector<8xf32>
    %887 = vector.shape_cast %886 : vector<8xf32> to vector<8x1xf32>
    %888 = vector.broadcast %887 : vector<8x1xf32> to vector<8x8xf32>
    %889 = arith.subf %885, %888 : vector<8x8xf32>
    %890 = math.exp %889 : vector<8x8xf32>
    %cst_372 = arith.constant dense<0.000000e+00> : vector<8xf32>
    %891 = vector.multi_reduction <add>, %890, %cst_372 [1] : vector<8x8xf32> to vector<8xf32>
    %892 = vector.shape_cast %891 : vector<8xf32> to vector<8x1xf32>
    %893 = tpu.reciprocal %892 {approx = true} : vector<8x1xf32> -> vector<8x1xf32>
    %894 = vector.broadcast %893 : vector<8x1xf32> to vector<8x8xf32>
    %895 = arith.mulf %890, %894 : vector<8x8xf32>
    %cst_373 = arith.constant dense<0.000000e+00> : vector<8x8xf32>
    %896 = tpu.matmul %895, %876, %cst_373 {dimension_numbers = #tpu.dot_dimension_numbers<[1], [0], [0], [1], [0, 0, 1, 1], [], []>} : vector<8x8xf32>, vector<8x8xf32>, vector<8x8xf32> -> vector<8x8xf32>
    %897 = vector.extract_strided_slice %846 {offsets = [0, 16], sizes = [8, 8], strides = [1, 1]} : vector<8x32xf32> to vector<8x8xf32>
    %898 = vector.extract_strided_slice %847 {offsets = [0, 16], sizes = [8, 8], strides = [1, 1]} : vector<8x32xf32> to vector<8x8xf32>
    %899 = vector.extract_strided_slice %848 {offsets = [0, 16], sizes = [8, 8], strides = [1, 1]} : vector<8x32xf32> to vector<8x8xf32>
    %cst_374 = arith.constant dense<0.000000e+00> : vector<8x8xf32>
    %900 = tpu.matmul %897, %898, %cst_374 {dimension_numbers = #tpu.dot_dimension_numbers<[1], [1], [0], [0], [0, 0, 1, 0], [], []>} : vector<8x8xf32>, vector<8x8xf32>, vector<8x8xf32> -> vector<8x8xf32>
    %cst_375 = arith.constant 0.000000e+00 : f32
    %901 = vector.broadcast %cst_375 : f32 to vector<1x8xf32>
    %902 = arith.cmpf oeq, %850, %901 : vector<1x8xf32>
    %cst_376 = arith.constant -1.000000e+20 : f32
    %903 = vector.shape_cast %902 : vector<1x8xi1> to vector<1x8xi1>
    %904 = vector.broadcast %903 : vector<1x8xi1> to vector<8x8xi1>
    %905 = vector.broadcast %cst_376 : f32 to vector<8x8xf32>
    %906 = arith.select %904, %905, %900 : vector<8x8xi1>, vector<8x8xf32>
    %cst_377 = arith.constant 0.176776692 : f32
    %907 = vector.broadcast %cst_377 : f32 to vector<8x8xf32>
    %908 = arith.mulf %906, %907 : vector<8x8xf32>
    %cst_378 = arith.constant dense<0xFF800000> : vector<8xf32>
    %909 = vector.multi_reduction <maximumf>, %908, %cst_378 [1] : vector<8x8xf32> to vector<8xf32>
    %910 = vector.shape_cast %909 : vector<8xf32> to vector<8x1xf32>
    %911 = vector.broadcast %910 : vector<8x1xf32> to vector<8x8xf32>
    %912 = arith.subf %908, %911 : vector<8x8xf32>
    %913 = math.exp %912 : vector<8x8xf32>
    %cst_379 = arith.constant dense<0.000000e+00> : vector<8xf32>
    %914 = vector.multi_reduction <add>, %913, %cst_379 [1] : vector<8x8xf32> to vector<8xf32>
    %915 = vector.shape_cast %914 : vector<8xf32> to vector<8x1xf32>
    %916 = tpu.reciprocal %915 {approx = true} : vector<8x1xf32> -> vector<8x1xf32>
    %917 = vector.broadcast %916 : vector<8x1xf32> to vector<8x8xf32>
    %918 = arith.mulf %913, %917 : vector<8x8xf32>
    %cst_380 = arith.constant dense<0.000000e+00> : vector<8x8xf32>
    %919 = tpu.matmul %918, %899, %cst_380 {dimension_numbers = #tpu.dot_dimension_numbers<[1], [0], [0], [1], [0, 0, 1, 1], [], []>} : vector<8x8xf32>, vector<8x8xf32>, vector<8x8xf32> -> vector<8x8xf32>
    %920 = vector.extract_strided_slice %846 {offsets = [0, 24], sizes = [8, 8], strides = [1, 1]} : vector<8x32xf32> to vector<8x8xf32>
    %921 = vector.extract_strided_slice %847 {offsets = [0, 24], sizes = [8, 8], strides = [1, 1]} : vector<8x32xf32> to vector<8x8xf32>
    %922 = vector.extract_strided_slice %848 {offsets = [0, 24], sizes = [8, 8], strides = [1, 1]} : vector<8x32xf32> to vector<8x8xf32>
    %cst_381 = arith.constant dense<0.000000e+00> : vector<8x8xf32>
    %923 = tpu.matmul %920, %921, %cst_381 {dimension_numbers = #tpu.dot_dimension_numbers<[1], [1], [0], [0], [0, 0, 1, 0], [], []>} : vector<8x8xf32>, vector<8x8xf32>, vector<8x8xf32> -> vector<8x8xf32>
    %cst_382 = arith.constant 0.000000e+00 : f32
    %924 = vector.broadcast %cst_382 : f32 to vector<1x8xf32>
    %925 = arith.cmpf oeq, %850, %924 : vector<1x8xf32>
    %cst_383 = arith.constant -1.000000e+20 : f32
    %926 = vector.shape_cast %925 : vector<1x8xi1> to vector<1x8xi1>
    %927 = vector.broadcast %926 : vector<1x8xi1> to vector<8x8xi1>
    %928 = vector.broadcast %cst_383 : f32 to vector<8x8xf32>
    %929 = arith.select %927, %928, %923 : vector<8x8xi1>, vector<8x8xf32>
    %cst_384 = arith.constant 0.176776692 : f32
    %930 = vector.broadcast %cst_384 : f32 to vector<8x8xf32>
    %931 = arith.mulf %929, %930 : vector<8x8xf32>
    %cst_385 = arith.constant dense<0xFF800000> : vector<8xf32>
    %932 = vector.multi_reduction <maximumf>, %931, %cst_385 [1] : vector<8x8xf32> to vector<8xf32>
    %933 = vector.shape_cast %932 : vector<8xf32> to vector<8x1xf32>
    %934 = vector.broadcast %933 : vector<8x1xf32> to vector<8x8xf32>
    %935 = arith.subf %931, %934 : vector<8x8xf32>
    %936 = math.exp %935 : vector<8x8xf32>
    %cst_386 = arith.constant dense<0.000000e+00> : vector<8xf32>
    %937 = vector.multi_reduction <add>, %936, %cst_386 [1] : vector<8x8xf32> to vector<8xf32>
    %938 = vector.shape_cast %937 : vector<8xf32> to vector<8x1xf32>
    %939 = tpu.reciprocal %938 {approx = true} : vector<8x1xf32> -> vector<8x1xf32>
    %940 = vector.broadcast %939 : vector<8x1xf32> to vector<8x8xf32>
    %941 = arith.mulf %936, %940 : vector<8x8xf32>
    %cst_387 = arith.constant dense<0.000000e+00> : vector<8x8xf32>
    %942 = tpu.matmul %941, %922, %cst_387 {dimension_numbers = #tpu.dot_dimension_numbers<[1], [0], [0], [1], [0, 0, 1, 1], [], []>} : vector<8x8xf32>, vector<8x8xf32>, vector<8x8xf32> -> vector<8x8xf32>
    %943 = tpu.concatenate %873, %896, %919, %942 in 1 : vector<8x8xf32>, vector<8x8xf32>, vector<8x8xf32>, vector<8x8xf32> -> vector<8x32xf32>
    %944 = tpu.concatenate %845, %943 in 0 : vector<8x32xf32>, vector<8x32xf32> -> vector<16x32xf32>
    %cst_388 = arith.constant dense<0.000000e+00> : vector<16x32xf32>
    %945 = tpu.matmul %944, %742, %cst_388 {dimension_numbers = #tpu.dot_dimension_numbers<[1], [0], [0], [1], [0, 0, 1, 1], [], []>} : vector<16x32xf32>, vector<32x32xf32>, vector<16x32xf32> -> vector<16x32xf32>
    %946 = vector.broadcast %744 : vector<1x32xf32> to vector<16x32xf32>
    %947 = arith.addf %945, %946 : vector<16x32xf32>
    %948 = arith.addf %947, %734 : vector<16x32xf32>
    %c1_389 = arith.constant 1 : index
    %c0_390 = arith.constant 0 : index
    %c0_391 = arith.constant 0 : index
    %949 = vector.load %arg18[%c1_389, %c0_390, %c0_391] : memref<2x1x32xf32, #tpu.memory_space<vmem>>, vector<1x1x32xf32>
    %950 = vector.shape_cast %949 : vector<1x1x32xf32> to vector<1x32xf32>
    %c1_392 = arith.constant 1 : index
    %c0_393 = arith.constant 0 : index
    %c0_394 = arith.constant 0 : index
    %951 = vector.load %arg19[%c1_392, %c0_393, %c0_394] : memref<2x1x32xf32, #tpu.memory_space<vmem>>, vector<1x1x32xf32>
    %952 = vector.shape_cast %951 : vector<1x1x32xf32> to vector<1x32xf32>
    %cst_395 = arith.constant dense<0.000000e+00> : vector<16xf32>
    %953 = vector.multi_reduction <add>, %948, %cst_395 [1] : vector<16x32xf32> to vector<16xf32>
    %954 = vector.shape_cast %953 : vector<16xf32> to vector<16x1xf32>
    %cst_396 = arith.constant 3.200000e+01 : f32
    %955 = vector.broadcast %cst_396 : f32 to vector<16x1xf32>
    %956 = arith.divf %954, %955 : vector<16x1xf32>
    %957 = vector.broadcast %956 : vector<16x1xf32> to vector<16x32xf32>
    %958 = arith.subf %948, %957 : vector<16x32xf32>
    %959 = arith.mulf %958, %958 : vector<16x32xf32>
    %cst_397 = arith.constant dense<0.000000e+00> : vector<16xf32>
    %960 = vector.multi_reduction <add>, %959, %cst_397 [1] : vector<16x32xf32> to vector<16xf32>
    %961 = vector.shape_cast %960 : vector<16xf32> to vector<16x1xf32>
    %cst_398 = arith.constant 3.200000e+01 : f32
    %962 = vector.broadcast %cst_398 : f32 to vector<16x1xf32>
    %963 = arith.divf %961, %962 : vector<16x1xf32>
    %cst_399 = arith.constant 9.99999974E-6 : f32
    %964 = vector.broadcast %cst_399 : f32 to vector<16x1xf32>
    %965 = arith.addf %963, %964 : vector<16x1xf32>
    %966 = math.rsqrt %965 : vector<16x1xf32>
    %967 = vector.broadcast %966 : vector<16x1xf32> to vector<16x32xf32>
    %968 = arith.mulf %958, %967 : vector<16x32xf32>
    %969 = vector.broadcast %950 : vector<1x32xf32> to vector<16x32xf32>
    %970 = arith.mulf %968, %969 : vector<16x32xf32>
    %971 = vector.broadcast %952 : vector<1x32xf32> to vector<16x32xf32>
    %972 = arith.addf %970, %971 : vector<16x32xf32>
    %c1_400 = arith.constant 1 : index
    %c0_401 = arith.constant 0 : index
    %c0_402 = arith.constant 0 : index
    %973 = vector.load %arg20[%c1_400, %c0_401, %c0_402] : memref<2x32x64xf32, #tpu.memory_space<vmem>>, vector<1x32x64xf32>
    %974 = vector.shape_cast %973 : vector<1x32x64xf32> to vector<32x64xf32>
    %cst_403 = arith.constant dense<0.000000e+00> : vector<16x64xf32>
    %975 = tpu.matmul %972, %974, %cst_403 {dimension_numbers = #tpu.dot_dimension_numbers<[1], [0], [0], [1], [0, 0, 1, 1], [], []>} : vector<16x32xf32>, vector<32x64xf32>, vector<16x64xf32> -> vector<16x64xf32>
    %c1_404 = arith.constant 1 : index
    %c0_405 = arith.constant 0 : index
    %c0_406 = arith.constant 0 : index
    %976 = vector.load %arg21[%c1_404, %c0_405, %c0_406] : memref<2x1x64xf32, #tpu.memory_space<vmem>>, vector<1x1x64xf32>
    %977 = vector.shape_cast %976 : vector<1x1x64xf32> to vector<1x64xf32>
    %978 = vector.broadcast %977 : vector<1x64xf32> to vector<16x64xf32>
    %979 = arith.addf %975, %978 : vector<16x64xf32>
    %cst_407 = arith.constant 0.000000e+00 : f32
    %980 = vector.broadcast %cst_407 : f32 to vector<16x64xf32>
    %981 = arith.maximumf %979, %980 : vector<16x64xf32>
    %c1_408 = arith.constant 1 : index
    %c0_409 = arith.constant 0 : index
    %c0_410 = arith.constant 0 : index
    %982 = vector.load %arg22[%c1_408, %c0_409, %c0_410] : memref<2x64x32xf32, #tpu.memory_space<vmem>>, vector<1x64x32xf32>
    %983 = vector.shape_cast %982 : vector<1x64x32xf32> to vector<64x32xf32>
    %cst_411 = arith.constant dense<0.000000e+00> : vector<16x32xf32>
    %984 = tpu.matmul %981, %983, %cst_411 {dimension_numbers = #tpu.dot_dimension_numbers<[1], [0], [0], [1], [0, 0, 1, 1], [], []>} : vector<16x64xf32>, vector<64x32xf32>, vector<16x32xf32> -> vector<16x32xf32>
    %c1_412 = arith.constant 1 : index
    %c0_413 = arith.constant 0 : index
    %c0_414 = arith.constant 0 : index
    %985 = vector.load %arg23[%c1_412, %c0_413, %c0_414] : memref<2x1x32xf32, #tpu.memory_space<vmem>>, vector<1x1x32xf32>
    %986 = vector.shape_cast %985 : vector<1x1x32xf32> to vector<1x32xf32>
    %987 = vector.broadcast %986 : vector<1x32xf32> to vector<16x32xf32>
    %988 = arith.addf %984, %987 : vector<16x32xf32>
    %989 = arith.addf %988, %972 : vector<16x32xf32>
    %c1_415 = arith.constant 1 : index
    %c0_416 = arith.constant 0 : index
    %c0_417 = arith.constant 0 : index
    %990 = vector.load %arg24[%c1_415, %c0_416, %c0_417] : memref<2x1x32xf32, #tpu.memory_space<vmem>>, vector<1x1x32xf32>
    %991 = vector.shape_cast %990 : vector<1x1x32xf32> to vector<1x32xf32>
    %c1_418 = arith.constant 1 : index
    %c0_419 = arith.constant 0 : index
    %c0_420 = arith.constant 0 : index
    %992 = vector.load %arg25[%c1_418, %c0_419, %c0_420] : memref<2x1x32xf32, #tpu.memory_space<vmem>>, vector<1x1x32xf32>
    %993 = vector.shape_cast %992 : vector<1x1x32xf32> to vector<1x32xf32>
    %cst_421 = arith.constant dense<0.000000e+00> : vector<16xf32>
    %994 = vector.multi_reduction <add>, %989, %cst_421 [1] : vector<16x32xf32> to vector<16xf32>
    %995 = vector.shape_cast %994 : vector<16xf32> to vector<16x1xf32>
    %cst_422 = arith.constant 3.200000e+01 : f32
    %996 = vector.broadcast %cst_422 : f32 to vector<16x1xf32>
    %997 = arith.divf %995, %996 : vector<16x1xf32>
    %998 = vector.broadcast %997 : vector<16x1xf32> to vector<16x32xf32>
    %999 = arith.subf %989, %998 : vector<16x32xf32>
    %1000 = arith.mulf %999, %999 : vector<16x32xf32>
    %cst_423 = arith.constant dense<0.000000e+00> : vector<16xf32>
    %1001 = vector.multi_reduction <add>, %1000, %cst_423 [1] : vector<16x32xf32> to vector<16xf32>
    %1002 = vector.shape_cast %1001 : vector<16xf32> to vector<16x1xf32>
    %cst_424 = arith.constant 3.200000e+01 : f32
    %1003 = vector.broadcast %cst_424 : f32 to vector<16x1xf32>
    %1004 = arith.divf %1002, %1003 : vector<16x1xf32>
    %cst_425 = arith.constant 9.99999974E-6 : f32
    %1005 = vector.broadcast %cst_425 : f32 to vector<16x1xf32>
    %1006 = arith.addf %1004, %1005 : vector<16x1xf32>
    %1007 = math.rsqrt %1006 : vector<16x1xf32>
    %1008 = vector.broadcast %1007 : vector<16x1xf32> to vector<16x32xf32>
    %1009 = arith.mulf %999, %1008 : vector<16x32xf32>
    %1010 = vector.broadcast %991 : vector<1x32xf32> to vector<16x32xf32>
    %1011 = arith.mulf %1009, %1010 : vector<16x32xf32>
    %1012 = vector.broadcast %993 : vector<1x32xf32> to vector<16x32xf32>
    %1013 = arith.addf %1011, %1012 : vector<16x32xf32>
    %c0_426 = arith.constant 0 : index
    %c0_427 = arith.constant 0 : index
    %1014 = vector.load %arg26[%c0_426, %c0_427] : memref<32x16xf32, #tpu.memory_space<vmem>>, vector<32x16xf32>
    %cst_428 = arith.constant dense<0.000000e+00> : vector<16x16xf32>
    %1015 = tpu.matmul %1013, %1014, %cst_428 {dimension_numbers = #tpu.dot_dimension_numbers<[1], [0], [0], [1], [0, 0, 1, 1], [], []>} : vector<16x32xf32>, vector<32x16xf32>, vector<16x16xf32> -> vector<16x16xf32>
    %c0_429 = arith.constant 0 : index
    %c0_430 = arith.constant 0 : index
    %1016 = vector.load %arg27[%c0_429, %c0_430] : memref<1x16xf32, #tpu.memory_space<vmem>>, vector<1x16xf32>
    %1017 = vector.broadcast %1016 : vector<1x16xf32> to vector<16x16xf32>
    %1018 = arith.addf %1015, %1017 : vector<16x16xf32>
    %c0_431 = arith.constant 0 : index
    %c0_432 = arith.constant 0 : index
    %1019 = vector.load %arg28[%c0_431, %c0_432] : memref<16x16xf32, #tpu.memory_space<vmem>>, vector<16x16xf32>
    tpu.vector_store %arg28[%c0_431, %c0_432], %1018 {strides = array<i32>} : memref<16x16xf32, #tpu.memory_space<vmem>>, vector<16x16xf32>,
    return
  }
}

</mosaic_0001>

<bundles_post_ra>
// kernel: decoder_forward.1
= control target key start
LH: loop header
LB: loop body
LE: loop exit
PB: predicated region body
PF: predicated region fallthrough
CT: control target
= control target key end

     0   :  { %s10865_s0 = inlined_call_operand.vmem [shape: s32[16,1], index: 0, kind: input, shape index: {}]   ;;  %s10866_s1 = inlined_call_operand.vmem [shape: f32[16,32], index: 1, kind: input, shape index: {}]   ;;  %s10867_s2 = inlined_call_operand.vmem [shape: f32[8,32], index: 2, kind: input, shape index: {}]   ;;  %s10868_s3 = inlined_call_operand.vmem [shape: f32[16,32], index: 3, kind: input, shape index: {}]   ;;  %s10869_s4 = inlined_call_operand.vmem [shape: f32[2,8,8], index: 4, kind: input, shape index: {}]   ;;  %s10870_s5 = inlined_call_operand.hbm [shape: f32[2,1,8], index: 5, kind: input, shape index: {}]   ;;  %s10871_s6 = inlined_call_operand.vmem [shape: f32[2,32,32], index: 6, kind: input, shape index: {}]   ;;  %s10872_s7 = inlined_call_operand.vmem [shape: f32[2,32,32], index: 7, kind: input, shape index: {}]   ;;  %s10873_s8 = inlined_call_operand.vmem [shape: f32[2,32,32], index: 8, kind: input, shape index: {}]   ;;  %s10874_s9 = inlined_call_operand.vmem [shape: f32[2,32,32], index: 9, kind: input, shape index: {}]   ;;  %s10875_s10 = inlined_call_operand.hbm [shape: f32[2,1,32], index: 10, kind: input, shape index: {}]   ;;  %s10876_s11 = inlined_call_operand.hbm [shape: f32[2,1,32], index: 11, kind: input, shape index: {}]   ;;  %s10877_s12 = inlined_call_operand.hbm [shape: f32[2,1,32], index: 12, kind: input, shape index: {}]   ;;  %s10878_s13 = inlined_call_operand.hbm [shape: f32[2,32,32], index: 13, kind: input, shape index: {}]   ;;  %s10879_s14 = inlined_call_operand.hbm [shape: f32[2,32,32], index: 14, kind: input, shape index: {}]   ;;  %s10880_s15 = inlined_call_operand.hbm [shape: f32[2,32,32], index: 15, kind: input, shape index: {}]   ;;  %s10881_s16 = inlined_call_operand.hbm [shape: f32[2,32,32], index: 16, kind: input, shape index: {}]   ;;  %s10882_s17 = inlined_call_operand.hbm [shape: f32[2,1,32], index: 17, kind: input, shape index: {}]   ;;  %s10883_s18 = inlined_call_operand.hbm [shape: f32[2,1,32], index: 18, kind: input, shape index: {}]   ;;  %s10884_s19 = inlined_call_operand.hbm [shape: f32[2,1,32], index: 19, kind: input, shape index: {}]   ;;  %s10885_s20 = inlined_call_operand.hbm [shape: f32[2,32,64], index: 20, kind: input, shape index: {}]   ;;  %s10886_s21 = inlined_call_operand.hbm [shape: f32[2,1,64], index: 21, kind: input, shape index: {}]   ;;  %s10887_s22 = inlined_call_operand.vmem [shape: f32[2,64,32], index: 22, kind: input, shape index: {}]   ;;  %s10888_s23 = inlined_call_operand.hbm [shape: f32[2,1,32], index: 23, kind: input, shape index: {}]   ;;  %s10889_s24 = inlined_call_operand.hbm [shape: f32[2,1,32], index: 24, kind: input, shape index: {}]   ;;  %s10890_s25 = inlined_call_operand.hbm [shape: f32[2,1,32], index: 25, kind: input, shape index: {}]   ;;  %s10891_s26 = inlined_call_operand.vmem [shape: f32[32,16], index: 26, kind: input, shape index: {}]   ;;  %s10892_s27 = inlined_call_operand.hbm [shape: f32[1,16], index: 27, kind: input, shape index: {}]   ;;  %s10893_s28 = inlined_call_operand.hbm [shape: f32[16,16], index: 28, kind: output, shape index: {}]  }
   0x1   :  { %10902 = sst [smem:[#allocation40_spill]] %s10865_s0 }
   0x2   :  { %10903 = sst [smem:[#allocation41_spill]] %s10866_s1 }
   0x3   :  { %10904 = sst [smem:[#allocation42_spill]] %s10867_s2 }
   0x4   :  { %10905 = sst [smem:[#allocation43_spill]] %s10868_s3 }
   0x5   :  { %10906 = sst [smem:[#allocation44_spill]] %s10869_s4 }
   0x6   :  { %10907 = sst [smem:[#allocation45_spill]] %s10870_s5 }
   0x7   :  { %10908 = sst [smem:[#allocation46_spill]] %s10871_s6 }
   0x8   :  { %10909 = sst [smem:[#allocation47_spill]] %s10872_s7 }
   0x9   :  { %10910 = sst [smem:[#allocation48_spill]] %s10873_s8 }
   0xa   :  { %10911 = sst [smem:[#allocation49_spill]] %s10874_s9 }
   0xb   :  { %10912 = sst [smem:[#allocation50_spill]] %s10875_s10 }
   0xc   :  { %10913 = sst [smem:[#allocation51_spill]] %s10876_s11 }
   0xd   :  { %10914 = sst [smem:[#allocation52_spill]] %s10877_s12 }
   0xe   :  { %33 = vsyncpa [#allocation3], 0 }
   0xf   :  { %34 = vsyncpa [#allocation6], 0 }
  0x10   :  { %35 = vsyncpa [#allocation9], 0 }
  0x11   :  { %36 = vsyncpa [#allocation12], 0 }
  0x12   :  { %37 = vsyncpa [#allocation15], 0 }
  0x13   :  { %38 = vsyncpa [#allocation18], 0 }
  0x14   :  { %39 = vsyncpa [#allocation21], 0 }
  0x15   :  { %40 = vsyncpa [#allocation24], 0 }
  0x16   :  { %41 = vsyncpa [#allocation27], 0 }
  0x17   :  { %42 = vsyncpa [#allocation4], 0  ;;  %s9613_s8 = smov [#allocation5]   ;;  %s9614_s9 = smov [#allocation8]  }
  0x18   :  { %s78_s5 = sshll.u32 %s9613_s8, 4  ;;  %s102_s30 = sshll.u32 %s9614_s9, 4  ;;  %s79_s5 = int_to_ptr.vmem [resolvable:$true] %s78_s5  ;;  %s103_s30 = int_to_ptr.vmem [resolvable:$true] %s102_s30 }
  0x19   :  { %s9241_s3 = scalar_lea.vmem %s79_s5, 32  ;;  %p9246_p1 = scmp.lt.s32.totalorder %s79_s5, %s79_s5 }
  0x1a   :  { %p9242_p0 = scmp.ne.s32.totalorder %s79_s5, %s9241_s3  ;;  %p9247_p2 = scmp.lt.s32.totalorder %s9241_s3, %s9241_s3 }
  0x1c   :  { %p9248_p3 = por %p9247_p2, %p9246_p1 }
  0x1e   :  { %p9249_p4 = pnand %p9248_p3, %p9242_p0 }
  0x20   :  { %9252 = shalt.err (!%p9249_p4)
}
  0x21   :  { %s9615_s6 = smov 16   ;;  %s9616_s10 = smov 1  }
  0x22   :  { %s10915_s29 = sld [smem:[#allocation50_spill]]  ;;  %s9261_s2 = scalar_lea.vmem %s103_s30, 32 }
  0x23   :  { %p9262_p5 = scmp.ne.s32.totalorder %s103_s30, %s9261_s2  ;;  %p9266_p6 = scmp.lt.s32.totalorder %s103_s30, %s103_s30 }
  0x24   :  { %p9267_p7 = scmp.lt.s32.totalorder %s9261_s2, %s9261_s2 }
  0x26   :  { %p9268_p8 = por %p9267_p7, %p9266_p6 }
  0x28   :  { %84 = dma.hbm_to_vmem [thread:$0]  %s10915_s29, 32, %s79_s5, [#allocation6], %s9615_s6, %s9615_s6, %s9616_s10  }
  0x29   :  { %p9269_p9 = pnand %p9268_p8, %p9262_p5 }
  0x2b   :  { %9272 = shalt.err (!%p9269_p9)
}
  0x2c   :  { %s10916_s1 = sld [smem:[#allocation52_spill]]  ;;  %s9617_s4 = smov [#allocation11]  }
  0x2d   :  { %s126_s8 = sshll.u32 %s9617_s4, 4  ;;  %s9618_s9 = smov [#allocation14]   ;;  %s127_s8 = int_to_ptr.vmem [resolvable:$true] %s126_s8 }
  0x2e   :  { %s150_s3 = sshll.u32 %s9618_s9, 4  ;;  %s9281_s5 = scalar_lea.vmem %s127_s8, 1024  ;;  %s151_s3 = int_to_ptr.vmem [resolvable:$true] %s150_s3 }
  0x2f   :  { %p9282_p10 = scmp.ne.s32.totalorder %s127_s8, %s9281_s5  ;;  %p9286_p11 = scmp.lt.s32.totalorder %s127_s8, %s127_s8 }
  0x30   :  { %p9287_p12 = scmp.lt.s32.totalorder %s9281_s5, %s9281_s5 }
  0x32   :  { %108 = dma.hbm_to_vmem [thread:$0]  %s10916_s1, 32, %s103_s30, [#allocation9], %s9615_s6, %s9615_s6, %s9616_s10  }
  0x33   :  { %p9288_p13 = por %p9287_p12, %p9286_p11 }
  0x35   :  { %p9289_p0 = pnand %p9288_p13, %p9282_p10 }
  0x37   :  { %9292 = shalt.err (!%p9289_p0)
}
  0x38   :  { %s9619_s0 = smov 128   ;;  %s9620_s11 = smov 8  }
  0x39   :  { %132 = dma.hbm_to_vmem [thread:$0]  %s10879_s14, 1024, %s127_s8, [#allocation12], %s9619_s0, %s9619_s0, %s9620_s11  }
  0x3a   :  { %s9301_s2 = scalar_lea.vmem %s151_s3, 1024  ;;  %p9306_p2 = scmp.lt.s32.totalorder %s151_s3, %s151_s3 }
  0x3b   :  { %p9302_p1 = scmp.ne.s32.totalorder %s151_s3, %s9301_s2  ;;  %p9307_p3 = scmp.lt.s32.totalorder %s9301_s2, %s9301_s2 }
  0x3d   :  { %p9308_p4 = por %p9307_p3, %p9306_p2 }
  0x3f   :  { %p9309_p5 = pnand %p9308_p4, %p9302_p1 }
  0x41   :  { %9312 = shalt.err (!%p9309_p5)
}
  0x42   :  { %156 = dma.hbm_to_vmem [thread:$0]  %s10881_s16, 1024, %s151_s3, [#allocation15], %s9619_s0, %s9619_s0, %s9620_s11  }
  0x43   :  { %s9621_s1 = smov [#allocation17]   ;;  %s9622_s9 = smov [#allocation20]  }
  0x44   :  { %s174_s4 = sshll.u32 %s9621_s1, 4  ;;  %s198_s5 = sshll.u32 %s9622_s9, 4  ;;  %s175_s4 = int_to_ptr.vmem [resolvable:$true] %s174_s4  ;;  %s199_s5 = int_to_ptr.vmem [resolvable:$true] %s198_s5 }
  0x45   :  { %s9321_s14 = scalar_lea.vmem %s175_s4, 32  ;;  %p9326_p7 = scmp.lt.s32.totalorder %s175_s4, %s175_s4 }
  0x46   :  { %p9322_p6 = scmp.ne.s32.totalorder %s175_s4, %s9321_s14  ;;  %p9327_p8 = scmp.lt.s32.totalorder %s9321_s14, %s9321_s14 }
  0x48   :  { %p9328_p9 = por %p9327_p8, %p9326_p7 }
  0x4a   :  { %p9329_p10 = pnand %p9328_p9, %p9322_p6 }
  0x4c   :  { %9332 = shalt.err (!%p9329_p10)
}
  0x4d   :  { %180 = dma.hbm_to_vmem [thread:$0]  %s10883_s18, 32, %s175_s4, [#allocation18], %s9615_s6, %s9615_s6, %s9616_s10  }
  0x4e   :  { %s9341_s16 = scalar_lea.vmem %s199_s5, 1024  ;;  %p9346_p12 = scmp.lt.s32.totalorder %s199_s5, %s199_s5 }
  0x4f   :  { %p9342_p11 = scmp.ne.s32.totalorder %s199_s5, %s9341_s16  ;;  %p9347_p13 = scmp.lt.s32.totalorder %s9341_s16, %s9341_s16 }
  0x51   :  { %p9348_p0 = por %p9347_p13, %p9346_p12 }
  0x53   :  { %p9349_p1 = pnand %p9348_p0, %p9342_p11 }
  0x55   :  { %9352 = shalt.err (!%p9349_p1)
}
  0x56   :  { %204 = dma.hbm_to_vmem [thread:$0]  %s10885_s20, 1024, %s199_s5, [#allocation21], %s9619_s0, %s9619_s0, %s9620_s11  }
  0x57   :  { %s9623_s2 = smov [#allocation23]   ;;  %s9624_s12 = smov [#allocation26]  }
  0x58   :  { %s224_s7 = sshll.u32 %s9623_s2, 4  ;;  %s248_s1 = sshll.u32 %s9624_s12, 4  ;;  %s225_s7 = int_to_ptr.vmem [resolvable:$true] %s224_s7  ;;  %s249_s1 = int_to_ptr.vmem [resolvable:$true] %s248_s1 }
  0x59   :  { %s9361_s18 = scalar_lea.vmem %s225_s7, 32  ;;  %p9366_p3 = scmp.lt.s32.totalorder %s225_s7, %s225_s7 }
  0x5a   :  { %p9362_p2 = scmp.ne.s32.totalorder %s225_s7, %s9361_s18  ;;  %p9367_p4 = scmp.lt.s32.totalorder %s9361_s18, %s9361_s18 }
  0x5c   :  { %p9368_p5 = por %p9367_p4, %p9366_p3 }
  0x5e   :  { %p9369_p6 = pnand %p9368_p5, %p9362_p2 }
  0x60   :  { %9372 = shalt.err (!%p9369_p6)
}
  0x61   :  { %230 = dma.hbm_to_vmem [thread:$0]  %s10888_s23, 32, %s225_s7, [#allocation24], %s9615_s6, %s9615_s6, %s9616_s10  }
  0x62   :  { %s9381_s20 = scalar_lea.vmem %s249_s1, 32  ;;  %p9386_p8 = scmp.lt.s32.totalorder %s249_s1, %s249_s1 }
  0x63   :  { %p9382_p7 = scmp.ne.s32.totalorder %s249_s1, %s9381_s20  ;;  %p9387_p9 = scmp.lt.s32.totalorder %s9381_s20, %s9381_s20 }
  0x65   :  { %p9388_p10 = por %p9387_p9, %p9386_p8 }
  0x67   :  { %p9389_p11 = pnand %p9388_p10, %p9382_p7 }
  0x69   :  { %9392 = shalt.err (!%p9389_p11)
}
  0x6a   :  { %254 = dma.hbm_to_vmem [thread:$0]  %s10890_s25, 32, %s249_s1, [#allocation27], %s9615_s6, %s9615_s6, %s9616_s10  }
  0x6b   :  { %s9625_s8 = smov [#allocation2]   ;;  %s9626_s16 = smov [#allocation7]  }
  0x6c   :  { %s58_s29 = sshll.u32 %s9625_s8, 4  ;;  %s90_s3 = sshll.u32 %s9626_s16, 4  ;;  %s59_s29 = int_to_ptr.vmem [resolvable:$true] %s58_s29  ;;  %s91_s3 = int_to_ptr.vmem [resolvable:$true] %s90_s3 }
  0x6d   :  { %s9401_s23 = scalar_lea.vmem %s59_s29, 32  ;;  %p9406_p13 = scmp.lt.s32.totalorder %s59_s29, %s59_s29 }
  0x6e   :  { %p9402_p12 = scmp.ne.s32.totalorder %s59_s29, %s9401_s23  ;;  %p9407_p0 = scmp.lt.s32.totalorder %s9401_s23, %s9401_s23 }
  0x70   :  { %p9408_p1 = por %p9407_p0, %p9406_p13 }
  0x72   :  { %p9409_p2 = pnand %p9408_p1, %p9402_p12 }
  0x74   :  { %9412 = shalt.err (!%p9409_p2)
}
  0x75   :  { %s10917_s7 = sld [smem:[#allocation45_spill]]  ;;  %s9421_s25 = scalar_lea.vmem %s91_s3, 32 }
  0x76   :  { %p9422_p3 = scmp.ne.s32.totalorder %s91_s3, %s9421_s25  ;;  %p9426_p4 = scmp.lt.s32.totalorder %s91_s3, %s91_s3 }
  0x77   :  { %p9427_p5 = scmp.lt.s32.totalorder %s9421_s25, %s9421_s25 }
  0x79   :  { %p9428_p6 = por %p9427_p5, %p9426_p4 }
  0x7b   :  { %64 = dma.hbm_to_vmem [thread:$0]  %s10917_s7, 32, %s59_s29, [#allocation3], %s9615_s6, %s9615_s6, %s9616_s10  }
  0x7c   :  { %p9429_p7 = pnand %p9428_p6, %p9422_p3 }
  0x7e   :  { %9432 = shalt.err (!%p9429_p7)
}
  0x7f   :  { %s10918_s18 = sld [smem:[#allocation51_spill]]  ;;  %s9627_s4 = smov [#allocation10]  }
  0x80   :  { %s114_s9 = sshll.u32 %s9627_s4, 4  ;;  %s9628_s20 = smov [#allocation13]   ;;  %s115_s9 = int_to_ptr.vmem [resolvable:$true] %s114_s9 }
  0x81   :  { %s138_s5 = sshll.u32 %s9628_s20, 4  ;;  %s9441_s14 = scalar_lea.vmem %s115_s9, 1024  ;;  %s139_s5 = int_to_ptr.vmem [resolvable:$true] %s138_s5 }
  0x82   :  { %p9442_p8 = scmp.ne.s32.totalorder %s115_s9, %s9441_s14  ;;  %p9446_p9 = scmp.lt.s32.totalorder %s115_s9, %s115_s9 }
  0x83   :  { %p9447_p10 = scmp.lt.s32.totalorder %s9441_s14, %s9441_s14 }
  0x85   :  { %96 = dma.hbm_to_vmem [thread:$0]  %s10918_s18, 32, %s91_s3, [#allocation6], %s9615_s6, %s9615_s6, %s9616_s10  }
  0x86   :  { %p9448_p11 = por %p9447_p10, %p9446_p9 }
  0x88   :  { %p9449_p12 = pnand %p9448_p11, %p9442_p8 }
  0x8a   :  { %9452 = shalt.err (!%p9449_p12)
}
  0x8b   :  { %120 = dma.hbm_to_vmem [thread:$0]  %s10878_s13, 1024, %s115_s9, [#allocation9], %s9619_s0, %s9619_s0, %s9620_s11  }
  0x8c   :  { %s9461_s16 = scalar_lea.vmem %s139_s5, 1024  ;;  %p9466_p0 = scmp.lt.s32.totalorder %s139_s5, %s139_s5 }
  0x8d   :  { %p9462_p13 = scmp.ne.s32.totalorder %s139_s5, %s9461_s16  ;;  %p9467_p1 = scmp.lt.s32.totalorder %s9461_s16, %s9461_s16 }
  0x8f   :  { %p9468_p2 = por %p9467_p1, %p9466_p0 }
  0x91   :  { %p9469_p3 = pnand %p9468_p2, %p9462_p13 }
  0x93   :  { %9472 = shalt.err (!%p9469_p3)
}
  0x94   :  { %144 = dma.hbm_to_vmem [thread:$0]  %s10880_s15, 1024, %s139_s5, [#allocation12], %s9619_s0, %s9619_s0, %s9620_s11  }
  0x95   :  { %s9629_s30 = smov [#allocation16]   ;;  %s9630_s7 = smov [#allocation19]  }
  0x96   :  { %s162_s2 = sshll.u32 %s9629_s30, 4  ;;  %s186_s25 = sshll.u32 %s9630_s7, 4  ;;  %s163_s2 = int_to_ptr.vmem [resolvable:$true] %s162_s2  ;;  %s187_s25 = int_to_ptr.vmem [resolvable:$true] %s186_s25 }
  0x97   :  { %s9481_s13 = scalar_lea.vmem %s163_s2, 32  ;;  %p9486_p5 = scmp.lt.s32.totalorder %s163_s2, %s163_s2 }
  0x98   :  { %p9482_p4 = scmp.ne.s32.totalorder %s163_s2, %s9481_s13  ;;  %p9487_p6 = scmp.lt.s32.totalorder %s9481_s13, %s9481_s13 }
  0x9a   :  { %p9488_p7 = por %p9487_p6, %p9486_p5 }
  0x9c   :  { %p9489_p8 = pnand %p9488_p7, %p9482_p4 }
  0x9e   :  { %9492 = shalt.err (!%p9489_p8)
}
  0x9f   :  { %168 = dma.hbm_to_vmem [thread:$0]  %s10882_s17, 32, %s163_s2, [#allocation15], %s9615_s6, %s9615_s6, %s9616_s10  }
  0xa0   :  { %s9501_s15 = scalar_lea.vmem %s187_s25, 32  ;;  %p9506_p10 = scmp.lt.s32.totalorder %s187_s25, %s187_s25 }
  0xa1   :  { %p9502_p9 = scmp.ne.s32.totalorder %s187_s25, %s9501_s15  ;;  %p9507_p11 = scmp.lt.s32.totalorder %s9501_s15, %s9501_s15 }
  0xa3   :  { %p9508_p12 = por %p9507_p11, %p9506_p10 }
  0xa5   :  { %p9509_p13 = pnand %p9508_p12, %p9502_p9 }
  0xa7   :  { %9512 = shalt.err (!%p9509_p13)
}
  0xa8   :  { %192 = dma.hbm_to_vmem [thread:$0]  %s10884_s19, 32, %s187_s25, [#allocation18], %s9615_s6, %s9615_s6, %s9616_s10  }
  0xa9   :  { %s9631_s9 = smov [#allocation22]   ;;  %s9632_s5 = smov [#allocation25]  }
  0xaa   :  { %s210_s20 = sshll.u32 %s9631_s9, 4  ;;  %s236_s14 = sshll.u32 %s9632_s5, 4  ;;  %s211_s20 = int_to_ptr.vmem [resolvable:$true] %s210_s20  ;;  %s237_s14 = int_to_ptr.vmem [resolvable:$true] %s236_s14 }
  0xab   :  { %s9521_s17 = scalar_lea.vmem %s211_s20, 32  ;;  %p9526_p1 = scmp.lt.s32.totalorder %s211_s20, %s211_s20 }
  0xac   :  { %p9522_p0 = scmp.ne.s32.totalorder %s211_s20, %s9521_s17  ;;  %p9527_p2 = scmp.lt.s32.totalorder %s9521_s17, %s9521_s17 }
  0xae   :  { %p9528_p3 = por %p9527_p2, %p9526_p1 }
  0xb0   :  { %p9529_p4 = pnand %p9528_p3, %p9522_p0 }
  0xb2   :  { %9532 = shalt.err (!%p9529_p4)
}
  0xb3   :  { %216 = dma.hbm_to_vmem [thread:$0]  %s10886_s21, 32, %s211_s20, [#allocation21], %s9615_s6, %s9615_s6, %s9616_s10  }
  0xb4   :  { %s9541_s19 = scalar_lea.vmem %s237_s14, 32  ;;  %p9546_p6 = scmp.lt.s32.totalorder %s237_s14, %s237_s14 }
  0xb5   :  { %p9542_p5 = scmp.ne.s32.totalorder %s237_s14, %s9541_s19  ;;  %p9547_p7 = scmp.lt.s32.totalorder %s9541_s19, %s9541_s19 }
  0xb7   :  { %p9548_p8 = por %p9547_p7, %p9546_p6 }
  0xb9   :  { %p9549_p9 = pnand %p9548_p8, %p9542_p5 }
  0xbb   :  { %9552 = shalt.err (!%p9549_p9)
}
  0xbc   :  { %242 = dma.hbm_to_vmem [thread:$0]  %s10889_s24, 32, %s237_s14, [#allocation24], %s9615_s6, %s9615_s6, %s9616_s10  }
  0xbd   :  { %s9633_s23 = smov [#allocation28]  }
  0xbe   :  { %s263_s30 = sshll.u32 %s9633_s23, 4  ;;  %s264_s30 = int_to_ptr.vmem [resolvable:$true] %s263_s30 }
  0xbf   :  { %s9561_s2 = scalar_lea.vmem %s264_s30, 16  ;;  %s9565_s21 = scalar_lea.vmem %s264_s30, 32 }
  0xc0   :  { %p9562_p10 = scmp.ne.s32.totalorder %s264_s30, %s9561_s2  ;;  %p9566_p11 = scmp.lt.s32.totalorder %s264_s30, %s264_s30 }
  0xc1   :  { %p9567_p12 = scmp.lt.s32.totalorder %s9565_s21, %s9561_s2 }
  0xc3   :  { %p9568_p13 = por %p9567_p12, %p9566_p11 }
  0xc5   :  { %p9569_p0 = pnand %p9568_p13, %p9562_p10 }
  0xc7   :  { %9572 = shalt.err (!%p9569_p0)
}
  0xc8   :  { %266 = dma.hbm_to_vmem [thread:$0]  %s10892_s27, 16, %s264_s30, [#allocation27]  }
  0xc9   :  { %9593 = dma.done.wait [#allocation3], 32  }
  0xca   :  { %9594 = vsyncadd [#allocation3], 4294967264 }
  0xcb   :  { %9595 = dma.done.wait [#allocation6], 64  }
  0xcc   :  { %9596 = vsyncadd [#allocation6], 4294967232 }
  0xcd   :  { %9597 = dma.done.wait [#allocation9], 1056  }
  0xce   :  { %9598 = vsyncadd [#allocation9], 4294966240 }
  0xcf   :  { %9599 = dma.done.wait [#allocation12], 2048  }
  0xd0   :  { %9600 = vsyncadd [#allocation12], 4294965248 }
  0xd1   :  { %9601 = dma.done.wait [#allocation15], 1056  }
  0xd2   :  { %9602 = vsyncadd [#allocation15], 4294966240 }
  0xd3   :  { %9603 = dma.done.wait [#allocation18], 64  }
  0xd4   :  { %9604 = vsyncadd [#allocation18], 4294967232 }
  0xd5   :  { %9605 = dma.done.wait [#allocation21], 1056  }
  0xd6   :  { %9606 = vsyncadd [#allocation21], 4294966240 }
  0xd7   :  { %9607 = dma.done.wait [#allocation24], 64  }
  0xd8   :  { %9608 = vsyncadd [#allocation24], 4294967232 }
  0xd9   :  { %9609 = dma.done.wait [#allocation27], 48  }
  0xda   :  { %9610 = vsyncadd [#allocation27], 4294967248  ;;  %v320_v0 = vlaneseq  ;;  %v9634_v1 = vmov 0   ;;  %v2423_v4 = vld [vmem:[#allocation2] sm:$0x1]  ;;  %s10919_s10 = sld [smem:[#allocation40_spill]] }
  0xdb   :  { %9078 = vset.pattern.permute.xlu0 %v9634_v1  ;;  %v3111_v5 = vld [vmem:[#allocation2 + $0x1] sm:$0x1]  ;;  %vm2500_vm0 = vcmp.eq.f32.partialorder %v2423_v4, 0.0  ;;  %s10920_s1 = sld [smem:[#allocation41_spill]]  ;;  %vm337_vm2 = vcmask 130048   ;;  %v9635_v19 = vmov 0.0  }
  0xdc   :  { %v2503_v2 = vshrl.u32 %v320_v0, 7  ;;  %vm3188_vm1 = vcmp.eq.f32.partialorder %v3111_v5, 0.0  ;;  %v2501_v9 = vsel %vm2500_vm0, 1, %v9634_v1  ;;  %s10921_s14 = sld [smem:[#allocation46_spill]]  ;;  %v321_v17 = vand.u32 127, %v320_v0  ;;  %s9637_s16 = smov 112  }
  0xdd   :  { %v3189_v10 = vsel %vm3188_vm1, 1, %v9634_v1  ;;  %s10922_s29 = sld [smem:[#allocation47_spill]]  ;;  %vm438_vm5 = vcmask 261120   ;;  %vm9636_vm6 = vmmov 0   ;;  %vm671_vm7 = vcmask 64512   ;;  %s9638_s3 = smov 120  }
  0xde   :  { %v2504_v3 = vsub.s32 0, %v2503_v2  ;;  %s10924_s4 = sld [smem:[#allocation42_spill]]  ;;  %s9639_s23 = smov 104   ;;  %vm1351_vm10 = vcmask 195584   ;;  %vm4040_vm13 = vcmask 523264  }
  0xdf   :  { %s10925_s21 = sld [smem:[#allocation44_spill]]  ;;  %s9640_s20 = smov 24  }
  0xe0   :  { %v318_v6 = vld [vmem:[%s10919_s10] sm:$0xff]  ;;  %v319_v11 = vld [vmem:[%s10919_s10 + $0x8] sm:$0xff]  ;;  %v9898_v12 = vrot.slane %v2501_v9, %v2504_v3  ;;  %v9900_v13 = vrot.slane %v3189_v10, %v2504_v3  ;;  %s10926_s10 = sld [smem:[#allocation49_spill]] }
  0xe1   :  { %323 = vperm.xlu0 %9078, %v318_v6   ;;  %v335_v7 = vld [vmem:[%s10920_s1 + $0x8] sm:$0xff]  ;;  %v334_v8 = vld [vmem:[%s10920_s1] sm:$0xff]  ;;  %s10923_s1 = sld [smem:[#allocation48_spill]] }
  0xe2   :  { %8475 = vmatprep.subr.mxu0 %v335_v7  ;;  %v424_v14 = vld [vmem:[%s10921_s14 + $0x18] sm:$0xff]  ;;  %v423_v16 = vld [vmem:[%s10921_s14 + $0x10] sm:$0xff]  ;;  %v422_v24 = vld [vmem:[%s10921_s14 + $0x8] sm:$0xff]  ;;  %s10927_s8 = sld [smem:[#allocation43_spill]]  ;;  %vm2506_vm11 = vcmp.eq.s32.totalorder %v9898_v12, 1  ;;  %vm3194_vm12 = vcmp.eq.s32.totalorder %v9900_v13, 1 }
  0xe3   :  { %8476 = vmatpush3.msra.mxu0 %v335_v7  ;;  %v428_v15 = vld [vmem:[%s10922_s29 + $0x18] sm:$0xff]  ;;  %8482 = vmatprep.subr.mxu1 %v424_v14  ;;  %v427_v23 = vld [vmem:[%s10922_s29 + $0x10] sm:$0xff]  ;;  %v426_v25 = vld [vmem:[%s10922_s29 + $0x8] sm:$0xff] }
  0xe4   :  { %8477 = vmatprep.subr.mxu0 %v334_v8  ;;  %8483 = vmatpush3.msra.mxu1 %v424_v14  ;;  %v421_v26 = vld [vmem:[%s10921_s14] sm:$0xff] }
  0xe5   :  { %326 = vperm.xlu0 %9078, %v319_v11   ;;  %8478 = vmatpush3.msra.mxu0 %v334_v8  ;;  %v425_v27 = vld [vmem:[%s10922_s29] sm:$0xff]  ;;  %v10039_v6 = vld [vmem:[%s10925_s21 + $0x8] sm:$0xff] }
  0xe6   :  { %8493 = vmatprep.subr.mxu0 %v428_v15  ;;  %8484 = vmatprep.subr.mxu1 %v423_v16  ;;  %v336_v30 = vld [vmem:[%s10924_s4] sm:$0xff]  ;;  %vm1431_vm9 = vcmp.eq.f32.partialorder %v10039_v6, 0.0 }
  0xe7   :  { %8485 = vmatpush3.msra.mxu1 %v423_v16  ;;  %v432_v28 = vld [vmem:[%s10923_s1 + $0x18] sm:$0xff]  ;;  %v431_v34 = vld [vmem:[%s10923_s1 + $0x10] sm:$0xff]  ;;  %v430_v35 = vld [vmem:[%s10923_s1 + $0x8] sm:$0xff] }
  0xe8   :  { %8486 = vmatprep.subr.mxu1 %v422_v24  ;;  %v429_v36 = vld [vmem:[%s10923_s1] sm:$0xff] }
  0xe9   :  { %8487 = vmatpush3.msra.mxu1 %v422_v24  ;;  %v10025_v55 = vld [vmem:[%s10925_s21] sm:$0xff] }
  0xea   :  { %8488 = vmatprep.subr.mxu1 %v421_v26  ;;  %vm748_vm8 = vcmp.eq.f32.partialorder %v10025_v55, 0.0 }
  0xeb   :  { %8489 = vmatpush3.msra.mxu1 %v421_v26 }
  0xec   :  { %8504 = vmatprep.subr.mxu1 %v432_v28 }
 0x15c   :  { %v324_v18 = vpop.permute.xlu0 %323 }
 0x15d   :  { %vm328_vm3 = vcmp.eq.s32.totalorder %v324_v18, %v321_v17 }
 0x15e   :  { %v8021_v20 = vsel %vm328_vm3, 1.0, %v9635_v19 }
 0x15f   :  { %8479 = vmatprep.mubr.msk.f32.mxu0 %vm337_vm2, %v8021_v20 }
 0x160   :  { %v327_v21 = vpop.permute.xlu0 %326 }
 0x161   :  { %vm329_vm4 = vcmp.eq.s32.totalorder %v327_v21, %v321_v17 }
 0x162   :  { %v8022_v22 = vsel %vm329_vm4, 1.0, %v9635_v19 }
 0x163   :  { %8480 = vmatmul.mubr.msk.f32.vlgmr.msra.gmra.mxu0 %vm337_vm2, %v8022_v22 }
 0x164   :  { %8494 = vmatpush3.msra.mxu0 %v428_v15 }
 0x165   :  { %8495 = vmatprep.subr.mxu0 %v427_v23 }
 0x166   :  { %8496 = vmatpush3.msra.mxu0 %v427_v23 }
 0x167   :  { %8497 = vmatprep.subr.mxu0 %v426_v25 }
 0x168   :  { %8498 = vmatpush3.msra.mxu0 %v426_v25 }
 0x169   :  { %8499 = vmatprep.subr.mxu0 %v425_v27 }
 0x16a   :  { %8500 = vmatpush3.msra.mxu0 %v425_v27 }
 0x16b   :  { %8515 = vmatprep.subr.mxu0 %v9635_v19 }
 0x223   :  { %v8481_v29 = vpop.f32.mrf.mxu0 }
 0x224   :  { %v9939_v33 = vadd.f32 %v8481_v29, %v336_v30 }
 0x225   :  { %v410_v31 = vpop.f32.mrf.mxu0 }
 0x226   :  { %v9937_v32 = vadd.f32 %v410_v31, %v336_v30 }
 0x228   :  { %8490 = vmatprep.mubr.msk.f32.mxu1 %vm438_vm5, %v9937_v32  ;;  %8501 = vmatprep.mubr.msk.f32.mxu0 %vm438_vm5, %v9937_v32 }
 0x229   :  { %8491 = vmatmul.mubr.msk.f32.vlgmr.msra.gmra.mxu1 %vm438_vm5, %v9939_v33  ;;  %8502 = vmatmul.mubr.msk.f32.vlgmr.msra.gmra.mxu0 %vm438_vm5, %v9939_v33 }
 0x22a   :  { %8505 = vmatpush3.msra.mxu1 %v432_v28  ;;  %8512 = vmatprep.mubr.msk.f32.mxu1 %vm438_vm5, %v9937_v32 }
 0x22b   :  { %8506 = vmatprep.subr.mxu1 %v431_v34  ;;  %8517 = vmatprep.mubr.msk.f32.mxu0 %vm9636_vm6, %v9635_v19 }
 0x22c   :  { %8507 = vmatpush3.msra.mxu1 %v431_v34 }
 0x22d   :  { %8508 = vmatprep.subr.mxu1 %v430_v35 }
 0x22e   :  { %8509 = vmatpush3.msra.mxu1 %v430_v35 }
 0x22f   :  { %8510 = vmatprep.subr.mxu1 %v429_v36 }
 0x230   :  { %8511 = vmatpush3.msra.mxu1 %v429_v36 }
 0x231   :  { %8513 = vmatmul.mubr.msk.f32.vlgmr.msra.gmra.mxu1 %vm438_vm5, %v9939_v33  ;;  %8525 = vmatprep.subr.mxu1 %v9635_v19 }
 0x232   :  { %8527 = vmatprep.mubr.msk.f32.mxu1 %vm9636_vm6, %v9635_v19 }
 0x2e9   :  { %v8503_v37 = vpop.f32.mrf.mxu0  ;;  %v8492_v38 = vpop.f32.mrf.mxu1 }
 0x2eb   :  { %v586_v39 = vpop.f32.mrf.mxu0  ;;  %v511_v40 = vpop.f32.mrf.mxu1 }
 0x2ec   :  { %1005 = vrot.lane.b32.xlu0 %v586_v39, %s9637_s16  ;;  %837 = vrot.lane.b32.xlu1 %v586_v39, %s9638_s3 }
 0x2ed   :  { %8516 = vmatpush3.xpose.msk.msra.mxu0 %vm671_vm7, %v586_v39 }
 0x2ee   :  { %8520 = vmatprep.subr.mxu0 %v9635_v19 }
 0x2f0   :  { %8518 = vmatmul.mubr.msk.f32.vlgmr.msra.gmra.mxu0 %vm671_vm7, %v511_v40  ;;  %1172 = vrot.lane.b32.xlu0 %v586_v39, %s9639_s23 }
 0x2f1   :  { %835 = vrot.lane.b32.xlu1 %v511_v40, %s9638_s3  ;;  %v9974_v41 = vpop.f32.mrf.mxu1  ;;  %8522 = vmatprep.mubr.msk.f32.mxu0 %vm9636_vm6, %v9635_v19 }
 0x2f3   :  { %v9978_v42 = vpop.f32.mrf.mxu1 }
 0x2f4   :  { %8521 = vmatpush3.msra.mxu0 %v9978_v42  ;;  %1520 = vrot.lane.b32.xlu0 %v8503_v37, %s9638_s3 }
 0x2f5   :  { %1003 = vrot.lane.b32.xlu1 %v511_v40, %s9637_s16  ;;  %8530 = vmatprep.subr.mxu0 %v9635_v19 }
 0x2f8   :  { %1688 = vrot.lane.b32.xlu0 %v8503_v37, %s9637_s16 }
 0x2f9   :  { %1170 = vrot.lane.b32.xlu1 %v511_v40, %s9639_s23 }
 0x2fc   :  { %1855 = vrot.lane.b32.xlu0 %v8503_v37, %s9639_s23 }
 0x2fd   :  { %1518 = vrot.lane.b32.xlu1 %v8492_v38, %s9638_s3 }
 0x301   :  { %1686 = vrot.lane.b32.xlu1 %v8492_v38, %s9637_s16 }
 0x305   :  { %1853 = vrot.lane.b32.xlu1 %v8492_v38, %s9639_s23 }
 0x35e   :  { %v838_v43 = vpop.permute.xlu1 %837  ;;  %v1006_v44 = vpop.permute.xlu0 %1005 }
 0x35f   :  { %8526 = vmatpush3.xpose.msk.msra.mxu1 %vm671_vm7, %v838_v43 }
 0x360   :  { %8535 = vmatprep.subr.mxu1 %v9635_v19 }
 0x362   :  { %v1173_v46 = vpop.permute.xlu0 %1172 }
 0x363   :  { %v836_v45 = vpop.permute.xlu1 %835 }
 0x364   :  { %8528 = vmatmul.mubr.msk.f32.vlgmr.msra.gmra.mxu1 %vm671_vm7, %v836_v45 }
 0x365   :  { %8536 = vmatpush3.xpose.msk.msra.mxu1 %vm671_vm7, %v1006_v44  ;;  %8537 = vmatprep.mubr.msk.f32.mxu1 %vm9636_vm6, %v9635_v19 }
 0x366   :  { %8545 = vmatprep.subr.mxu1 %v9635_v19  ;;  %v1521_v49 = vpop.permute.xlu0 %1520 }
 0x367   :  { %v1004_v47 = vpop.permute.xlu1 %1003 }
 0x368   :  { %8538 = vmatmul.mubr.msk.f32.vlgmr.msra.gmra.mxu1 %vm671_vm7, %v1004_v47 }
 0x369   :  { %8546 = vmatpush3.xpose.msk.msra.mxu1 %vm671_vm7, %v1173_v46  ;;  %8547 = vmatprep.mubr.msk.f32.mxu1 %vm9636_vm6, %v9635_v19 }
 0x36a   :  { %8555 = vmatprep.subr.mxu1 %v9635_v19  ;;  %v1689_v51 = vpop.permute.xlu0 %1688 }
 0x36b   :  { %v1171_v48 = vpop.permute.xlu1 %1170 }
 0x36c   :  { %8548 = vmatmul.mubr.msk.f32.vlgmr.msra.gmra.mxu1 %vm671_vm7, %v1171_v48 }
 0x36d   :  { %8556 = vmatpush3.xpose.msk.msra.mxu1 %vm671_vm7, %v8503_v37  ;;  %8557 = vmatprep.mubr.msk.f32.mxu1 %vm9636_vm6, %v9635_v19 }
 0x36e   :  { %8565 = vmatprep.subr.mxu1 %v9635_v19  ;;  %v1856_v53 = vpop.permute.xlu0 %1855 }
 0x36f   :  { %v1519_v50 = vpop.permute.xlu1 %1518 }
 0x370   :  { %8558 = vmatmul.mubr.msk.f32.vlgmr.msra.gmra.mxu1 %vm671_vm7, %v8492_v38 }
 0x371   :  { %8566 = vmatpush3.xpose.msk.msra.mxu1 %vm671_vm7, %v1521_v49  ;;  %8567 = vmatprep.mubr.msk.f32.mxu1 %vm9636_vm6, %v9635_v19 }
 0x372   :  { %8575 = vmatprep.subr.mxu1 %v9635_v19 }
 0x373   :  { %v1687_v52 = vpop.permute.xlu1 %1686 }
 0x374   :  { %8568 = vmatmul.mubr.msk.f32.vlgmr.msra.gmra.mxu1 %vm671_vm7, %v1519_v50 }
 0x375   :  { %8576 = vmatpush3.xpose.msk.msra.mxu1 %vm671_vm7, %v1689_v51  ;;  %8577 = vmatprep.mubr.msk.f32.mxu1 %vm9636_vm6, %v9635_v19 }
 0x376   :  { %8585 = vmatprep.subr.mxu1 %v9635_v19 }
 0x377   :  { %v1854_v54 = vpop.permute.xlu1 %1853 }
 0x378   :  { %8578 = vmatmul.mubr.msk.f32.vlgmr.msra.gmra.mxu1 %vm671_vm7, %v1687_v52 }
 0x379   :  { %8586 = vmatpush3.xpose.msk.msra.mxu1 %vm671_vm7, %v1856_v53  ;;  %8587 = vmatprep.mubr.msk.f32.mxu1 %vm9636_vm6, %v9635_v19 }
 0x37c   :  { %8588 = vmatmul.mubr.msk.f32.vlgmr.msra.gmra.mxu1 %vm671_vm7, %v1854_v54 }
 0x3b0   :  { %v744_v56 = vpop.f32.mrf.mxu0 }
 0x3b1   :  { %v749_v57 = vsel %vm748_vm8, -1e+20, %v744_v56 }
 0x3b2   :  { %v750_v58 = vmul.f32 0.17677669, %v749_v57  ;;  %v8519_v59 = vpop.f32.mrf.mxu0 }
 0x3b4   :  { %v751_v60 = vsel %vm671_vm7, %v750_v58, -inf }
 0x3b5   :  { %752 = vmax.xlane.f32.xlu0 %v751_v60 }
 0x424   :  { %v909_v61 = vpop.f32.mrf.mxu1 }
 0x425   :  { %v913_v62 = vsel %vm748_vm8, -1e+20, %v909_v61 }
 0x426   :  { %v914_v63 = vmul.f32 0.17677669, %v913_v62  ;;  %v8529_v0 = vpop.f32.mrf.mxu1 }
 0x428   :  { %v1077_v1 = vpop.f32.mrf.mxu1  ;;  %v915_v2 = vsel %vm671_vm7, %v914_v63, -inf }
 0x429   :  { %v1081_v3 = vsel %vm748_vm8, -1e+20, %v1077_v1  ;;  %916 = vmax.xlane.f32.xlu1 %v915_v2 }
 0x42a   :  { %v1082_v4 = vmul.f32 0.17677669, %v1081_v3  ;;  %v8539_v5 = vpop.f32.mrf.mxu1 }
 0x42c   :  { %v1244_v7 = vpop.f32.mrf.mxu1  ;;  %v1083_v8 = vsel %vm671_vm7, %v1082_v4, -inf }
 0x42d   :  { %v1248_v9 = vsel %vm748_vm8, -1e+20, %v1244_v7  ;;  %1084 = vmax.xlane.f32.xlu0 %v1083_v8 }
 0x42e   :  { %v1249_v10 = vmul.f32 0.17677669, %v1248_v9  ;;  %v8549_v11 = vpop.f32.mrf.mxu1 }
 0x430   :  { %v1427_v14 = vpop.f32.mrf.mxu1  ;;  %v1250_v15 = vsel %vm671_vm7, %v1249_v10, -inf }
 0x431   :  { %v1432_v16 = vsel %vm1431_vm9, -1e+20, %v1427_v14  ;;  %1251 = vmax.xlane.f32.xlu0 %v1250_v15 }
 0x432   :  { %v1433_v17 = vmul.f32 0.17677669, %v1432_v16  ;;  %v8559_v18 = vpop.f32.mrf.mxu1 }
 0x434   :  { %v1592_v20 = vpop.f32.mrf.mxu1  ;;  %v1434_v21 = vsel %vm671_vm7, %v1433_v17, -inf }
 0x435   :  { %v1596_v22 = vsel %vm1431_vm9, -1e+20, %v1592_v20  ;;  %1435 = vmax.xlane.f32.xlu1 %v1434_v21 }
 0x436   :  { %v1597_v23 = vmul.f32 0.17677669, %v1596_v22  ;;  %v8569_v24 = vpop.f32.mrf.mxu1 }
 0x438   :  { %v1760_v25 = vpop.f32.mrf.mxu1  ;;  %v1598_v26 = vsel %vm671_vm7, %v1597_v23, -inf }
 0x439   :  { %v1764_v27 = vsel %vm1431_vm9, -1e+20, %v1760_v25  ;;  %1599 = vmax.xlane.f32.xlu0 %v1598_v26 }
 0x43a   :  { %v1765_v28 = vmul.f32 0.17677669, %v1764_v27  ;;  %v8579_v29 = vpop.f32.mrf.mxu1 }
 0x43c   :  { %v1927_v30 = vpop.f32.mrf.mxu1  ;;  %v1766_v31 = vsel %vm671_vm7, %v1765_v28, -inf }
 0x43d   :  { %v1931_v34 = vsel %vm1431_vm9, -1e+20, %v1927_v30  ;;  %1767 = vmax.xlane.f32.xlu1 %v1766_v31 }
 0x43e   :  { %v1932_v35 = vmul.f32 0.17677669, %v1931_v34  ;;  %v8589_v36 = vpop.f32.mrf.mxu1  ;;  %v753_v38 = vpop.xlane.xlu0 %752 }
 0x43f   :  { %v754_v39 = vsub.f32 %v750_v58, %v753_v38 }
 0x440   :  { %v1933_v37 = vsel %vm671_vm7, %v1932_v35, -inf }
 0x441   :  { %1934 = vmax.xlane.f32.xlu0 %v1933_v37  ;;  %v755_v40 = vmul.f32 1.442695, %v754_v39 }
 0x443   :  { %9079 = vpow2.f32 %v755_v40 }
 0x44e   :  { %927 = vrot.lane.b32.xlu1 %v9978_v42, %s9638_s3 }
 0x450   :  { %v9080_v43 = vpop.eup %9079 }
 0x451   :  { %v757_v44 = vsel %vm671_vm7, %v9080_v43, 0.0 }
 0x472   :  { %758 = vadd.xlane.f32.xlu1 %v757_v44 }
 0x483   :  { %1261 = vrot.lane.b32.xlu1 %v9978_v42, %s9639_s23 }
 0x4b2   :  { %v917_v45 = vpop.xlane.xlu1 %916 }
 0x4b3   :  { %v918_v46 = vsub.f32 %v914_v63, %v917_v45 }
 0x4b5   :  { %v919_v47 = vmul.f32 1.442695, %v918_v46 }
 0x4b6   :  { %v1085_v48 = vpop.xlane.xlu0 %1084 }
 0x4b7   :  { %9081 = vpow2.f32 %v919_v47  ;;  %v1086_v49 = vsub.f32 %v1082_v4, %v1085_v48 }
 0x4b9   :  { %v1087_v50 = vmul.f32 1.442695, %v1086_v49 }
 0x4ba   :  { %v1252_v56 = vpop.xlane.xlu0 %1251 }
 0x4bb   :  { %9083 = vpow2.f32 %v1087_v50  ;;  %v1253_v57 = vsub.f32 %v1249_v10, %v1252_v56 }
 0x4bd   :  { %v1254_v61 = vmul.f32 1.442695, %v1253_v57 }
 0x4be   :  { %v1436_v58 = vpop.xlane.xlu1 %1435 }
 0x4bf   :  { %v1437_v60 = vsub.f32 %v1433_v17, %v1436_v58  ;;  %9085 = vpow2.f32 %v1254_v61  ;;  %v435_v61 = vld [vmem:[%s10926_s10 + $0x10] sm:$0xff] }
 0x4c1   :  { %v1438_v1 = vmul.f32 1.442695, %v1437_v60  ;;  %v436_v60 = vld [vmem:[%s10926_s10 + $0x18] sm:$0xff] }
 0x4c2   :  { %v1600_v59 = vpop.xlane.xlu0 %1599  ;;  %8595 = vmatprep.subr.mxu1 %v436_v60 }
 0x4c3   :  { %v1601_v62 = vsub.f32 %v1597_v23, %v1600_v59  ;;  %9087 = vpow2.f32 %v1438_v1  ;;  %8596 = vmatpush3.msra.mxu1 %v436_v60 }
 0x4c4   :  { %v9082_v51 = vpop.eup %9081  ;;  %8597 = vmatprep.subr.mxu1 %v435_v61 }
 0x4c5   :  { %v921_v52 = vsel %vm671_vm7, %v9082_v51, 0.0  ;;  %v1602_v3 = vmul.f32 1.442695, %v1601_v62  ;;  %8598 = vmatpush3.msra.mxu1 %v435_v61 }
 0x4c6   :  { %922 = vadd.xlane.f32.xlu0 %v921_v52  ;;  %v1768_v63 = vpop.xlane.xlu1 %1767 }
 0x4c7   :  { %v1769_v2 = vsub.f32 %v1765_v28, %v1768_v63  ;;  %9089 = vpow2.f32 %v1602_v3  ;;  %v434_v63 = vld [vmem:[%s10926_s10 + $0x8] sm:$0xff] }
 0x4c8   :  { %v10064_v53 = vpop.eup %9083  ;;  %8599 = vmatprep.subr.mxu1 %v434_v63 }
 0x4c9   :  { %v1089_v54 = vsel %vm671_vm7, %v10064_v53, 0.0  ;;  %v1770_v5 = vmul.f32 1.442695, %v1769_v2  ;;  %8600 = vmatpush3.msra.mxu1 %v434_v63  ;;  %v8059_v63 = vld [vmem:[#allocation7] ss:$0 sm:$0xff] }
 0x4ca   :  { %1090 = vadd.xlane.f32.xlu1 %v1089_v54  ;;  %v1935_v0 = vpop.xlane.xlu0 %1934  ;;  %v928_v8 = vpop.permute.xlu1 %927 }
 0x4cb   :  { %v1936_v4 = vsub.f32 %v1932_v35, %v1935_v0  ;;  %9091 = vpow2.f32 %v1770_v5  ;;  %v433_v0 = vld [vmem:[%s10926_s10] sm:$0xff] }
 0x4cc   :  { %8601 = vmatprep.subr.mxu1 %v433_v0 }
 0x4cd   :  { %v1937_v7 = vmul.f32 1.442695, %v1936_v4  ;;  %8602 = vmatpush3.msra.mxu1 %v433_v0 }
 0x4cf   :  { %9093 = vpow2.f32 %v1937_v7 }
 0x4db   :  { %1610 = vrot.lane.b32.xlu1 %v9974_v41, %s9638_s3 }
 0x4dc   :  { %1094 = vrot.lane.b32.xlu0 %v9978_v42, %s9637_s16  ;;  %v9086_v42 = vpop.eup %9085 }
 0x4dd   :  { %v9088_v9 = vpop.eup %9087  ;;  %v1256_v10 = vsel %vm671_vm7, %v9086_v42, 0.0 }
 0x4de   :  { %v10073_v11 = vpop.eup %9089  ;;  %v1440_v16 = vsel %vm671_vm7, %v9088_v9, 0.0 }
 0x4df   :  { %v10075_v15 = vpop.eup %9091  ;;  %v1604_v17 = vsel %vm671_vm7, %v10073_v11, 0.0 }
 0x4e0   :  { %v10080_v18 = vpop.eup %9093  ;;  %v1772_v20 = vsel %vm671_vm7, %v10075_v15, 0.0 }
 0x4e1   :  { %v1939_v21 = vsel %vm671_vm7, %v10080_v18, 0.0 }
 0x4fb   :  { %v759_v14 = vpop.xlane.xlu1 %758  ;;  %1257 = vadd.xlane.f32.xlu0 %v1256_v10 }
 0x4fc   :  { %9095 = vrcp.f32 %v759_v14 }
 0x4ff   :  { %1441 = vadd.xlane.f32.xlu1 %v1440_v16  ;;  %1605 = vadd.xlane.f32.xlu0 %v1604_v17  ;;  %v1262_v24 = vpop.permute.xlu1 %1261 }
 0x503   :  { %1773 = vadd.xlane.f32.xlu1 %v1772_v20  ;;  %1940 = vadd.xlane.f32.xlu0 %v1939_v21 }
 0x509   :  { %v9096_v22 = vpop.eup %9095 }
 0x50a   :  { %v761_v23 = vmul.f32 %v9096_v22, %v9080_v43 }
 0x50c   :  { %8523 = vmatmul.mubr.msk.f32.vlgmr.msra.gmra.mxu0 %vm671_vm7, %v761_v23 }
 0x50d   :  { %8531 = vmatpush3.msra.mxu0 %v928_v8  ;;  %8532 = vmatprep.mubr.msk.f32.mxu0 %vm9636_vm6, %v9635_v19 }
 0x50e   :  { %8540 = vmatprep.subr.mxu0 %v9635_v19 }
 0x514   :  { %1944 = vrot.lane.b32.xlu1 %v9974_v41, %s9639_s23 }
 0x519   :  { %1777 = vrot.lane.b32.xlu0 %v9974_v41, %s9637_s16 }
 0x54f   :  { %v923_v25 = vpop.xlane.xlu0 %922 }
 0x550   :  { %9097 = vrcp.f32 %v923_v25  ;;  %v8056_v25 = vld [vmem:[#allocation5] ss:$0 sm:$0xff] }
 0x553   :  { %v1091_v26 = vpop.xlane.xlu1 %1090  ;;  %v1095_v29 = vpop.permute.xlu0 %1094 }
 0x554   :  { %9099 = vrcp.f32 %v1091_v26 }
 0x557   :  { %v1611_v34 = vpop.permute.xlu1 %1610 }
 0x55d   :  { %v9098_v27 = vpop.eup %9097 }
 0x55e   :  { %v925_v28 = vmul.f32 %v9098_v27, %v9082_v51 }
 0x560   :  { %8533 = vmatmul.mubr.msk.f32.vlgmr.msra.gmra.mxu0 %vm671_vm7, %v925_v28 }
 0x561   :  { %v9100_v30 = vpop.eup %9099  ;;  %8541 = vmatpush3.msra.mxu0 %v1095_v29  ;;  %8542 = vmatprep.mubr.msk.f32.mxu0 %vm9636_vm6, %v9635_v19 }
 0x562   :  { %8550 = vmatprep.subr.mxu0 %v9635_v19  ;;  %v1093_v31 = vmul.f32 %v9100_v30, %v10064_v53 }
 0x564   :  { %8543 = vmatmul.mubr.msk.f32.vlgmr.msra.gmra.mxu0 %vm671_vm7, %v1093_v31 }
 0x565   :  { %8551 = vmatpush3.msra.mxu0 %v1262_v24  ;;  %8552 = vmatprep.mubr.msk.f32.mxu0 %vm9636_vm6, %v9635_v19 }
 0x566   :  { %8560 = vmatprep.subr.mxu0 %v9635_v19 }
 0x584   :  { %v1258_v35 = vpop.xlane.xlu0 %1257 }
 0x585   :  { %9101 = vrcp.f32 %v1258_v35 }
 0x588   :  { %v1442_v36 = vpop.xlane.xlu1 %1441  ;;  %v1606_v37 = vpop.xlane.xlu0 %1605 }
 0x589   :  { %9103 = vrcp.f32 %v1442_v36 }
 0x58a   :  { %9105 = vrcp.f32 %v1606_v37 }
 0x58c   :  { %v1774_v38 = vpop.xlane.xlu1 %1773  ;;  %v1941_v39 = vpop.xlane.xlu0 %1940 }
 0x58d   :  { %9107 = vrcp.f32 %v1774_v38 }
 0x58e   :  { %9109 = vrcp.f32 %v1941_v39 }
 0x590   :  { %v1778_v49 = vpop.permute.xlu0 %1777  ;;  %v1945_v51 = vpop.permute.xlu1 %1944 }
 0x592   :  { %v9102_v40 = vpop.eup %9101 }
 0x593   :  { %v1260_v43 = vmul.f32 %v9102_v40, %v9086_v42 }
 0x595   :  { %8553 = vmatmul.mubr.msk.f32.vlgmr.msra.gmra.mxu0 %vm671_vm7, %v1260_v43 }
 0x596   :  { %v9104_v44 = vpop.eup %9103  ;;  %8561 = vmatpush3.msra.mxu0 %v9974_v41  ;;  %8562 = vmatprep.mubr.msk.f32.mxu0 %vm9636_vm6, %v9635_v19 }
 0x597   :  { %8570 = vmatprep.subr.mxu0 %v9635_v19  ;;  %v1444_v45 = vmul.f32 %v9104_v44, %v9088_v9  ;;  %v9106_v46 = vpop.eup %9105 }
 0x598   :  { %v1608_v47 = vmul.f32 %v9106_v46, %v10073_v11 }
 0x599   :  { %8563 = vmatmul.mubr.msk.f32.vlgmr.msra.gmra.mxu0 %vm671_vm7, %v1444_v45 }
 0x59a   :  { %8571 = vmatpush3.msra.mxu0 %v1611_v34  ;;  %8572 = vmatprep.mubr.msk.f32.mxu0 %vm9636_vm6, %v9635_v19  ;;  %v9108_v48 = vpop.eup %9107 }
 0x59b   :  { %8580 = vmatprep.subr.mxu0 %v9635_v19  ;;  %v1776_v41 = vmul.f32 %v9108_v48, %v10075_v15  ;;  %v9110_v50 = vpop.eup %9109  ;;  %v419_v48 = vld [vmem:[%s10927_s8] sm:$0xff] }
 0x59c   :  { %v1943_v52 = vmul.f32 %v9110_v50, %v10080_v18  ;;  %v2171_v50 = vld [vmem:[#allocation10 + $0x10] sm:$0xff] }
 0x59d   :  { %8573 = vmatmul.mubr.msk.f32.vlgmr.msra.gmra.mxu0 %vm671_vm7, %v1608_v47  ;;  %v2176_v47 = vld [vmem:[#allocation11 + $0x18] sm:$0xff] }
 0x59e   :  { %8581 = vmatpush3.msra.mxu0 %v1778_v49  ;;  %8582 = vmatprep.mubr.msk.f32.mxu0 %vm9636_vm6, %v9635_v19  ;;  %v2174_v49 = vld [vmem:[#allocation11 + $0x8] sm:$0xff] }
 0x59f   :  { %8590 = vmatprep.subr.mxu0 %v9635_v19  ;;  %8617 = vmatprep.subr.mxu1 %v2176_v47 }
 0x5a1   :  { %8583 = vmatmul.mubr.msk.f32.vlgmr.msra.gmra.mxu0 %vm671_vm7, %v1776_v41  ;;  %v2172_v41 = vld [vmem:[#allocation10 + $0x18] sm:$0xff] }
 0x5a2   :  { %8591 = vmatpush3.msra.mxu0 %v1945_v51  ;;  %8592 = vmatprep.mubr.msk.f32.mxu0 %vm9636_vm6, %v9635_v19  ;;  %v2173_v51 = vld [vmem:[#allocation11] sm:$0xff] }
 0x5a3   :  { %8606 = vmatprep.subr.mxu0 %v2172_v41 }
 0x5a5   :  { %8593 = vmatmul.mubr.msk.f32.vlgmr.msra.gmra.mxu0 %vm671_vm7, %v1943_v52  ;;  %v2170_v52 = vld [vmem:[#allocation10 + $0x8] sm:$0xff] }
 0x5a6   :  { %8607 = vmatpush3.msra.mxu0 %v2172_v41 }
 0x5a7   :  { %8608 = vmatprep.subr.mxu0 %v2171_v50 }
 0x5a8   :  { %8609 = vmatpush3.msra.mxu0 %v2171_v50 }
 0x5a9   :  { %8610 = vmatprep.subr.mxu0 %v2170_v52 }
 0x5aa   :  { %8611 = vmatpush3.msra.mxu0 %v2170_v52 }
 0x5cc   :  { %v831_v53 = vpop.f32.mrf.mxu0 }
 0x5ce   :  { %v8524_v54 = vpop.f32.mrf.mxu0 }
 0x5cf   :  { %v2169_v54 = vld [vmem:[#allocation10] sm:$0xff] }
 0x5d0   :  { %8612 = vmatprep.subr.mxu0 %v2169_v54 }
 0x5d1   :  { %8613 = vmatpush3.msra.mxu0 %v2169_v54 }
 0x620   :  { %v999_v56 = vpop.f32.mrf.mxu0 }
 0x621   :  { %1338 = vrot.lane.b32.xlu0 %v999_v56, %s9620_s11 }
 0x622   :  { %v8534_v57 = vpop.f32.mrf.mxu0 }
 0x624   :  { %v1166_v58 = vpop.f32.mrf.mxu0 }
 0x625   :  { %1342 = vrot.lane.b32.xlu1 %v1166_v58, %s9615_s6 }
 0x626   :  { %v8544_v59 = vpop.f32.mrf.mxu0 }
 0x655   :  { %v1333_v62 = vpop.f32.mrf.mxu0 }
 0x656   :  { %1346 = vrot.lane.b32.xlu1 %v1333_v62, %s9640_s20 }
 0x657   :  { %v8554_v1 = vpop.f32.mrf.mxu0 }
 0x658   :  { %v8060_v1 = vld [vmem:[#allocation8] ss:$0 sm:$0xff] }
 0x659   :  { %v1514_v2 = vpop.f32.mrf.mxu0 }
 0x65b   :  { %v8564_v3 = vpop.f32.mrf.mxu0 }
 0x65d   :  { %v1682_v4 = vpop.f32.mrf.mxu0 }
 0x65e   :  { %2021 = vrot.lane.b32.xlu0 %v1682_v4, %s9620_s11 }
 0x65f   :  { %v8574_v5 = vpop.f32.mrf.mxu0 }
 0x661   :  { %v1849_v7 = vpop.f32.mrf.mxu0 }
 0x662   :  { %2025 = vrot.lane.b32.xlu0 %v1849_v7, %s9615_s6 }
 0x663   :  { %v8584_v42 = vpop.f32.mrf.mxu0 }
 0x665   :  { %v2016_v8 = vpop.f32.mrf.mxu0 }
 0x666   :  { %2029 = vrot.lane.b32.xlu1 %v2016_v8, %s9640_s20 }
 0x667   :  { %v8594_v9 = vpop.f32.mrf.mxu0 }
 0x693   :  { %v1339_v10 = vpop.permute.xlu0 %1338 }
 0x694   :  { %v1349_v14 = vsel %vm671_vm7, %v831_v53, %v1339_v10  ;;  %v10162_v53 = vld [vmem:[%s10927_s8 + $0x8] sm:$0xff] }
 0x697   :  { %v1343_v11 = vpop.permute.xlu1 %1342 }
 0x698   :  { %v1350_v15 = vsel %vm337_vm2, %v1349_v14, %v1343_v11 }
 0x6c8   :  { %v1347_v16 = vpop.permute.xlu1 %1346 }
 0x6c9   :  { %v1352_v17 = vsel %vm1351_vm10, %v1350_v15, %v1347_v16  ;;  %v2180_v15 = vld [vmem:[#allocation13 + $0x18] sm:$0xff]  ;;  %v2179_v16 = vld [vmem:[#allocation13 + $0x10] sm:$0xff] }
 0x6ca   :  { %8603 = vmatprep.mubr.msk.f32.mxu1 %vm438_vm5, %v1352_v17  ;;  %8628 = vmatprep.subr.mxu0 %v2180_v15  ;;  %v2178_v17 = vld [vmem:[#allocation13 + $0x8] sm:$0xff] }
 0x6d0   :  { %v2022_v18 = vpop.permute.xlu0 %2021 }
 0x6d1   :  { %v2032_v21 = vsel %vm671_vm7, %v1514_v2, %v2022_v18  ;;  %v2177_v18 = vld [vmem:[#allocation13] sm:$0xff] }
 0x6d4   :  { %v2026_v20 = vpop.permute.xlu0 %2025 }
 0x6d5   :  { %v2033_v22 = vsel %vm337_vm2, %v2032_v21, %v2026_v20 }
 0x6d8   :  { %v2030_v23 = vpop.permute.xlu1 %2029 }
 0x6d9   :  { %v2034_v24 = vsel %vm1351_vm10, %v2033_v22, %v2030_v23 }
 0x6da   :  { %8604 = vmatmul.mubr.msk.f32.vlgmr.msra.gmra.mxu1 %vm438_vm5, %v2034_v24 }
 0x6db   :  { %8618 = vmatpush3.msra.mxu1 %v2176_v47  ;;  %8625 = vmatprep.mubr.msk.f32.mxu1 %vm438_vm5, %v419_v48 }
 0x79a   :  { %v8605_v26 = vpop.f32.mrf.mxu1 }
 0x79b   :  { %v2119_v27 = vadd.f32 %v8605_v26, %v8056_v25 }
 0x79c   :  { %v2113_v28 = vpop.f32.mrf.mxu1 }
 0x79d   :  { %v2114_v29 = vadd.f32 %v8056_v25, %v2113_v28  ;;  %v2123_v30 = vadd.f32 %v2119_v27, %v9939_v33 }
 0x79f   :  { %v2129_v31 = vsel %vm438_vm5, %v2123_v30, 0.0  ;;  %v2122_v34 = vadd.f32 %v2114_v29, %v9937_v32  ;;  %v2175_v32 = vld [vmem:[#allocation11 + $0x10] sm:$0xff] }
 0x7a0   :  { %2130 = vadd.xlane.f32.xlu1 %v2129_v31  ;;  %8619 = vmatprep.subr.mxu1 %v2175_v32 }
 0x7a1   :  { %v2126_v35 = vsel %vm438_vm5, %v2122_v34, 0.0  ;;  %8620 = vmatpush3.msra.mxu1 %v2175_v32 }
 0x7a2   :  { %2127 = vadd.xlane.f32.xlu0 %v2126_v35  ;;  %8621 = vmatprep.subr.mxu1 %v2174_v49 }
 0x7a3   :  { %8622 = vmatpush3.msra.mxu1 %v2174_v49 }
 0x7a4   :  { %8623 = vmatprep.subr.mxu1 %v2173_v51 }
 0x7a5   :  { %8624 = vmatpush3.msra.mxu1 %v2173_v51 }
 0x7a6   :  { %8626 = vmatmul.mubr.msk.f32.vlgmr.msra.gmra.mxu1 %vm438_vm5, %v10162_v53  ;;  %8639 = vmatprep.subr.mxu1 %v9635_v19 }
 0x7a7   :  { %8641 = vmatprep.mubr.msk.f32.mxu1 %vm9636_vm6, %v9635_v19 }
 0x829   :  { %v2131_v36 = vpop.xlane.xlu1 %2130 }
 0x82a   :  { %v2134_v37 = vmul.f32 0.03125, %v2131_v36 }
 0x82b   :  { %v2128_v38 = vpop.xlane.xlu0 %2127 }
 0x82c   :  { %v2133_v39 = vmul.f32 0.03125, %v2128_v38  ;;  %v2136_v40 = vsub.f32 %v2123_v30, %v2134_v37 }
 0x82e   :  { %v2135_v43 = vsub.f32 %v2122_v34, %v2133_v39  ;;  %v2138_v46 = vmul.f32 %v2136_v40, %v2136_v40 }
 0x830   :  { %v2137_v44 = vmul.f32 %v2135_v43, %v2135_v43  ;;  %v2142_v33 = vsel %vm438_vm5, %v2138_v46, 0.0 }
 0x832   :  { %v2139_v45 = vsel %vm438_vm5, %v2137_v44, 0.0 }
 0x833   :  { %2140 = vadd.xlane.f32.xlu0 %v2139_v45 }
 0x837   :  { %2143 = vadd.xlane.f32.xlu0 %v2142_v33 }
 0x866   :  { %v8627_v8 = vpop.f32.mrf.mxu1 }
 0x868   :  { %v2339_v9 = vpop.f32.mrf.mxu1 }
 0x869   :  { %2595 = vrot.lane.b32.xlu1 %v2339_v9, %s9638_s3  ;;  %8640 = vmatpush3.xpose.msk.msra.mxu1 %vm671_vm7, %v2339_v9 }
 0x86a   :  { %8649 = vmatprep.subr.mxu1 %v9635_v19 }
 0x86d   :  { %2763 = vrot.lane.b32.xlu1 %v2339_v9, %s9637_s16 }
 0x8bc   :  { %v2141_v56 = vpop.xlane.xlu0 %2140 }
 0x8bd   :  { %v2145_v57 = vmul.f32 0.03125, %v2141_v56 }
 0x8bf   :  { %v2147_v58 = vadd.f32 1e-05, %v2145_v57 }
 0x8c0   :  { %v2144_v59 = vpop.xlane.xlu0 %2143 }
 0x8c1   :  { %9111 = vrsqrt.f32 %v2147_v58  ;;  %v2146_v60 = vmul.f32 0.03125, %v2144_v59 }
 0x8c3   :  { %v2148_v61 = vadd.f32 1e-05, %v2146_v60 }
 0x8c5   :  { %9113 = vrsqrt.f32 %v2148_v61 }
 0x8ce   :  { %v9112_v62 = vpop.eup %9111 }
 0x8cf   :  { %v2151_v0 = vmul.f32 %v9112_v62, %v2135_v43 }
 0x8d1   :  { %v2159_v2 = vmul.f32 %v8059_v63, %v2151_v0 }
 0x8d2   :  { %v9114_v3 = vpop.eup %9113 }
 0x8d3   :  { %v2152_v4 = vmul.f32 %v9114_v3, %v2136_v40  ;;  %v10169_v5 = vadd.f32 %v8060_v1, %v2159_v2 }
 0x8d5   :  { %v2160_v7 = vmul.f32 %v8059_v63, %v2152_v4  ;;  %8614 = vmatprep.mubr.msk.f32.mxu0 %vm438_vm5, %v10169_v5 }
 0x8d7   :  { %v10173_v42 = vadd.f32 %v8060_v1, %v2160_v7 }
 0x8d9   :  { %8615 = vmatmul.mubr.msk.f32.vlgmr.msra.gmra.mxu0 %vm438_vm5, %v10173_v42 }
 0x8da   :  { %8636 = vmatprep.mubr.msk.f32.mxu0 %vm438_vm5, %v419_v48  ;;  %8629 = vmatpush3.msra.mxu0 %v2180_v15 }
 0x8db   :  { %v2596_v14 = vpop.permute.xlu1 %2595  ;;  %8630 = vmatprep.subr.mxu0 %v2179_v16 }
 0x8dc   :  { %8631 = vmatpush3.msra.mxu0 %v2179_v16 }
 0x8dd   :  { %8632 = vmatprep.subr.mxu0 %v2178_v17 }
 0x8de   :  { %8633 = vmatpush3.msra.mxu0 %v2178_v17 }
 0x8df   :  { %8634 = vmatprep.subr.mxu0 %v2177_v18  ;;  %v2764_v20 = vpop.permute.xlu1 %2763 }
 0x8e0   :  { %8635 = vmatpush3.msra.mxu0 %v2177_v18 }
 0x8e1   :  { %8637 = vmatmul.mubr.msk.f32.vlgmr.msra.gmra.mxu0 %vm438_vm5, %v10162_v53  ;;  %8644 = vmatprep.subr.mxu0 %v9635_v19 }
 0x8e2   :  { %8646 = vmatprep.mubr.msk.f32.mxu0 %vm9636_vm6, %v9635_v19 }
 0x999   :  { %v8616_v10 = vpop.f32.mrf.mxu0 }
 0x99b   :  { %v2258_v11 = vpop.f32.mrf.mxu0 }
 0x99c   :  { %2761 = vrot.lane.b32.xlu1 %v2258_v11, %s9637_s16  ;;  %2593 = vrot.lane.b32.xlu0 %v2258_v11, %s9638_s3 }
 0x99d   :  { %8642 = vmatmul.mubr.msk.f32.vlgmr.msra.gmra.mxu1 %vm671_vm7, %v2258_v11 }
 0x99e   :  { %8650 = vmatpush3.xpose.msk.msra.mxu1 %vm671_vm7, %v2596_v14  ;;  %8651 = vmatprep.mubr.msk.f32.mxu1 %vm9636_vm6, %v9635_v19 }
 0x99f   :  { %8659 = vmatprep.subr.mxu1 %v9635_v19 }
 0x9a0   :  { %2928 = vrot.lane.b32.xlu1 %v2258_v11, %s9639_s23  ;;  %2930 = vrot.lane.b32.xlu0 %v2339_v9, %s9639_s23 }
 0x9a1   :  { %v10236_v38 = vpop.f32.mrf.mxu0 }
 0x9a3   :  { %v10238_v39 = vpop.f32.mrf.mxu0 }
 0x9a4   :  { %3281 = vrot.lane.b32.xlu1 %v8616_v10, %s9638_s3  ;;  %3283 = vrot.lane.b32.xlu0 %v8627_v8, %s9638_s3 }
 0x9a5   :  { %8645 = vmatpush3.msra.mxu0 %v10238_v39 }
 0x9a6   :  { %8654 = vmatprep.subr.mxu0 %v9635_v19 }
 0x9a8   :  { %3449 = vrot.lane.b32.xlu1 %v8616_v10, %s9637_s16  ;;  %3451 = vrot.lane.b32.xlu0 %v8627_v8, %s9637_s16 }
 0x9ac   :  { %3616 = vrot.lane.b32.xlu1 %v8616_v10, %s9639_s23  ;;  %3618 = vrot.lane.b32.xlu0 %v8627_v8, %s9639_s23 }
 0xa0e   :  { %v2762_v21 = vpop.permute.xlu1 %2761  ;;  %v2594_v22 = vpop.permute.xlu0 %2593 }
 0xa0f   :  { %8652 = vmatmul.mubr.msk.f32.vlgmr.msra.gmra.mxu1 %vm671_vm7, %v2594_v22 }
 0xa10   :  { %8660 = vmatpush3.xpose.msk.msra.mxu1 %vm671_vm7, %v2764_v20  ;;  %8661 = vmatprep.mubr.msk.f32.mxu1 %vm9636_vm6, %v9635_v19 }
 0xa11   :  { %8669 = vmatprep.subr.mxu1 %v9635_v19 }
 0xa12   :  { %v2931_v23 = vpop.permute.xlu0 %2930  ;;  %v2929_v24 = vpop.permute.xlu1 %2928 }
 0xa13   :  { %8662 = vmatmul.mubr.msk.f32.vlgmr.msra.gmra.mxu1 %vm671_vm7, %v2762_v21 }
 0xa14   :  { %8670 = vmatpush3.xpose.msk.msra.mxu1 %vm671_vm7, %v2931_v23  ;;  %8671 = vmatprep.mubr.msk.f32.mxu1 %vm9636_vm6, %v9635_v19 }
 0xa15   :  { %8679 = vmatprep.subr.mxu1 %v9635_v19 }
 0xa16   :  { %v3284_v25 = vpop.permute.xlu0 %3283  ;;  %v3282_v26 = vpop.permute.xlu1 %3281 }
 0xa17   :  { %8672 = vmatmul.mubr.msk.f32.vlgmr.msra.gmra.mxu1 %vm671_vm7, %v2929_v24 }
 0xa18   :  { %8680 = vmatpush3.xpose.msk.msra.mxu1 %vm671_vm7, %v8627_v8  ;;  %8681 = vmatprep.mubr.msk.f32.mxu1 %vm9636_vm6, %v9635_v19 }
 0xa19   :  { %8689 = vmatprep.subr.mxu1 %v9635_v19 }
 0xa1a   :  { %v3452_v27 = vpop.permute.xlu0 %3451  ;;  %v3450_v28 = vpop.permute.xlu1 %3449 }
 0xa1b   :  { %8682 = vmatmul.mubr.msk.f32.vlgmr.msra.gmra.mxu1 %vm671_vm7, %v8616_v10 }
 0xa1c   :  { %8690 = vmatpush3.xpose.msk.msra.mxu1 %vm671_vm7, %v3284_v25  ;;  %8691 = vmatprep.mubr.msk.f32.mxu1 %vm9636_vm6, %v9635_v19 }
 0xa1d   :  { %8699 = vmatprep.subr.mxu1 %v9635_v19 }
 0xa1e   :  { %v3619_v29 = vpop.permute.xlu0 %3618  ;;  %v3617_v30 = vpop.permute.xlu1 %3616 }
 0xa1f   :  { %8692 = vmatmul.mubr.msk.f32.vlgmr.msra.gmra.mxu1 %vm671_vm7, %v3282_v26 }
 0xa20   :  { %8700 = vmatpush3.xpose.msk.msra.mxu1 %vm671_vm7, %v3452_v27  ;;  %8701 = vmatprep.mubr.msk.f32.mxu1 %vm9636_vm6, %v9635_v19 }
 0xa21   :  { %8709 = vmatprep.subr.mxu1 %v9635_v19 }
 0xa23   :  { %8702 = vmatmul.mubr.msk.f32.vlgmr.msra.gmra.mxu1 %vm671_vm7, %v3450_v28 }
 0xa24   :  { %8710 = vmatpush3.xpose.msk.msra.mxu1 %vm671_vm7, %v3619_v29  ;;  %8711 = vmatprep.mubr.msk.f32.mxu1 %vm9636_vm6, %v9635_v19 }
 0xa27   :  { %8712 = vmatmul.mubr.msk.f32.vlgmr.msra.gmra.mxu1 %vm671_vm7, %v3617_v30 }
 0xa5d   :  { %v2496_v31 = vpop.f32.mrf.mxu1 }
 0xa5e   :  { %v2507_v34 = vsel %vm2506_vm11, -1e+20, %v2496_v31 }
 0xa5f   :  { %v2508_v35 = vmul.f32 0.17677669, %v2507_v34  ;;  %v8643_v36 = vpop.f32.mrf.mxu1 }
 0xa61   :  { %v2509_v37 = vsel %vm671_vm7, %v2508_v35, -inf }
 0xa62   :  { %2510 = vmax.xlane.f32.xlu0 %v2509_v37 }
 0xacf   :  { %v2667_v40 = vpop.f32.mrf.mxu1 }
 0xad0   :  { %v2671_v43 = vsel %vm2506_vm11, -1e+20, %v2667_v40 }
 0xad1   :  { %v2672_v44 = vmul.f32 0.17677669, %v2671_v43  ;;  %v8653_v45 = vpop.f32.mrf.mxu1 }
 0xad3   :  { %v2835_v46 = vpop.f32.mrf.mxu1  ;;  %v2673_v33 = vsel %vm671_vm7, %v2672_v44, -inf }
 0xad4   :  { %v2839_v47 = vsel %vm2506_vm11, -1e+20, %v2835_v46  ;;  %2674 = vmax.xlane.f32.xlu1 %v2673_v33 }
 0xad5   :  { %v2840_v32 = vmul.f32 0.17677669, %v2839_v47  ;;  %v8663_v48 = vpop.f32.mrf.mxu1 }
 0xad7   :  { %v3002_v49 = vpop.f32.mrf.mxu1  ;;  %v2841_v41 = vsel %vm671_vm7, %v2840_v32, -inf }
 0xad8   :  { %v3006_v50 = vsel %vm2506_vm11, -1e+20, %v3002_v49  ;;  %2842 = vmax.xlane.f32.xlu0 %v2841_v41 }
 0xad9   :  { %v3007_v51 = vmul.f32 0.17677669, %v3006_v50  ;;  %v8673_v52 = vpop.f32.mrf.mxu1 }
 0xadb   :  { %v3184_v53 = vpop.f32.mrf.mxu1  ;;  %v3008_v54 = vsel %vm671_vm7, %v3007_v51, -inf }
 0xadc   :  { %v3195_v56 = vsel %vm3194_vm12, -1e+20, %v3184_v53  ;;  %3009 = vmax.xlane.f32.xlu0 %v3008_v54 }
 0xadd   :  { %v3196_v57 = vmul.f32 0.17677669, %v3195_v56  ;;  %v8683_v58 = vpop.f32.mrf.mxu1 }
 0xadf   :  { %v3355_v59 = vpop.f32.mrf.mxu1  ;;  %v3197_v60 = vsel %vm671_vm7, %v3196_v57, -inf }
 0xae0   :  { %v3359_v61 = vsel %vm3194_vm12, -1e+20, %v3355_v59  ;;  %3198 = vmax.xlane.f32.xlu1 %v3197_v60 }
 0xae1   :  { %v3360_v62 = vmul.f32 0.17677669, %v3359_v61  ;;  %v8693_v63 = vpop.f32.mrf.mxu1 }
 0xae3   :  { %v3523_v0 = vpop.f32.mrf.mxu1  ;;  %v3361_v1 = vsel %vm671_vm7, %v3360_v62, -inf }
 0xae4   :  { %v3527_v2 = vsel %vm3194_vm12, -1e+20, %v3523_v0  ;;  %3362 = vmax.xlane.f32.xlu0 %v3361_v1 }
 0xae5   :  { %v3528_v3 = vmul.f32 0.17677669, %v3527_v2  ;;  %v8703_v4 = vpop.f32.mrf.mxu1 }
 0xae7   :  { %v3690_v7 = vpop.f32.mrf.mxu1  ;;  %v3529_v8 = vsel %vm671_vm7, %v3528_v3, -inf }
 0xae8   :  { %v3694_v9 = vsel %vm3194_vm12, -1e+20, %v3690_v7  ;;  %3530 = vmax.xlane.f32.xlu1 %v3529_v8 }
 0xae9   :  { %v3695_v10 = vmul.f32 0.17677669, %v3694_v9  ;;  %v8713_v11 = vpop.f32.mrf.mxu1 }
 0xaeb   :  { %v3696_v14 = vsel %vm671_vm7, %v3695_v10, -inf  ;;  %v2511_v15 = vpop.xlane.xlu0 %2510 }
 0xaec   :  { %3697 = vmax.xlane.f32.xlu0 %v3696_v14  ;;  %v2512_v16 = vsub.f32 %v2508_v35, %v2511_v15 }
 0xaee   :  { %v2513_v17 = vmul.f32 1.442695, %v2512_v16 }
 0xaf0   :  { %9115 = vpow2.f32 %v2513_v17 }
 0xaf9   :  { %2685 = vrot.lane.b32.xlu1 %v10238_v39, %s9638_s3 }
 0xafd   :  { %v9116_v18 = vpop.eup %9115 }
 0xafe   :  { %v2515_v20 = vsel %vm671_vm7, %v9116_v18, 0.0 }
 0xb1d   :  { %2516 = vadd.xlane.f32.xlu1 %v2515_v20 }
 0xb2e   :  { %3019 = vrot.lane.b32.xlu1 %v10238_v39, %s9639_s23 }
 0xb5d   :  { %v2675_v21 = vpop.xlane.xlu1 %2674 }
 0xb5e   :  { %v2676_v22 = vsub.f32 %v2672_v44, %v2675_v21 }
 0xb60   :  { %v2677_v23 = vmul.f32 1.442695, %v2676_v22 }
 0xb61   :  { %v2843_v24 = vpop.xlane.xlu0 %2842 }
 0xb62   :  { %9117 = vpow2.f32 %v2677_v23  ;;  %v2844_v25 = vsub.f32 %v2840_v32, %v2843_v24 }
 0xb64   :  { %v2845_v26 = vmul.f32 1.442695, %v2844_v25 }
 0xb65   :  { %v3010_v31 = vpop.xlane.xlu0 %3009 }
 0xb66   :  { %9119 = vpow2.f32 %v2845_v26  ;;  %v3011_v34 = vsub.f32 %v3007_v51, %v3010_v31 }
 0xb68   :  { %v3012_v40 = vmul.f32 1.442695, %v3011_v34 }
 0xb69   :  { %v3199_v35 = vpop.xlane.xlu1 %3198 }
 0xb6a   :  { %v3200_v37 = vsub.f32 %v3196_v57, %v3199_v35  ;;  %9121 = vpow2.f32 %v3012_v40  ;;  %v2183_v40 = vld [vmem:[#allocation14 + $0x10] sm:$0xff] }
 0xb6c   :  { %v3201_v46 = vmul.f32 1.442695, %v3200_v37  ;;  %v2184_v37 = vld [vmem:[#allocation14 + $0x18] sm:$0xff] }
 0xb6d   :  { %v3363_v36 = vpop.xlane.xlu0 %3362  ;;  %8719 = vmatprep.subr.mxu1 %v2184_v37 }
 0xb6e   :  { %v3364_v43 = vsub.f32 %v3360_v62, %v3363_v36  ;;  %9123 = vpow2.f32 %v3201_v46  ;;  %8720 = vmatpush3.msra.mxu1 %v2184_v37 }
 0xb6f   :  { %v9118_v27 = vpop.eup %9117  ;;  %8721 = vmatprep.subr.mxu1 %v2183_v40 }
 0xb70   :  { %v2679_v28 = vsel %vm671_vm7, %v9118_v27, 0.0  ;;  %v3365_v47 = vmul.f32 1.442695, %v3364_v43  ;;  %8722 = vmatpush3.msra.mxu1 %v2183_v40  ;;  %v8094_v40 = vld [vmem:[#allocation17] ss:$0 sm:$0xff] }
 0xb71   :  { %2680 = vadd.xlane.f32.xlu0 %v2679_v28  ;;  %v3531_v44 = vpop.xlane.xlu1 %3530 }
 0xb72   :  { %v3532_v33 = vsub.f32 %v3528_v3, %v3531_v44  ;;  %9125 = vpow2.f32 %v3365_v47  ;;  %v2182_v44 = vld [vmem:[#allocation14 + $0x8] sm:$0xff] }
 0xb73   :  { %v10270_v29 = vpop.eup %9119  ;;  %8723 = vmatprep.subr.mxu1 %v2182_v44 }
 0xb74   :  { %v2847_v30 = vsel %vm671_vm7, %v10270_v29, 0.0  ;;  %v3533_v48 = vmul.f32 1.442695, %v3532_v33  ;;  %8724 = vmatpush3.msra.mxu1 %v2182_v44  ;;  %v8095_v44 = vld [vmem:[#allocation19] ss:$0 sm:$0xff] }
 0xb75   :  { %2848 = vadd.xlane.f32.xlu1 %v2847_v30  ;;  %v3698_v45 = vpop.xlane.xlu0 %3697  ;;  %v2686_v41 = vpop.permute.xlu1 %2685 }
 0xb76   :  { %v3699_v32 = vsub.f32 %v3695_v10, %v3698_v45  ;;  %9127 = vpow2.f32 %v3533_v48  ;;  %v2181_v45 = vld [vmem:[#allocation14] sm:$0xff] }
 0xb77   :  { %8725 = vmatprep.subr.mxu1 %v2181_v45 }
 0xb78   :  { %v3700_v49 = vmul.f32 1.442695, %v3699_v32  ;;  %8726 = vmatpush3.msra.mxu1 %v2181_v45 }
 0xb7a   :  { %9129 = vpow2.f32 %v3700_v49 }
 0xb86   :  { %3373 = vrot.lane.b32.xlu1 %v10236_v38, %s9638_s3 }
 0xb87   :  { %2852 = vrot.lane.b32.xlu0 %v10238_v39, %s9637_s16  ;;  %v9122_v39 = vpop.eup %9121 }
 0xb88   :  { %v9124_v50 = vpop.eup %9123  ;;  %v3014_v51 = vsel %vm671_vm7, %v9122_v39, 0.0 }
 0xb89   :  { %v10279_v52 = vpop.eup %9125  ;;  %v3203_v57 = vsel %vm671_vm7, %v9124_v50, 0.0 }
 0xb8a   :  { %v10281_v54 = vpop.eup %9127  ;;  %v3367_v56 = vsel %vm671_vm7, %v10279_v52, 0.0 }
 0xb8b   :  { %v10286_v58 = vpop.eup %9129  ;;  %v3535_v60 = vsel %vm671_vm7, %v10281_v54, 0.0 }
 0xb8c   :  { %v3702_v59 = vsel %vm671_vm7, %v10286_v58, 0.0 }
 0xba6   :  { %3015 = vadd.xlane.f32.xlu0 %v3014_v51  ;;  %v2517_v53 = vpop.xlane.xlu1 %2516 }
 0xba7   :  { %9131 = vrcp.f32 %v2517_v53 }
 0xbaa   :  { %3368 = vadd.xlane.f32.xlu0 %v3367_v56  ;;  %3204 = vadd.xlane.f32.xlu1 %v3203_v57  ;;  %v3020_v63 = vpop.permute.xlu1 %3019 }
 0xbae   :  { %3703 = vadd.xlane.f32.xlu0 %v3702_v59  ;;  %3536 = vadd.xlane.f32.xlu1 %v3535_v60 }
 0xbb4   :  { %v9132_v61 = vpop.eup %9131 }
 0xbb5   :  { %v2519_v62 = vmul.f32 %v9132_v61, %v9116_v18 }
 0xbb7   :  { %8647 = vmatmul.mubr.msk.f32.vlgmr.msra.gmra.mxu0 %vm671_vm7, %v2519_v62 }
 0xbb8   :  { %8655 = vmatpush3.msra.mxu0 %v2686_v41  ;;  %8656 = vmatprep.mubr.msk.f32.mxu0 %vm9636_vm6, %v9635_v19 }
 0xbb9   :  { %8664 = vmatprep.subr.mxu0 %v9635_v19 }
 0xbbf   :  { %3707 = vrot.lane.b32.xlu1 %v10236_v38, %s9639_s23 }
 0xbc4   :  { %3540 = vrot.lane.b32.xlu0 %v10236_v38, %s9637_s16 }
 0xbfa   :  { %v2681_v0 = vpop.xlane.xlu0 %2680 }
 0xbfb   :  { %9133 = vrcp.f32 %v2681_v0  ;;  %v8091_v0 = vld [vmem:[#allocation16] ss:$0 sm:$0xff] }
 0xbfe   :  { %v2849_v1 = vpop.xlane.xlu1 %2848  ;;  %v2853_v4 = vpop.permute.xlu0 %2852 }
 0xbff   :  { %9135 = vrcp.f32 %v2849_v1 }
 0xc02   :  { %v3374_v9 = vpop.permute.xlu1 %3373 }
 0xc08   :  { %v9134_v2 = vpop.eup %9133 }
 0xc09   :  { %v2683_v3 = vmul.f32 %v9134_v2, %v9118_v27 }
 0xc0b   :  { %8657 = vmatmul.mubr.msk.f32.vlgmr.msra.gmra.mxu0 %vm671_vm7, %v2683_v3 }
 0xc0c   :  { %v9136_v7 = vpop.eup %9135  ;;  %8665 = vmatpush3.msra.mxu0 %v2853_v4  ;;  %8666 = vmatprep.mubr.msk.f32.mxu0 %vm9636_vm6, %v9635_v19 }
 0xc0d   :  { %8674 = vmatprep.subr.mxu0 %v9635_v19  ;;  %v2851_v8 = vmul.f32 %v9136_v7, %v10270_v29 }
 0xc0f   :  { %8667 = vmatmul.mubr.msk.f32.vlgmr.msra.gmra.mxu0 %vm671_vm7, %v2851_v8 }
 0xc10   :  { %8675 = vmatpush3.msra.mxu0 %v3020_v63  ;;  %8676 = vmatprep.mubr.msk.f32.mxu0 %vm9636_vm6, %v9635_v19 }
 0xc11   :  { %8684 = vmatprep.subr.mxu0 %v9635_v19 }
 0xc2f   :  { %v3016_v10 = vpop.xlane.xlu0 %3015 }
 0xc30   :  { %9137 = vrcp.f32 %v3016_v10 }
 0xc33   :  { %v3205_v11 = vpop.xlane.xlu1 %3204  ;;  %v3369_v14 = vpop.xlane.xlu0 %3368 }
 0xc34   :  { %9139 = vrcp.f32 %v3205_v11 }
 0xc35   :  { %9141 = vrcp.f32 %v3369_v14 }
 0xc37   :  { %v3537_v15 = vpop.xlane.xlu1 %3536  ;;  %v3704_v16 = vpop.xlane.xlu0 %3703 }
 0xc38   :  { %9143 = vrcp.f32 %v3537_v15 }
 0xc39   :  { %9145 = vrcp.f32 %v3704_v16 }
 0xc3b   :  { %v3708_v27 = vpop.permute.xlu1 %3707 }
 0xc3d   :  { %v9138_v17 = vpop.eup %9137 }
 0xc3e   :  { %v3018_v18 = vmul.f32 %v9138_v17, %v9122_v39 }
 0xc40   :  { %8677 = vmatmul.mubr.msk.f32.vlgmr.msra.gmra.mxu0 %vm671_vm7, %v3018_v18 }
 0xc41   :  { %8685 = vmatpush3.msra.mxu0 %v10236_v38  ;;  %8686 = vmatprep.mubr.msk.f32.mxu0 %vm9636_vm6, %v9635_v19  ;;  %v9140_v20 = vpop.eup %9139  ;;  %v3541_v38 = vpop.permute.xlu0 %3540 }
 0xc42   :  { %8694 = vmatprep.subr.mxu0 %v9635_v19  ;;  %v3207_v21 = vmul.f32 %v9140_v20, %v9124_v50  ;;  %v9142_v22 = vpop.eup %9141 }
 0xc43   :  { %v3371_v23 = vmul.f32 %v9142_v22, %v10279_v52 }
 0xc44   :  { %8687 = vmatmul.mubr.msk.f32.vlgmr.msra.gmra.mxu0 %vm671_vm7, %v3207_v21 }
 0xc45   :  { %8695 = vmatpush3.msra.mxu0 %v3374_v9  ;;  %8696 = vmatprep.mubr.msk.f32.mxu0 %vm9636_vm6, %v9635_v19  ;;  %v9144_v24 = vpop.eup %9143 }
 0xc46   :  { %8704 = vmatprep.subr.mxu0 %v9635_v19  ;;  %v3539_v25 = vmul.f32 %v9144_v24, %v10281_v54  ;;  %v9146_v26 = vpop.eup %9145  ;;  %v3932_v24 = vld [vmem:[#allocation20 + $0x8] sm:$0xff] }
 0xc47   :  { %v3706_v28 = vmul.f32 %v9146_v26, %v10286_v58  ;;  %v4031_v26 = vld [vmem:[%s10887_s22 + $0x30] sm:$0xff] }
 0xc48   :  { %8697 = vmatmul.mubr.msk.f32.vlgmr.msra.gmra.mxu0 %vm671_vm7, %v3371_v23  ;;  %v3934_v23 = vld [vmem:[#allocation20 + $0x18] sm:$0xff] }
 0xc49   :  { %8705 = vmatpush3.msra.mxu0 %v3541_v38  ;;  %8706 = vmatprep.mubr.msk.f32.mxu0 %vm9636_vm6, %v9635_v19  ;;  %v3931_v38 = vld [vmem:[#allocation20] sm:$0xff] }
 0xc4a   :  { %8714 = vmatprep.subr.mxu0 %v9635_v19 }
 0xc4c   :  { %8707 = vmatmul.mubr.msk.f32.vlgmr.msra.gmra.mxu0 %vm671_vm7, %v3539_v25  ;;  %v4032_v25 = vld [vmem:[%s10887_s22 + $0x38] sm:$0xff] }
 0xc4d   :  { %8715 = vmatpush3.msra.mxu0 %v3708_v27  ;;  %8716 = vmatprep.mubr.msk.f32.mxu0 %vm9636_vm6, %v9635_v19  ;;  %v4030_v27 = vld [vmem:[%s10887_s22 + $0x28] sm:$0xff] }
 0xc4e   :  { %8730 = vmatprep.subr.mxu0 %v3934_v23  ;;  %8741 = vmatprep.subr.mxu1 %v4032_v25 }
 0xc50   :  { %8717 = vmatmul.mubr.msk.f32.vlgmr.msra.gmra.mxu0 %vm671_vm7, %v3706_v28  ;;  %v4029_v28 = vld [vmem:[%s10887_s22 + $0x20] sm:$0xff] }
 0xc51   :  { %8731 = vmatpush3.msra.mxu0 %v3934_v23  ;;  %v8113_v23 = vld [vmem:[%s10923_s1 + $0x28] sm:$0xff] }
 0xc77   :  { %v2589_v29 = vpop.f32.mrf.mxu0 }
 0xc79   :  { %v8648_v30 = vpop.f32.mrf.mxu0 }
 0xccb   :  { %v2757_v31 = vpop.f32.mrf.mxu0 }
 0xccc   :  { %3096 = vrot.lane.b32.xlu0 %v2757_v31, %s9620_s11 }
 0xccd   :  { %v8658_v34 = vpop.f32.mrf.mxu0 }
 0xccf   :  { %v2924_v35 = vpop.f32.mrf.mxu0 }
 0xcd0   :  { %3100 = vrot.lane.b32.xlu1 %v2924_v35, %s9615_s6 }
 0xcd1   :  { %v8668_v36 = vpop.f32.mrf.mxu0 }
 0xd00   :  { %v3091_v43 = vpop.f32.mrf.mxu0 }
 0xd01   :  { %3104 = vrot.lane.b32.xlu1 %v3091_v43, %s9640_s20 }
 0xd02   :  { %v8678_v46 = vpop.f32.mrf.mxu0 }
 0xd04   :  { %v3277_v33 = vpop.f32.mrf.mxu0 }
 0xd06   :  { %v8688_v47 = vpop.f32.mrf.mxu0 }
 0xd08   :  { %v3445_v32 = vpop.f32.mrf.mxu0 }
 0xd09   :  { %3784 = vrot.lane.b32.xlu0 %v3445_v32, %s9620_s11 }
 0xd0a   :  { %v8698_v48 = vpop.f32.mrf.mxu0 }
 0xd0c   :  { %v3612_v49 = vpop.f32.mrf.mxu0 }
 0xd0d   :  { %3788 = vrot.lane.b32.xlu0 %v3612_v49, %s9615_s6  ;;  %v4028_v49 = vld [vmem:[%s10887_s22 + $0x18] sm:$0xff] }
 0xd0e   :  { %v8708_v39 = vpop.f32.mrf.mxu0 }
 0xd0f   :  { %v4027_v39 = vld [vmem:[%s10887_s22 + $0x10] sm:$0xff] }
 0xd10   :  { %v3779_v41 = vpop.f32.mrf.mxu0 }
 0xd11   :  { %3792 = vrot.lane.b32.xlu1 %v3779_v41, %s9640_s20  ;;  %v4026_v41 = vld [vmem:[%s10887_s22 + $0x8] sm:$0xff] }
 0xd12   :  { %v8718_v50 = vpop.f32.mrf.mxu0 }
 0xd13   :  { %v4025_v50 = vld [vmem:[%s10887_s22] sm:$0xff] }
 0xd3e   :  { %v3097_v51 = vpop.permute.xlu0 %3096 }
 0xd3f   :  { %v3107_v53 = vsel %vm671_vm7, %v2589_v29, %v3097_v51  ;;  %v8096_v51 = vld [vmem:[#allocation22] ss:$0 sm:$0xff] }
 0xd42   :  { %v3101_v52 = vpop.permute.xlu1 %3100 }
 0xd43   :  { %v3108_v54 = vsel %vm337_vm2, %v3107_v53, %v3101_v52 }
 0xd73   :  { %v3105_v56 = vpop.permute.xlu1 %3104 }
 0xd74   :  { %v3109_v57 = vsel %vm1351_vm10, %v3108_v54, %v3105_v56 }
 0xd75   :  { %8727 = vmatprep.mubr.msk.f32.mxu1 %vm438_vm5, %v3109_v57 }
 0xd7b   :  { %v3785_v58 = vpop.permute.xlu0 %3784 }
 0xd7c   :  { %v3795_v60 = vsel %vm671_vm7, %v3277_v33, %v3785_v58 }
 0xd7f   :  { %v3789_v59 = vpop.permute.xlu0 %3788 }
 0xd80   :  { %v3796_v61 = vsel %vm337_vm2, %v3795_v60, %v3789_v59  ;;  %v8099_v59 = vld [vmem:[#allocation23] ss:$0 sm:$0xff] }
 0xd83   :  { %v3793_v62 = vpop.permute.xlu1 %3792 }
 0xd84   :  { %v3797_v63 = vsel %vm1351_vm10, %v3796_v61, %v3793_v62 }
 0xd85   :  { %8728 = vmatmul.mubr.msk.f32.vlgmr.msra.gmra.mxu1 %vm438_vm5, %v3797_v63 }
 0xd86   :  { %8742 = vmatpush3.msra.mxu1 %v4032_v25 }
 0xd87   :  { %8743 = vmatprep.subr.mxu1 %v4031_v26 }
 0xd88   :  { %8744 = vmatpush3.msra.mxu1 %v4031_v26 }
 0xd89   :  { %8745 = vmatprep.subr.mxu1 %v4030_v27 }
 0xd8a   :  { %8746 = vmatpush3.msra.mxu1 %v4030_v27 }
 0xd8b   :  { %8747 = vmatprep.subr.mxu1 %v4029_v28 }
 0xd8c   :  { %8748 = vmatpush3.msra.mxu1 %v4029_v28 }
 0xd8d   :  { %8749 = vmatprep.subr.mxu1 %v4028_v49 }
 0xd8e   :  { %8750 = vmatpush3.msra.mxu1 %v4028_v49 }
 0xd8f   :  { %8751 = vmatprep.subr.mxu1 %v4027_v39 }
 0xd90   :  { %8752 = vmatpush3.msra.mxu1 %v4027_v39 }
 0xd91   :  { %8753 = vmatprep.subr.mxu1 %v4026_v41 }
 0xd92   :  { %8754 = vmatpush3.msra.mxu1 %v4026_v41 }
 0xd93   :  { %8755 = vmatprep.subr.mxu1 %v4025_v50 }
 0xd94   :  { %8756 = vmatpush3.msra.mxu1 %v4025_v50 }
 0xe45   :  { %v8729_v1 = vpop.f32.mrf.mxu1 }
 0xe46   :  { %v3882_v2 = vadd.f32 %v8729_v1, %v8091_v0 }
 0xe47   :  { %v3876_v3 = vpop.f32.mrf.mxu1 }
 0xe48   :  { %v3877_v4 = vadd.f32 %v8091_v0, %v3876_v3  ;;  %v3886_v7 = vadd.f32 %v3882_v2, %v10173_v42 }
 0xe4a   :  { %v3892_v8 = vsel %vm438_vm5, %v3886_v7, 0.0  ;;  %v3885_v9 = vadd.f32 %v3877_v4, %v10169_v5  ;;  %v3933_v5 = vld [vmem:[#allocation20 + $0x10] sm:$0xff] }
 0xe4b   :  { %3893 = vadd.xlane.f32.xlu1 %v3892_v8  ;;  %8732 = vmatprep.subr.mxu0 %v3933_v5 }
 0xe4c   :  { %v3889_v10 = vsel %vm438_vm5, %v3885_v9, 0.0  ;;  %8733 = vmatpush3.msra.mxu0 %v3933_v5  ;;  %v8104_v5 = vld [vmem:[%s10921_s14 + $0x20] sm:$0xff] }
 0xe4d   :  { %3890 = vadd.xlane.f32.xlu0 %v3889_v10  ;;  %8734 = vmatprep.subr.mxu0 %v3932_v24 }
 0xe4e   :  { %8735 = vmatpush3.msra.mxu0 %v3932_v24  ;;  %v8112_v24 = vld [vmem:[%s10923_s1 + $0x20] sm:$0xff] }
 0xe4f   :  { %8736 = vmatprep.subr.mxu0 %v3931_v38 }
 0xe50   :  { %8737 = vmatpush3.msra.mxu0 %v3931_v38  ;;  %v8111_v38 = vld [vmem:[%s10922_s29 + $0x38] sm:$0xff] }
 0xed4   :  { %v3894_v11 = vpop.xlane.xlu1 %3893 }
 0xed5   :  { %v3896_v14 = vmul.f32 0.03125, %v3894_v11 }
 0xed6   :  { %v3891_v15 = vpop.xlane.xlu0 %3890 }
 0xed7   :  { %v3895_v16 = vmul.f32 0.03125, %v3891_v15  ;;  %v3898_v17 = vsub.f32 %v3886_v7, %v3896_v14 }
 0xed9   :  { %v3897_v18 = vsub.f32 %v3885_v9, %v3895_v16  ;;  %v3900_v22 = vmul.f32 %v3898_v17, %v3898_v17 }
 0xedb   :  { %v3899_v20 = vmul.f32 %v3897_v18, %v3897_v18  ;;  %v3904_v42 = vsel %vm438_vm5, %v3900_v22, 0.0  ;;  %v8114_v22 = vld [vmem:[%s10923_s1 + $0x30] sm:$0xff] }
 0xedd   :  { %v3901_v21 = vsel %vm438_vm5, %v3899_v20, 0.0  ;;  %v8115_v20 = vld [vmem:[%s10923_s1 + $0x38] sm:$0xff] }
 0xede   :  { %3902 = vadd.xlane.f32.xlu0 %v3901_v21  ;;  %v8106_v21 = vld [vmem:[%s10921_s14 + $0x30] sm:$0xff]  ;;  %8782 = vmatprep.subr.mxu1 %v8115_v20 }
 0xee2   :  { %3905 = vadd.xlane.f32.xlu0 %v3904_v42  ;;  %v8105_v42 = vld [vmem:[%s10921_s14 + $0x28] sm:$0xff] }
 0xf67   :  { %v3903_v29 = vpop.xlane.xlu0 %3902 }
 0xf68   :  { %v3907_v30 = vmul.f32 0.03125, %v3903_v29 }
 0xf6a   :  { %v3909_v31 = vadd.f32 1e-05, %v3907_v30 }
 0xf6b   :  { %v3906_v34 = vpop.xlane.xlu0 %3905 }
 0xf6c   :  { %9147 = vrsqrt.f32 %v3909_v31  ;;  %v3908_v35 = vmul.f32 0.03125, %v3906_v34  ;;  %v8102_v34 = vld [vmem:[#allocation25] ss:$0 sm:$0xff] }
 0xf6e   :  { %v3910_v36 = vadd.f32 1e-05, %v3908_v35 }
 0xf70   :  { %9149 = vrsqrt.f32 %v3910_v36 }
 0xf79   :  { %v9148_v37 = vpop.eup %9147 }
 0xf7a   :  { %v3913_v43 = vmul.f32 %v9148_v37, %v3897_v18  ;;  %v8107_v18 = vld [vmem:[%s10921_s14 + $0x38] sm:$0xff] }
 0xf7b   :  { %8760 = vmatprep.subr.mxu0 %v8107_v18 }
 0xf7c   :  { %v3921_v45 = vmul.f32 %v8094_v40, %v3913_v43  ;;  %v8103_v43 = vld [vmem:[#allocation26] ss:$0 sm:$0xff] }
 0xf7d   :  { %v9150_v46 = vpop.eup %9149 }
 0xf7e   :  { %v3914_v33 = vmul.f32 %v9150_v46, %v3898_v17  ;;  %v3929_v47 = vadd.f32 %v8095_v44, %v3921_v45 }
 0xf80   :  { %v3922_v32 = vmul.f32 %v8094_v40, %v3914_v33  ;;  %8738 = vmatprep.mubr.msk.f32.mxu0 %vm438_vm5, %v3929_v47  ;;  %v8110_v33 = vld [vmem:[%s10922_s29 + $0x30] sm:$0xff] }
 0xf82   :  { %v3930_v48 = vadd.f32 %v8095_v44, %v3922_v32  ;;  %v8108_v32 = vld [vmem:[%s10922_s29 + $0x20] sm:$0xff] }
 0xf84   :  { %8739 = vmatmul.mubr.msk.f32.vlgmr.msra.gmra.mxu0 %vm438_vm5, %v3930_v48 }
 0xf85   :  { %8761 = vmatpush3.msra.mxu0 %v8107_v18 }
 0xf86   :  { %8762 = vmatprep.subr.mxu0 %v8106_v21 }
 0xf87   :  { %8763 = vmatpush3.msra.mxu0 %v8106_v21 }
 0xf88   :  { %8764 = vmatprep.subr.mxu0 %v8105_v42 }
 0xf89   :  { %8765 = vmatpush3.msra.mxu0 %v8105_v42 }
 0xf8a   :  { %8766 = vmatprep.subr.mxu0 %v8104_v5 }
 0xf8b   :  { %8767 = vmatpush3.msra.mxu0 %v8104_v5 }
 0xf8c   :  { %8771 = vmatprep.subr.mxu0 %v8111_v38 }
0x1044   :  { %v8740_v52 = vpop.f32.mrf.mxu0 }
0x1045   :  { %v4020_v53 = vadd.f32 %v8740_v52, %v8096_v51 }
0x1046   :  { %v4014_v54 = vpop.f32.mrf.mxu0 }
0x1047   :  { %v4015_v56 = vadd.f32 %v8096_v51, %v4014_v54  ;;  %v4024_v58 = vmax.f32 %v4020_v53, 0.0 }
0x1049   :  { %v4023_v57 = vmax.f32 %v4015_v56, 0.0 }
0x104b   :  { %8757 = vmatprep.mubr.msk.f32.mxu1 %vm4040_vm13, %v4023_v57 }
0x104c   :  { %8758 = vmatmul.mubr.msk.f32.vlgmr.msra.gmra.mxu1 %vm4040_vm13, %v4024_v58 }
0x104d   :  { %8783 = vmatpush3.msra.mxu1 %v8115_v20 }
0x104e   :  { %8784 = vmatprep.subr.mxu1 %v8114_v22 }
0x104f   :  { %8785 = vmatpush3.msra.mxu1 %v8114_v22 }
0x1050   :  { %8786 = vmatprep.subr.mxu1 %v8113_v23 }
0x1051   :  { %8787 = vmatpush3.msra.mxu1 %v8113_v23 }
0x1052   :  { %8788 = vmatprep.subr.mxu1 %v8112_v24 }
0x1053   :  { %8789 = vmatpush3.msra.mxu1 %v8112_v24 }
0x1054   :  { %8803 = vmatprep.subr.mxu1 %v9635_v19 }
0x110c   :  { %v8759_v60 = vpop.f32.mrf.mxu1 }
0x110d   :  { %v4119_v61 = vadd.f32 %v8759_v60, %v8099_v59 }
0x110e   :  { %v4113_v62 = vpop.f32.mrf.mxu1 }
0x110f   :  { %v4114_v63 = vadd.f32 %v8099_v59, %v4113_v62  ;;  %v4123_v0 = vadd.f32 %v4119_v61, %v3930_v48 }
0x1111   :  { %v4129_v1 = vsel %vm438_vm5, %v4123_v0, 0.0  ;;  %v4122_v2 = vadd.f32 %v4114_v63, %v3929_v47  ;;  %v8109_v47 = vld [vmem:[%s10922_s29 + $0x28] sm:$0xff] }
0x1112   :  { %4130 = vadd.xlane.f32.xlu0 %v4129_v1 }
0x1113   :  { %v4126_v3 = vsel %vm438_vm5, %v4122_v2, 0.0 }
0x1114   :  { %4127 = vadd.xlane.f32.xlu1 %v4126_v3 }
0x119b   :  { %v4131_v4 = vpop.xlane.xlu0 %4130 }
0x119c   :  { %v4133_v7 = vmul.f32 0.03125, %v4131_v4 }
0x119d   :  { %v4128_v8 = vpop.xlane.xlu1 %4127 }
0x119e   :  { %v4135_v9 = vsub.f32 %v4123_v0, %v4133_v7  ;;  %v4132_v10 = vmul.f32 0.03125, %v4128_v8 }
0x11a0   :  { %v4134_v11 = vsub.f32 %v4122_v2, %v4132_v10  ;;  %v4137_v14 = vmul.f32 %v4135_v9, %v4135_v9 }
0x11a2   :  { %v4141_v15 = vsel %vm438_vm5, %v4137_v14, 0.0  ;;  %v4136_v16 = vmul.f32 %v4134_v11, %v4134_v11 }
0x11a3   :  { %4142 = vadd.xlane.f32.xlu0 %v4141_v15 }
0x11a4   :  { %v4138_v17 = vsel %vm438_vm5, %v4136_v16, 0.0 }
0x11a5   :  { %4139 = vadd.xlane.f32.xlu1 %v4138_v17 }
0x122c   :  { %v4143_v25 = vpop.xlane.xlu0 %4142 }
0x122d   :  { %v4145_v26 = vmul.f32 0.03125, %v4143_v25 }
0x122e   :  { %v4140_v27 = vpop.xlane.xlu1 %4139 }
0x122f   :  { %v4147_v28 = vadd.f32 1e-05, %v4145_v26  ;;  %v4144_v29 = vmul.f32 0.03125, %v4140_v27 }
0x1231   :  { %9151 = vrsqrt.f32 %v4147_v28  ;;  %v4146_v30 = vadd.f32 1e-05, %v4144_v29 }
0x1233   :  { %9153 = vrsqrt.f32 %v4146_v30 }
0x123e   :  { %v9152_v31 = vpop.eup %9151 }
0x123f   :  { %v4151_v35 = vmul.f32 %v9152_v31, %v4135_v9 }
0x1240   :  { %v9154_v36 = vpop.eup %9153 }
0x1241   :  { %v4150_v37 = vmul.f32 %v9154_v36, %v4134_v11  ;;  %v4159_v40 = vmul.f32 %v8102_v34, %v4151_v35 }
0x1243   :  { %v4158_v44 = vmul.f32 %v8102_v34, %v4150_v37  ;;  %v10411_v46 = vadd.f32 %v8103_v43, %v4159_v40 }
0x1245   :  { %v10409_v45 = vadd.f32 %v8103_v43, %v4158_v44 }
0x1247   :  { %8768 = vmatprep.mubr.msk.f32.mxu0 %vm438_vm5, %v10409_v45  ;;  %8790 = vmatprep.mubr.msk.f32.mxu1 %vm438_vm5, %v10409_v45 }
0x1248   :  { %8769 = vmatmul.mubr.msk.f32.vlgmr.msra.gmra.mxu0 %vm438_vm5, %v10411_v46  ;;  %8791 = vmatmul.mubr.msk.f32.vlgmr.msra.gmra.mxu1 %vm438_vm5, %v10411_v46 }
0x1249   :  { %8772 = vmatpush3.msra.mxu0 %v8111_v38  ;;  %8779 = vmatprep.mubr.msk.f32.mxu0 %vm438_vm5, %v10409_v45 }
0x124a   :  { %8773 = vmatprep.subr.mxu0 %v8110_v33  ;;  %8805 = vmatprep.mubr.msk.f32.mxu1 %vm9636_vm6, %v9635_v19 }
0x124b   :  { %8774 = vmatpush3.msra.mxu0 %v8110_v33 }
0x124c   :  { %8775 = vmatprep.subr.mxu0 %v8109_v47 }
0x124d   :  { %8776 = vmatpush3.msra.mxu0 %v8109_v47 }
0x124e   :  { %8777 = vmatprep.subr.mxu0 %v8108_v32 }
0x124f   :  { %8778 = vmatpush3.msra.mxu0 %v8108_v32 }
0x1250   :  { %8780 = vmatmul.mubr.msk.f32.vlgmr.msra.gmra.mxu0 %vm438_vm5, %v10411_v46  ;;  %8793 = vmatprep.subr.mxu0 %v9635_v19 }
0x1251   :  { %8795 = vmatprep.mubr.msk.f32.mxu0 %vm9636_vm6, %v9635_v19 }
0x1308   :  { %v8770_v48 = vpop.f32.mrf.mxu0  ;;  %v10440_v50 = vpop.f32.mrf.mxu1 }
0x130a   :  { %v4262_v49 = vpop.f32.mrf.mxu0  ;;  %v10446_v51 = vpop.f32.mrf.mxu1 }
0x130b   :  { %4583 = vrot.lane.b32.xlu0 %v4262_v49, %s9638_s3 }
0x1310   :  { %v8781_v39 = vpop.f32.mrf.mxu0 }
0x1312   :  { %v4337_v41 = vpop.f32.mrf.mxu0 }
0x1313   :  { %4920 = vrot.lane.b32.xlu0 %v4337_v41, %s9639_s23  ;;  %4585 = vrot.lane.b32.xlu1 %v4337_v41, %s9638_s3 }
0x1314   :  { %8794 = vmatpush3.xpose.msk.msra.mxu0 %vm671_vm7, %v4337_v41 }
0x1315   :  { %8798 = vmatprep.subr.mxu0 %v9635_v19 }
0x1317   :  { %8796 = vmatmul.mubr.msk.f32.vlgmr.msra.gmra.mxu0 %vm671_vm7, %v4262_v49  ;;  %5264 = vrot.lane.b32.xlu0 %v8781_v39, %s9638_s3 }
0x1318   :  { %4753 = vrot.lane.b32.xlu1 %v4337_v41, %s9637_s16  ;;  %8799 = vmatpush3.msra.mxu0 %v10446_v51 }
0x1319   :  { %8800 = vmatprep.mubr.msk.f32.mxu0 %vm9636_vm6, %v9635_v19  ;;  %8808 = vmatprep.subr.mxu0 %v9635_v19 }
0x131b   :  { %5432 = vrot.lane.b32.xlu0 %v8781_v39, %s9637_s16 }
0x131c   :  { %4751 = vrot.lane.b32.xlu1 %v4262_v49, %s9637_s16 }
0x131f   :  { %5599 = vrot.lane.b32.xlu0 %v8781_v39, %s9639_s23 }
0x1320   :  { %4918 = vrot.lane.b32.xlu1 %v4262_v49, %s9639_s23 }
0x1324   :  { %5262 = vrot.lane.b32.xlu1 %v8770_v48, %s9638_s3 }
0x1328   :  { %5430 = vrot.lane.b32.xlu1 %v8770_v48, %s9637_s16 }
0x132c   :  { %5597 = vrot.lane.b32.xlu1 %v8770_v48, %s9639_s23 }
0x137d   :  { %v4584_v53 = vpop.permute.xlu0 %4583 }
0x1385   :  { %v4586_v52 = vpop.permute.xlu1 %4585  ;;  %v4921_v56 = vpop.permute.xlu0 %4920 }
0x1386   :  { %8804 = vmatpush3.xpose.msk.msra.mxu1 %vm671_vm7, %v4586_v52 }
0x1387   :  { %8813 = vmatprep.subr.mxu1 %v9635_v19 }
0x1389   :  { %8806 = vmatmul.mubr.msk.f32.vlgmr.msra.gmra.mxu1 %vm671_vm7, %v4584_v53  ;;  %v5265_v59 = vpop.permute.xlu0 %5264 }
0x138a   :  { %v4754_v54 = vpop.permute.xlu1 %4753  ;;  %8815 = vmatprep.mubr.msk.f32.mxu1 %vm9636_vm6, %v9635_v19 }
0x138b   :  { %8814 = vmatpush3.xpose.msk.msra.mxu1 %vm671_vm7, %v4754_v54 }
0x138c   :  { %8823 = vmatprep.subr.mxu1 %v9635_v19 }
0x138d   :  { %v5433_v61 = vpop.permute.xlu0 %5432 }
0x138e   :  { %v4752_v57 = vpop.permute.xlu1 %4751 }
0x138f   :  { %8816 = vmatmul.mubr.msk.f32.vlgmr.msra.gmra.mxu1 %vm671_vm7, %v4752_v57 }
0x1390   :  { %8824 = vmatpush3.xpose.msk.msra.mxu1 %vm671_vm7, %v4921_v56  ;;  %8825 = vmatprep.mubr.msk.f32.mxu1 %vm9636_vm6, %v9635_v19 }
0x1391   :  { %8833 = vmatprep.subr.mxu1 %v9635_v19  ;;  %v5600_v63 = vpop.permute.xlu0 %5599 }
0x1392   :  { %v4919_v58 = vpop.permute.xlu1 %4918 }
0x1393   :  { %8826 = vmatmul.mubr.msk.f32.vlgmr.msra.gmra.mxu1 %vm671_vm7, %v4919_v58 }
0x1394   :  { %8834 = vmatpush3.xpose.msk.msra.mxu1 %vm671_vm7, %v8781_v39  ;;  %8835 = vmatprep.mubr.msk.f32.mxu1 %vm9636_vm6, %v9635_v19 }
0x1395   :  { %8843 = vmatprep.subr.mxu1 %v9635_v19 }
0x1396   :  { %v5263_v60 = vpop.permute.xlu1 %5262 }
0x1397   :  { %8836 = vmatmul.mubr.msk.f32.vlgmr.msra.gmra.mxu1 %vm671_vm7, %v8770_v48 }
0x1398   :  { %8844 = vmatpush3.xpose.msk.msra.mxu1 %vm671_vm7, %v5265_v59  ;;  %8845 = vmatprep.mubr.msk.f32.mxu1 %vm9636_vm6, %v9635_v19 }
0x1399   :  { %8853 = vmatprep.subr.mxu1 %v9635_v19 }
0x139a   :  { %v5431_v62 = vpop.permute.xlu1 %5430 }
0x139b   :  { %8846 = vmatmul.mubr.msk.f32.vlgmr.msra.gmra.mxu1 %vm671_vm7, %v5263_v60 }
0x139c   :  { %8854 = vmatpush3.xpose.msk.msra.mxu1 %vm671_vm7, %v5433_v61  ;;  %8855 = vmatprep.mubr.msk.f32.mxu1 %vm9636_vm6, %v9635_v19 }
0x139d   :  { %8863 = vmatprep.subr.mxu1 %v9635_v19 }
0x139e   :  { %v5598_v0 = vpop.permute.xlu1 %5597 }
0x139f   :  { %8856 = vmatmul.mubr.msk.f32.vlgmr.msra.gmra.mxu1 %vm671_vm7, %v5431_v62 }
0x13a0   :  { %8864 = vmatpush3.xpose.msk.msra.mxu1 %vm671_vm7, %v5600_v63  ;;  %8865 = vmatprep.mubr.msk.f32.mxu1 %vm9636_vm6, %v9635_v19 }
0x13a3   :  { %8866 = vmatmul.mubr.msk.f32.vlgmr.msra.gmra.mxu1 %vm671_vm7, %v5598_v0 }
0x13d7   :  { %v4493_v1 = vpop.f32.mrf.mxu0 }
0x13d8   :  { %v4497_v2 = vsel %vm748_vm8, -1e+20, %v4493_v1 }
0x13d9   :  { %v4498_v3 = vmul.f32 0.17677669, %v4497_v2  ;;  %v8797_v4 = vpop.f32.mrf.mxu0 }
0x13db   :  { %v4499_v7 = vsel %vm671_vm7, %v4498_v3, -inf }
0x13dc   :  { %4500 = vmax.xlane.f32.xlu0 %v4499_v7 }
0x1449   :  { %v4657_v8 = vpop.f32.mrf.mxu1 }
0x144a   :  { %v4661_v9 = vsel %vm748_vm8, -1e+20, %v4657_v8 }
0x144b   :  { %v4662_v10 = vmul.f32 0.17677669, %v4661_v9  ;;  %v8807_v11 = vpop.f32.mrf.mxu1 }
0x144d   :  { %v4663_v14 = vsel %vm671_vm7, %v4662_v10, -inf }
0x144e   :  { %4664 = vmax.xlane.f32.xlu1 %v4663_v14 }
0x144f   :  { %v4825_v15 = vpop.f32.mrf.mxu1 }
0x1450   :  { %v4829_v16 = vsel %vm748_vm8, -1e+20, %v4825_v15 }
0x1451   :  { %v4830_v17 = vmul.f32 0.17677669, %v4829_v16  ;;  %v8817_v18 = vpop.f32.mrf.mxu1 }
0x1453   :  { %v4992_v20 = vpop.f32.mrf.mxu1  ;;  %v4831_v21 = vsel %vm671_vm7, %v4830_v17, -inf }
0x1454   :  { %v4996_v22 = vsel %vm748_vm8, -1e+20, %v4992_v20  ;;  %4832 = vmax.xlane.f32.xlu0 %v4831_v21 }
0x1455   :  { %v4997_v42 = vmul.f32 0.17677669, %v4996_v22  ;;  %v8827_v23 = vpop.f32.mrf.mxu1 }
0x1457   :  { %v5172_v5 = vpop.f32.mrf.mxu1  ;;  %v4998_v24 = vsel %vm671_vm7, %v4997_v42, -inf }
0x1458   :  { %v5176_v38 = vsel %vm1431_vm9, -1e+20, %v5172_v5  ;;  %4999 = vmax.xlane.f32.xlu0 %v4998_v24 }
0x1459   :  { %v5177_v25 = vmul.f32 0.17677669, %v5176_v38  ;;  %v8837_v26 = vpop.f32.mrf.mxu1 }
0x145b   :  { %v5336_v27 = vpop.f32.mrf.mxu1  ;;  %v5178_v28 = vsel %vm671_vm7, %v5177_v25, -inf }
0x145c   :  { %v5340_v29 = vsel %vm1431_vm9, -1e+20, %v5336_v27  ;;  %5179 = vmax.xlane.f32.xlu1 %v5178_v28 }
0x145d   :  { %v5341_v55 = vmul.f32 0.17677669, %v5340_v29  ;;  %v8847_v30 = vpop.f32.mrf.mxu1 }
0x145f   :  { %v5504_v31 = vpop.f32.mrf.mxu1  ;;  %v5342_v34 = vsel %vm671_vm7, %v5341_v55, -inf }
0x1460   :  { %v5508_v35 = vsel %vm1431_vm9, -1e+20, %v5504_v31  ;;  %5343 = vmax.xlane.f32.xlu0 %v5342_v34 }
0x1461   :  { %v5509_v36 = vmul.f32 0.17677669, %v5508_v35  ;;  %v8857_v37 = vpop.f32.mrf.mxu1 }
0x1463   :  { %v5671_v40 = vpop.f32.mrf.mxu1  ;;  %v5510_v43 = vsel %vm671_vm7, %v5509_v36, -inf }
0x1464   :  { %v5675_v44 = vsel %vm1431_vm9, -1e+20, %v5671_v40  ;;  %5511 = vmax.xlane.f32.xlu1 %v5510_v43 }
0x1465   :  { %v5676_v33 = vmul.f32 0.17677669, %v5675_v44  ;;  %v8867_v47 = vpop.f32.mrf.mxu1  ;;  %v4501_v48 = vpop.xlane.xlu0 %4500 }
0x1466   :  { %v4502_v49 = vsub.f32 %v4498_v3, %v4501_v48 }
0x1467   :  { %v5677_v32 = vsel %vm671_vm7, %v5676_v33, -inf }
0x1468   :  { %5678 = vmax.xlane.f32.xlu0 %v5677_v32  ;;  %v4503_v39 = vmul.f32 1.442695, %v4502_v49 }
0x146a   :  { %9155 = vpow2.f32 %v4503_v39 }
0x1475   :  { %4675 = vrot.lane.b32.xlu1 %v10446_v51, %s9638_s3 }
0x1477   :  { %v9156_v41 = vpop.eup %9155 }
0x1478   :  { %v4505_v52 = vsel %vm671_vm7, %v9156_v41, 0.0 }
0x1499   :  { %4506 = vadd.xlane.f32.xlu1 %v4505_v52 }
0x14aa   :  { %5009 = vrot.lane.b32.xlu1 %v10446_v51, %s9639_s23 }
0x14d7   :  { %v4665_v6 = vpop.xlane.xlu1 %4664 }
0x14d8   :  { %v4666_v53 = vsub.f32 %v4662_v10, %v4665_v6 }
0x14da   :  { %v4667_v54 = vmul.f32 1.442695, %v4666_v53 }
0x14dc   :  { %9157 = vpow2.f32 %v4667_v54 }
0x14dd   :  { %v4833_v56 = vpop.xlane.xlu0 %4832 }
0x14de   :  { %v4834_v57 = vsub.f32 %v4830_v17, %v4833_v56 }
0x14e0   :  { %v4835_v58 = vmul.f32 1.442695, %v4834_v57 }
0x14e1   :  { %v5000_v63 = vpop.xlane.xlu0 %4999 }
0x14e2   :  { %9159 = vpow2.f32 %v4835_v58  ;;  %v5001_v0 = vsub.f32 %v4997_v42, %v5000_v63 }
0x14e4   :  { %v5002_v3 = vmul.f32 1.442695, %v5001_v0 }
0x14e5   :  { %v5180_v2 = vpop.xlane.xlu1 %5179 }
0x14e6   :  { %v5181_v8 = vsub.f32 %v5177_v25, %v5180_v2  ;;  %9161 = vpow2.f32 %v5002_v3  ;;  %v8118_v2 = vld [vmem:[%s10926_s10 + $0x30] sm:$0xff] }
0x14e8   :  { %v5182_v14 = vmul.f32 1.442695, %v5181_v8  ;;  %v8116_v8 = vld [vmem:[%s10926_s10 + $0x20] sm:$0xff] }
0x14e9   :  { %v9158_v59 = vpop.eup %9157  ;;  %v5344_v1 = vpop.xlane.xlu0 %5343 }
0x14ea   :  { %v4669_v60 = vsel %vm671_vm7, %v9158_v59, 0.0  ;;  %v5345_v4 = vsub.f32 %v5341_v55, %v5344_v1  ;;  %v8119_v1 = vld [vmem:[%s10926_s10 + $0x38] sm:$0xff] }
0x14eb   :  { %4670 = vadd.xlane.f32.xlu0 %v4669_v60  ;;  %8873 = vmatprep.subr.mxu1 %v8119_v1 }
0x14ec   :  { %v5346_v10 = vmul.f32 1.442695, %v5345_v4  ;;  %8874 = vmatpush3.msra.mxu1 %v8119_v1 }
0x14ed   :  { %v5512_v9 = vpop.xlane.xlu1 %5511  ;;  %8875 = vmatprep.subr.mxu1 %v8118_v2 }
0x14ee   :  { %v5513_v15 = vsub.f32 %v5509_v36, %v5512_v9  ;;  %9163 = vpow2.f32 %v5346_v10  ;;  %8876 = vmatpush3.msra.mxu1 %v8118_v2  ;;  %v8153_v2 = vld [vmem:[#allocation7 + $0x1] ss:$0 sm:$0xff] }
0x14ef   :  { %v10524_v61 = vpop.eup %9159  ;;  %9165 = vpow2.f32 %v5182_v14 }
0x14f0   :  { %v4837_v62 = vsel %vm671_vm7, %v10524_v61, 0.0 }
0x14f1   :  { %4838 = vadd.xlane.f32.xlu1 %v4837_v62  ;;  %v5679_v7 = vpop.xlane.xlu0 %5678  ;;  %v4676_v18 = vpop.permute.xlu1 %4675 }
0x14f2   :  { %v5680_v11 = vsub.f32 %v5676_v33, %v5679_v7  ;;  %v8117_v7 = vld [vmem:[%s10926_s10 + $0x28] sm:$0xff] }
0x14f3   :  { %v9162_v17 = vpop.eup %9161  ;;  %8877 = vmatprep.subr.mxu1 %v8117_v7 }
0x14f4   :  { %v5681_v16 = vmul.f32 1.442695, %v5680_v11  ;;  %v5004_v20 = vsel %vm671_vm7, %v9162_v17, 0.0  ;;  %8878 = vmatpush3.msra.mxu1 %v8117_v7 }
0x14f5   :  { %8879 = vmatprep.subr.mxu1 %v8116_v8 }
0x14f6   :  { %9167 = vpow2.f32 %v5681_v16  ;;  %8880 = vmatpush3.msra.mxu1 %v8116_v8 }
0x14fb   :  { %v10533_v21 = vpop.eup %9163 }
0x14fc   :  { %v9166_v22 = vpop.eup %9165  ;;  %v5348_v23 = vsel %vm671_vm7, %v10533_v21, 0.0 }
0x14fd   :  { %v5184_v24 = vsel %vm671_vm7, %v9166_v22, 0.0 }
0x1501   :  { %4842 = vrot.lane.b32.xlu0 %v10446_v51, %s9637_s16  ;;  %v5514_v51 = vmul.f32 1.442695, %v5513_v15 }
0x1502   :  { %5354 = vrot.lane.b32.xlu1 %v10440_v50, %s9638_s3 }
0x1503   :  { %9169 = vpow2.f32 %v5514_v51  ;;  %v10537_v5 = vpop.eup %9167 }
0x1504   :  { %v5683_v25 = vsel %vm671_vm7, %v10537_v5, 0.0 }
0x1510   :  { %v10540_v38 = vpop.eup %9169 }
0x1511   :  { %v5516_v26 = vsel %vm671_vm7, %v10540_v38, 0.0 }
0x1520   :  { %5005 = vadd.xlane.f32.xlu0 %v5004_v20 }
0x1522   :  { %v4507_v42 = vpop.xlane.xlu1 %4506 }
0x1523   :  { %9171 = vrcp.f32 %v4507_v42 }
0x1524   :  { %5349 = vadd.xlane.f32.xlu0 %v5348_v23 }
0x1526   :  { %5185 = vadd.xlane.f32.xlu1 %v5184_v24  ;;  %v5010_v55 = vpop.permute.xlu1 %5009 }
0x1528   :  { %5684 = vadd.xlane.f32.xlu0 %v5683_v25 }
0x152a   :  { %5517 = vadd.xlane.f32.xlu1 %v5516_v26 }
0x1530   :  { %v9172_v27 = vpop.eup %9171 }
0x1531   :  { %v4509_v28 = vmul.f32 %v9172_v27, %v9156_v41 }
0x1533   :  { %8801 = vmatmul.mubr.msk.f32.vlgmr.msra.gmra.mxu0 %vm671_vm7, %v4509_v28  ;;  %v10612_v28 = vld [vmem:[%s10927_s8] sm:$0xff] }
0x1534   :  { %8809 = vmatpush3.msra.mxu0 %v4676_v18  ;;  %8810 = vmatprep.mubr.msk.f32.mxu0 %vm9636_vm6, %v9635_v19 }
0x1535   :  { %8818 = vmatprep.subr.mxu0 %v9635_v19 }
0x153b   :  { %5688 = vrot.lane.b32.xlu1 %v10440_v50, %s9639_s23 }
0x153e   :  { %5521 = vrot.lane.b32.xlu0 %v10440_v50, %s9637_s16 }
0x1574   :  { %v4671_v29 = vpop.xlane.xlu0 %4670 }
0x1575   :  { %9173 = vrcp.f32 %v4671_v29  ;;  %v8150_v29 = vld [vmem:[#allocation5 + $0x1] ss:$0 sm:$0xff] }
0x1578   :  { %v4843_v35 = vpop.permute.xlu0 %4842 }
0x157a   :  { %v4839_v30 = vpop.xlane.xlu1 %4838 }
0x157b   :  { %9175 = vrcp.f32 %v4839_v30 }
0x157e   :  { %v5355_v43 = vpop.permute.xlu1 %5354 }
0x1582   :  { %v9174_v31 = vpop.eup %9173 }
0x1583   :  { %v4673_v34 = vmul.f32 %v9174_v31, %v9158_v59 }
0x1585   :  { %8811 = vmatmul.mubr.msk.f32.vlgmr.msra.gmra.mxu0 %vm671_vm7, %v4673_v34 }
0x1586   :  { %8819 = vmatpush3.msra.mxu0 %v4843_v35  ;;  %8820 = vmatprep.mubr.msk.f32.mxu0 %vm9636_vm6, %v9635_v19 }
0x1587   :  { %8828 = vmatprep.subr.mxu0 %v9635_v19 }
0x1588   :  { %v9176_v36 = vpop.eup %9175 }
0x1589   :  { %v4841_v37 = vmul.f32 %v9176_v36, %v10524_v61 }
0x158b   :  { %8821 = vmatmul.mubr.msk.f32.vlgmr.msra.gmra.mxu0 %vm671_vm7, %v4841_v37 }
0x158c   :  { %8829 = vmatpush3.msra.mxu0 %v5010_v55  ;;  %8830 = vmatprep.mubr.msk.f32.mxu0 %vm9636_vm6, %v9635_v19 }
0x158d   :  { %8838 = vmatprep.subr.mxu0 %v9635_v19 }
0x15a9   :  { %v5006_v40 = vpop.xlane.xlu0 %5005 }
0x15aa   :  { %9177 = vrcp.f32 %v5006_v40 }
0x15ad   :  { %v5350_v44 = vpop.xlane.xlu0 %5349 }
0x15af   :  { %v5186_v33 = vpop.xlane.xlu1 %5185 }
0x15b0   :  { %9179 = vrcp.f32 %v5186_v33 }
0x15b1   :  { %9181 = vrcp.f32 %v5350_v44  ;;  %v5685_v48 = vpop.xlane.xlu0 %5684 }
0x15b3   :  { %v5518_v47 = vpop.xlane.xlu1 %5517 }
0x15b4   :  { %9183 = vrcp.f32 %v5518_v47 }
0x15b5   :  { %9185 = vrcp.f32 %v5685_v48 }
0x15b7   :  { %v9178_v32 = vpop.eup %9177  ;;  %v5689_v57 = vpop.permute.xlu1 %5688 }
0x15b8   :  { %v5008_v49 = vmul.f32 %v9178_v32, %v9162_v17 }
0x15ba   :  { %8831 = vmatmul.mubr.msk.f32.vlgmr.msra.gmra.mxu0 %vm671_vm7, %v5008_v49 }
0x15bb   :  { %8839 = vmatpush3.msra.mxu0 %v10440_v50  ;;  %8840 = vmatprep.mubr.msk.f32.mxu0 %vm9636_vm6, %v9635_v19  ;;  %v5522_v50 = vpop.permute.xlu0 %5521 }
0x15bc   :  { %8848 = vmatprep.subr.mxu0 %v9635_v19 }
0x15bd   :  { %v9180_v39 = vpop.eup %9179 }
0x15be   :  { %v5188_v41 = vmul.f32 %v9180_v39, %v9166_v22  ;;  %v9182_v52 = vpop.eup %9181 }
0x15bf   :  { %v5352_v6 = vmul.f32 %v9182_v52, %v10533_v21  ;;  %v5922_v52 = vld [vmem:[#allocation11 + $0x30] sm:$0xff] }
0x15c0   :  { %8841 = vmatmul.mubr.msk.f32.vlgmr.msra.gmra.mxu0 %vm671_vm7, %v5188_v41 }
0x15c1   :  { %8849 = vmatpush3.msra.mxu0 %v5355_v43  ;;  %8850 = vmatprep.mubr.msk.f32.mxu0 %vm9636_vm6, %v9635_v19  ;;  %v9184_v53 = vpop.eup %9183 }
0x15c2   :  { %8858 = vmatprep.subr.mxu0 %v9635_v19  ;;  %v5520_v54 = vmul.f32 %v9184_v53, %v10540_v38  ;;  %v9186_v56 = vpop.eup %9185  ;;  %v5917_v53 = vld [vmem:[#allocation10 + $0x30] sm:$0xff] }
0x15c3   :  { %v5687_v58 = vmul.f32 %v9186_v56, %v10537_v5  ;;  %v5920_v56 = vld [vmem:[#allocation11 + $0x20] sm:$0xff] }
0x15c4   :  { %8851 = vmatmul.mubr.msk.f32.vlgmr.msra.gmra.mxu0 %vm671_vm7, %v5352_v6  ;;  %v5918_v6 = vld [vmem:[#allocation10 + $0x38] sm:$0xff] }
0x15c5   :  { %8859 = vmatpush3.msra.mxu0 %v5522_v50  ;;  %8860 = vmatprep.mubr.msk.f32.mxu0 %vm9636_vm6, %v9635_v19  ;;  %v5921_v50 = vld [vmem:[#allocation11 + $0x28] sm:$0xff] }
0x15c6   :  { %8868 = vmatprep.subr.mxu0 %v9635_v19 }
0x15c8   :  { %8861 = vmatmul.mubr.msk.f32.vlgmr.msra.gmra.mxu0 %vm671_vm7, %v5520_v54  ;;  %v5916_v54 = vld [vmem:[#allocation10 + $0x28] sm:$0xff] }
0x15c9   :  { %8869 = vmatpush3.msra.mxu0 %v5689_v57  ;;  %8870 = vmatprep.mubr.msk.f32.mxu0 %vm9636_vm6, %v9635_v19  ;;  %v10625_v57 = vld [vmem:[%s10927_s8 + $0x8] sm:$0xff] }
0x15ca   :  { %8884 = vmatprep.subr.mxu0 %v5918_v6 }
0x15cc   :  { %8871 = vmatmul.mubr.msk.f32.vlgmr.msra.gmra.mxu0 %vm671_vm7, %v5687_v58  ;;  %v5915_v58 = vld [vmem:[#allocation10 + $0x20] sm:$0xff] }
0x15cd   :  { %8885 = vmatpush3.msra.mxu0 %v5918_v6 }
0x15ce   :  { %8886 = vmatprep.subr.mxu0 %v5917_v53 }
0x15cf   :  { %8887 = vmatpush3.msra.mxu0 %v5917_v53 }
0x15d0   :  { %8888 = vmatprep.subr.mxu0 %v5916_v54 }
0x15d1   :  { %8889 = vmatpush3.msra.mxu0 %v5916_v54 }
0x15d2   :  { %8890 = vmatprep.subr.mxu0 %v5915_v58 }
0x15d3   :  { %8891 = vmatpush3.msra.mxu0 %v5915_v58 }
0x15f3   :  { %v4579_v59 = vpop.f32.mrf.mxu0 }
0x15f5   :  { %v8802_v60 = vpop.f32.mrf.mxu0 }
0x1645   :  { %v4747_v61 = vpop.f32.mrf.mxu0 }
0x1646   :  { %5086 = vrot.lane.b32.xlu0 %v4747_v61, %s9620_s11 }
0x1647   :  { %v8812_v62 = vpop.f32.mrf.mxu0 }
0x164b   :  { %v4914_v63 = vpop.f32.mrf.mxu0 }
0x164c   :  { %5090 = vrot.lane.b32.xlu1 %v4914_v63, %s9615_s6 }
0x164d   :  { %v8822_v0 = vpop.f32.mrf.mxu0 }
0x167a   :  { %v5081_v3 = vpop.f32.mrf.mxu0 }
0x167b   :  { %5094 = vrot.lane.b32.xlu1 %v5081_v3, %s9640_s20 }
0x167c   :  { %v8832_v4 = vpop.f32.mrf.mxu0 }
0x167d   :  { %v8154_v4 = vld [vmem:[#allocation8 + $0x1] ss:$0 sm:$0xff] }
0x1680   :  { %v5258_v9 = vpop.f32.mrf.mxu0 }
0x1682   :  { %v8842_v10 = vpop.f32.mrf.mxu0 }
0x1684   :  { %v5426_v11 = vpop.f32.mrf.mxu0 }
0x1685   :  { %5765 = vrot.lane.b32.xlu0 %v5426_v11, %s9620_s11 }
0x1686   :  { %v8852_v14 = vpop.f32.mrf.mxu0 }
0x1688   :  { %v5593_v15 = vpop.f32.mrf.mxu0 }
0x1689   :  { %5769 = vrot.lane.b32.xlu0 %v5593_v15, %s9615_s6 }
0x168a   :  { %v8862_v16 = vpop.f32.mrf.mxu0 }
0x168c   :  { %v5760_v51 = vpop.f32.mrf.mxu0 }
0x168d   :  { %5773 = vrot.lane.b32.xlu1 %v5760_v51, %s9640_s20 }
0x168e   :  { %v8872_v17 = vpop.f32.mrf.mxu0 }
0x16b8   :  { %v5087_v18 = vpop.permute.xlu0 %5086 }
0x16b9   :  { %v5097_v21 = vsel %vm671_vm7, %v4579_v59, %v5087_v18 }
0x16be   :  { %v5091_v20 = vpop.permute.xlu1 %5090 }
0x16bf   :  { %v5098_v22 = vsel %vm337_vm2, %v5097_v21, %v5091_v20  ;;  %v5928_v20 = vld [vmem:[#allocation13 + $0x38] sm:$0xff]  ;;  %v5927_v21 = vld [vmem:[#allocation13 + $0x30] sm:$0xff] }
0x16c0   :  { %8906 = vmatprep.subr.mxu0 %v5928_v20 }
0x16ed   :  { %v5095_v42 = vpop.permute.xlu1 %5094 }
0x16ee   :  { %v5099_v23 = vsel %vm1351_vm10, %v5098_v22, %v5095_v42  ;;  %v5926_v22 = vld [vmem:[#allocation13 + $0x28] sm:$0xff]  ;;  %v5925_v42 = vld [vmem:[#allocation13 + $0x20] sm:$0xff] }
0x16ef   :  { %8881 = vmatprep.mubr.msk.f32.mxu1 %vm438_vm5, %v5099_v23 }
0x16f7   :  { %v5766_v5 = vpop.permute.xlu0 %5765 }
0x16f8   :  { %v5776_v38 = vsel %vm671_vm7, %v5258_v9, %v5766_v5 }
0x16fb   :  { %v5770_v24 = vpop.permute.xlu0 %5769 }
0x16fc   :  { %v5777_v25 = vsel %vm337_vm2, %v5776_v38, %v5770_v24 }
0x16ff   :  { %v5774_v26 = vpop.permute.xlu1 %5773 }
0x1700   :  { %v5778_v27 = vsel %vm1351_vm10, %v5777_v25, %v5774_v26 }
0x1701   :  { %8882 = vmatmul.mubr.msk.f32.vlgmr.msra.gmra.mxu1 %vm438_vm5, %v5778_v27 }
0x1702   :  { %8903 = vmatprep.mubr.msk.f32.mxu1 %vm438_vm5, %v10612_v28 }
0x17c1   :  { %v8883_v55 = vpop.f32.mrf.mxu1 }
0x17c2   :  { %v5863_v30 = vadd.f32 %v8883_v55, %v8150_v29 }
0x17c3   :  { %v5857_v31 = vpop.f32.mrf.mxu1 }
0x17c4   :  { %v5867_v34 = vadd.f32 %v5863_v30, %v10411_v46  ;;  %v5858_v35 = vadd.f32 %v8150_v29, %v5857_v31 }
0x17c6   :  { %v5866_v36 = vadd.f32 %v5858_v35, %v10409_v45  ;;  %v5875_v37 = vsel %vm438_vm5, %v5867_v34, 0.0  ;;  %v5923_v45 = vld [vmem:[#allocation11 + $0x38] sm:$0xff] }
0x17c7   :  { %5876 = vadd.xlane.f32.xlu1 %v5875_v37  ;;  %8895 = vmatprep.subr.mxu1 %v5923_v45 }
0x17c8   :  { %v5872_v40 = vsel %vm438_vm5, %v5866_v36, 0.0  ;;  %8896 = vmatpush3.msra.mxu1 %v5923_v45 }
0x17c9   :  { %5873 = vadd.xlane.f32.xlu0 %v5872_v40  ;;  %8897 = vmatprep.subr.mxu1 %v5922_v52 }
0x17ca   :  { %8898 = vmatpush3.msra.mxu1 %v5922_v52 }
0x17cb   :  { %8899 = vmatprep.subr.mxu1 %v5921_v50 }
0x17cc   :  { %8900 = vmatpush3.msra.mxu1 %v5921_v50 }
0x17cd   :  { %8901 = vmatprep.subr.mxu1 %v5920_v56 }
0x17ce   :  { %8902 = vmatpush3.msra.mxu1 %v5920_v56 }
0x17cf   :  { %8904 = vmatmul.mubr.msk.f32.vlgmr.msra.gmra.mxu1 %vm438_vm5, %v10625_v57  ;;  %8917 = vmatprep.subr.mxu1 %v9635_v19 }
0x17d0   :  { %8919 = vmatprep.mubr.msk.f32.mxu1 %vm9636_vm6, %v9635_v19 }
0x1850   :  { %v5877_v43 = vpop.xlane.xlu1 %5876 }
0x1851   :  { %v5879_v44 = vmul.f32 0.03125, %v5877_v43 }
0x1852   :  { %v5874_v33 = vpop.xlane.xlu0 %5873 }
0x1853   :  { %v5878_v47 = vmul.f32 0.03125, %v5874_v33  ;;  %v5881_v32 = vsub.f32 %v5867_v34, %v5879_v44 }
0x1855   :  { %v5880_v48 = vsub.f32 %v5866_v36, %v5878_v47  ;;  %v5883_v41 = vmul.f32 %v5881_v32, %v5881_v32 }
0x1857   :  { %v5882_v49 = vmul.f32 %v5880_v48, %v5880_v48  ;;  %v5887_v46 = vsel %vm438_vm5, %v5883_v41, 0.0 }
0x1859   :  { %v5884_v39 = vsel %vm438_vm5, %v5882_v49, 0.0 }
0x185a   :  { %5885 = vadd.xlane.f32.xlu0 %v5884_v39 }
0x185e   :  { %5888 = vadd.xlane.f32.xlu0 %v5887_v46 }
0x188f   :  { %v8905_v15 = vpop.f32.mrf.mxu1 }
0x1891   :  { %v6083_v16 = vpop.f32.mrf.mxu1 }
0x1892   :  { %6331 = vrot.lane.b32.xlu1 %v6083_v16, %s9638_s3  ;;  %8918 = vmatpush3.xpose.msk.msra.mxu1 %vm671_vm7, %v6083_v16 }
0x1893   :  { %8927 = vmatprep.subr.mxu1 %v9635_v19 }
0x1896   :  { %6499 = vrot.lane.b32.xlu1 %v6083_v16, %s9637_s16 }
0x18e3   :  { %v5886_v59 = vpop.xlane.xlu0 %5885 }
0x18e4   :  { %v5890_v60 = vmul.f32 0.03125, %v5886_v59 }
0x18e6   :  { %v5892_v61 = vadd.f32 1e-05, %v5890_v60 }
0x18e7   :  { %v5889_v62 = vpop.xlane.xlu0 %5888 }
0x18e8   :  { %9187 = vrsqrt.f32 %v5892_v61  ;;  %v5891_v63 = vmul.f32 0.03125, %v5889_v62 }
0x18ea   :  { %v5893_v0 = vadd.f32 1e-05, %v5891_v63 }
0x18ec   :  { %9189 = vrsqrt.f32 %v5893_v0 }
0x18f5   :  { %v9188_v1 = vpop.eup %9187 }
0x18f6   :  { %v5896_v3 = vmul.f32 %v9188_v1, %v5880_v48 }
0x18f8   :  { %v5904_v7 = vmul.f32 %v8153_v2, %v5896_v3 }
0x18f9   :  { %v9190_v8 = vpop.eup %9189 }
0x18fa   :  { %v5897_v9 = vmul.f32 %v9190_v8, %v5881_v32  ;;  %v10632_v10 = vadd.f32 %v8154_v4, %v5904_v7 }
0x18fc   :  { %v5905_v11 = vmul.f32 %v8153_v2, %v5897_v9  ;;  %8892 = vmatprep.mubr.msk.f32.mxu0 %vm438_vm5, %v10632_v10 }
0x18fe   :  { %v10636_v14 = vadd.f32 %v8154_v4, %v5905_v11 }
0x1900   :  { %8893 = vmatmul.mubr.msk.f32.vlgmr.msra.gmra.mxu0 %vm438_vm5, %v10636_v14 }
0x1901   :  { %8914 = vmatprep.mubr.msk.f32.mxu0 %vm438_vm5, %v10612_v28  ;;  %8907 = vmatpush3.msra.mxu0 %v5928_v20 }
0x1902   :  { %8908 = vmatprep.subr.mxu0 %v5927_v21 }
0x1903   :  { %8909 = vmatpush3.msra.mxu0 %v5927_v21 }
0x1904   :  { %v6332_v18 = vpop.permute.xlu1 %6331  ;;  %8910 = vmatprep.subr.mxu0 %v5926_v22 }
0x1905   :  { %8911 = vmatpush3.msra.mxu0 %v5926_v22 }
0x1906   :  { %8912 = vmatprep.subr.mxu0 %v5925_v42 }
0x1907   :  { %8913 = vmatpush3.msra.mxu0 %v5925_v42 }
0x1908   :  { %8915 = vmatmul.mubr.msk.f32.vlgmr.msra.gmra.mxu0 %vm438_vm5, %v10625_v57  ;;  %8922 = vmatprep.subr.mxu0 %v9635_v19  ;;  %v6500_v23 = vpop.permute.xlu1 %6499 }
0x1909   :  { %8924 = vmatprep.mubr.msk.f32.mxu0 %vm9636_vm6, %v9635_v19 }
0x19c0   :  { %v8894_v51 = vpop.f32.mrf.mxu0 }
0x19c2   :  { %v6008_v17 = vpop.f32.mrf.mxu0 }
0x19c3   :  { %6497 = vrot.lane.b32.xlu1 %v6008_v17, %s9637_s16  ;;  %6329 = vrot.lane.b32.xlu0 %v6008_v17, %s9638_s3 }
0x19c4   :  { %8920 = vmatmul.mubr.msk.f32.vlgmr.msra.gmra.mxu1 %vm671_vm7, %v6008_v17 }
0x19c5   :  { %8928 = vmatpush3.xpose.msk.msra.mxu1 %vm671_vm7, %v6332_v18  ;;  %8929 = vmatprep.mubr.msk.f32.mxu1 %vm9636_vm6, %v9635_v19 }
0x19c6   :  { %8937 = vmatprep.subr.mxu1 %v9635_v19 }
0x19c7   :  { %6664 = vrot.lane.b32.xlu1 %v6008_v17, %s9639_s23  ;;  %6666 = vrot.lane.b32.xlu0 %v6083_v16, %s9639_s23 }
0x19c8   :  { %v10699_v40 = vpop.f32.mrf.mxu0 }
0x19ca   :  { %v10701_v43 = vpop.f32.mrf.mxu0 }
0x19cb   :  { %7008 = vrot.lane.b32.xlu1 %v8894_v51, %s9638_s3  ;;  %7010 = vrot.lane.b32.xlu0 %v8905_v15, %s9638_s3 }
0x19cc   :  { %8923 = vmatpush3.msra.mxu0 %v10701_v43 }
0x19cd   :  { %8932 = vmatprep.subr.mxu0 %v9635_v19 }
0x19cf   :  { %7176 = vrot.lane.b32.xlu1 %v8894_v51, %s9637_s16  ;;  %7178 = vrot.lane.b32.xlu0 %v8905_v15, %s9637_s16 }
0x19d3   :  { %7343 = vrot.lane.b32.xlu1 %v8894_v51, %s9639_s23  ;;  %7345 = vrot.lane.b32.xlu0 %v8905_v15, %s9639_s23 }
0x1a35   :  { %v6498_v5 = vpop.permute.xlu1 %6497  ;;  %v6330_v24 = vpop.permute.xlu0 %6329 }
0x1a36   :  { %8930 = vmatmul.mubr.msk.f32.vlgmr.msra.gmra.mxu1 %vm671_vm7, %v6330_v24 }
0x1a37   :  { %8938 = vmatpush3.xpose.msk.msra.mxu1 %vm671_vm7, %v6500_v23  ;;  %8939 = vmatprep.mubr.msk.f32.mxu1 %vm9636_vm6, %v9635_v19 }
0x1a38   :  { %8947 = vmatprep.subr.mxu1 %v9635_v19 }
0x1a39   :  { %v6667_v38 = vpop.permute.xlu0 %6666  ;;  %v6665_v25 = vpop.permute.xlu1 %6664 }
0x1a3a   :  { %8940 = vmatmul.mubr.msk.f32.vlgmr.msra.gmra.mxu1 %vm671_vm7, %v6498_v5 }
0x1a3b   :  { %8948 = vmatpush3.xpose.msk.msra.mxu1 %vm671_vm7, %v6667_v38  ;;  %8949 = vmatprep.mubr.msk.f32.mxu1 %vm9636_vm6, %v9635_v19 }
0x1a3c   :  { %8957 = vmatprep.subr.mxu1 %v9635_v19 }
0x1a3d   :  { %v7011_v26 = vpop.permute.xlu0 %7010  ;;  %v7009_v27 = vpop.permute.xlu1 %7008 }
0x1a3e   :  { %8950 = vmatmul.mubr.msk.f32.vlgmr.msra.gmra.mxu1 %vm671_vm7, %v6665_v25 }
0x1a3f   :  { %8958 = vmatpush3.xpose.msk.msra.mxu1 %vm671_vm7, %v8905_v15  ;;  %8959 = vmatprep.mubr.msk.f32.mxu1 %vm9636_vm6, %v9635_v19 }
0x1a40   :  { %8967 = vmatprep.subr.mxu1 %v9635_v19 }
0x1a41   :  { %v7179_v28 = vpop.permute.xlu0 %7178  ;;  %v7177_v29 = vpop.permute.xlu1 %7176 }
0x1a42   :  { %8960 = vmatmul.mubr.msk.f32.vlgmr.msra.gmra.mxu1 %vm671_vm7, %v8894_v51 }
0x1a43   :  { %8968 = vmatpush3.xpose.msk.msra.mxu1 %vm671_vm7, %v7011_v26  ;;  %8969 = vmatprep.mubr.msk.f32.mxu1 %vm9636_vm6, %v9635_v19 }
0x1a44   :  { %8977 = vmatprep.subr.mxu1 %v9635_v19 }
0x1a45   :  { %v7346_v55 = vpop.permute.xlu0 %7345  ;;  %v7344_v30 = vpop.permute.xlu1 %7343 }
0x1a46   :  { %8970 = vmatmul.mubr.msk.f32.vlgmr.msra.gmra.mxu1 %vm671_vm7, %v7009_v27 }
0x1a47   :  { %8978 = vmatpush3.xpose.msk.msra.mxu1 %vm671_vm7, %v7179_v28  ;;  %8979 = vmatprep.mubr.msk.f32.mxu1 %vm9636_vm6, %v9635_v19 }
0x1a48   :  { %8987 = vmatprep.subr.mxu1 %v9635_v19 }
0x1a4a   :  { %8980 = vmatmul.mubr.msk.f32.vlgmr.msra.gmra.mxu1 %vm671_vm7, %v7177_v29 }
0x1a4b   :  { %8988 = vmatpush3.xpose.msk.msra.mxu1 %vm671_vm7, %v7346_v55  ;;  %8989 = vmatprep.mubr.msk.f32.mxu1 %vm9636_vm6, %v9635_v19 }
0x1a4e   :  { %8990 = vmatmul.mubr.msk.f32.vlgmr.msra.gmra.mxu1 %vm671_vm7, %v7344_v30 }
0x1a84   :  { %v6239_v31 = vpop.f32.mrf.mxu1 }
0x1a85   :  { %v6243_v34 = vsel %vm2506_vm11, -1e+20, %v6239_v31 }
0x1a86   :  { %v6244_v35 = vmul.f32 0.17677669, %v6243_v34  ;;  %v8921_v36 = vpop.f32.mrf.mxu1 }
0x1a88   :  { %v6245_v37 = vsel %vm671_vm7, %v6244_v35, -inf }
0x1a89   :  { %6246 = vmax.xlane.f32.xlu0 %v6245_v37 }
0x1af6   :  { %v6403_v44 = vpop.f32.mrf.mxu1 }
0x1af7   :  { %v6407_v33 = vsel %vm2506_vm11, -1e+20, %v6403_v44 }
0x1af8   :  { %v6408_v47 = vmul.f32 0.17677669, %v6407_v33  ;;  %v8931_v32 = vpop.f32.mrf.mxu1 }
0x1afa   :  { %v6571_v48 = vpop.f32.mrf.mxu1  ;;  %v6409_v49 = vsel %vm671_vm7, %v6408_v47, -inf }
0x1afb   :  { %v6575_v39 = vsel %vm2506_vm11, -1e+20, %v6571_v48  ;;  %6410 = vmax.xlane.f32.xlu1 %v6409_v49 }
0x1afc   :  { %v6576_v41 = vmul.f32 0.17677669, %v6575_v39  ;;  %v8941_v46 = vpop.f32.mrf.mxu1 }
0x1afe   :  { %v6738_v45 = vpop.f32.mrf.mxu1  ;;  %v6577_v52 = vsel %vm671_vm7, %v6576_v41, -inf }
0x1aff   :  { %v6742_v6 = vsel %vm2506_vm11, -1e+20, %v6738_v45  ;;  %6578 = vmax.xlane.f32.xlu0 %v6577_v52 }
0x1b00   :  { %v6743_v53 = vmul.f32 0.17677669, %v6742_v6  ;;  %v8951_v50 = vpop.f32.mrf.mxu1 }
0x1b02   :  { %v6918_v54 = vpop.f32.mrf.mxu1  ;;  %v6744_v56 = vsel %vm671_vm7, %v6743_v53, -inf }
0x1b03   :  { %v6922_v57 = vsel %vm3194_vm12, -1e+20, %v6918_v54  ;;  %6745 = vmax.xlane.f32.xlu0 %v6744_v56 }
0x1b04   :  { %v6923_v58 = vmul.f32 0.17677669, %v6922_v57  ;;  %v8961_v59 = vpop.f32.mrf.mxu1 }
0x1b06   :  { %v7082_v60 = vpop.f32.mrf.mxu1  ;;  %v6924_v61 = vsel %vm671_vm7, %v6923_v58, -inf }
0x1b07   :  { %v7086_v62 = vsel %vm3194_vm12, -1e+20, %v7082_v60  ;;  %6925 = vmax.xlane.f32.xlu1 %v6924_v61 }
0x1b08   :  { %v7087_v12 = vmul.f32 0.17677669, %v7086_v62  ;;  %v8971_v63 = vpop.f32.mrf.mxu1 }
0x1b0a   :  { %v7250_v0 = vpop.f32.mrf.mxu1  ;;  %v7088_v1 = vsel %vm671_vm7, %v7087_v12, -inf }
0x1b0b   :  { %v7254_v2 = vsel %vm3194_vm12, -1e+20, %v7250_v0  ;;  %7089 = vmax.xlane.f32.xlu0 %v7088_v1 }
0x1b0c   :  { %v7255_v3 = vmul.f32 0.17677669, %v7254_v2  ;;  %v8981_v4 = vpop.f32.mrf.mxu1 }
0x1b0e   :  { %v7417_v7 = vpop.f32.mrf.mxu1  ;;  %v7256_v8 = vsel %vm671_vm7, %v7255_v3, -inf }
0x1b0f   :  { %v7421_v9 = vsel %vm3194_vm12, -1e+20, %v7417_v7  ;;  %7257 = vmax.xlane.f32.xlu1 %v7256_v8 }
0x1b10   :  { %v7422_v11 = vmul.f32 0.17677669, %v7421_v9  ;;  %v8991_v15 = vpop.f32.mrf.mxu1 }
0x1b12   :  { %v7423_v16 = vsel %vm671_vm7, %v7422_v11, -inf  ;;  %v6247_v51 = vpop.xlane.xlu0 %6246 }
0x1b13   :  { %7424 = vmax.xlane.f32.xlu0 %v7423_v16  ;;  %v6248_v17 = vsub.f32 %v6244_v35, %v6247_v51 }
0x1b15   :  { %v6249_v18 = vmul.f32 1.442695, %v6248_v17 }
0x1b17   :  { %9191 = vpow2.f32 %v6249_v18 }
0x1b20   :  { %6421 = vrot.lane.b32.xlu1 %v10701_v43, %s9638_s3 }
0x1b24   :  { %v9192_v20 = vpop.eup %9191 }
0x1b25   :  { %v6251_v21 = vsel %vm671_vm7, %v9192_v20, 0.0 }
0x1b44   :  { %6252 = vadd.xlane.f32.xlu1 %v6251_v21 }
0x1b55   :  { %6755 = vrot.lane.b32.xlu1 %v10701_v43, %s9639_s23 }
0x1b84   :  { %v6411_v13 = vpop.xlane.xlu1 %6410 }
0x1b85   :  { %v6412_v22 = vsub.f32 %v6408_v47, %v6411_v13 }
0x1b87   :  { %v6413_v42 = vmul.f32 1.442695, %v6412_v22 }
0x1b88   :  { %v6579_v23 = vpop.xlane.xlu0 %6578 }
0x1b89   :  { %9193 = vpow2.f32 %v6413_v42  ;;  %v6580_v5 = vsub.f32 %v6576_v41, %v6579_v23 }
0x1b8b   :  { %v6581_v24 = vmul.f32 1.442695, %v6580_v5 }
0x1b8c   :  { %v6746_v28 = vpop.xlane.xlu0 %6745 }
0x1b8d   :  { %9195 = vpow2.f32 %v6581_v24  ;;  %v6747_v29 = vsub.f32 %v6743_v53, %v6746_v28  ;;  %v5933_v28 = vld [vmem:[#allocation14 + $0x38] sm:$0xff] }
0x1b8e   :  { %8997 = vmatprep.subr.mxu1 %v5933_v28 }
0x1b8f   :  { %v6748_v34 = vmul.f32 1.442695, %v6747_v29  ;;  %v5932_v29 = vld [vmem:[#allocation14 + $0x30] sm:$0xff]  ;;  %8998 = vmatpush3.msra.mxu1 %v5933_v28 }
0x1b90   :  { %v6926_v55 = vpop.xlane.xlu1 %6925  ;;  %8999 = vmatprep.subr.mxu1 %v5932_v29 }
0x1b91   :  { %v6927_v31 = vsub.f32 %v6923_v58, %v6926_v55  ;;  %9197 = vpow2.f32 %v6748_v34  ;;  %9000 = vmatpush3.msra.mxu1 %v5932_v29 }
0x1b93   :  { %v6928_v44 = vmul.f32 1.442695, %v6927_v31 }
0x1b94   :  { %v7090_v30 = vpop.xlane.xlu0 %7089 }
0x1b95   :  { %v7091_v35 = vsub.f32 %v7087_v12, %v7090_v30  ;;  %9199 = vpow2.f32 %v6928_v44  ;;  %v5930_v30 = vld [vmem:[#allocation14 + $0x20] sm:$0xff] }
0x1b96   :  { %v9194_v38 = vpop.eup %9193 }
0x1b97   :  { %v6415_v25 = vsel %vm671_vm7, %v9194_v38, 0.0  ;;  %v7092_v47 = vmul.f32 1.442695, %v7091_v35 }
0x1b98   :  { %6416 = vadd.xlane.f32.xlu0 %v6415_v25  ;;  %v7258_v36 = vpop.xlane.xlu1 %7257 }
0x1b99   :  { %v7259_v33 = vsub.f32 %v7255_v3, %v7258_v36  ;;  %9201 = vpow2.f32 %v7092_v47 }
0x1b9a   :  { %v10732_v26 = vpop.eup %9195 }
0x1b9b   :  { %v6583_v27 = vsel %vm671_vm7, %v10732_v26, 0.0  ;;  %v7260_v48 = vmul.f32 1.442695, %v7259_v33 }
0x1b9c   :  { %6584 = vadd.xlane.f32.xlu1 %v6583_v27  ;;  %v7425_v37 = vpop.xlane.xlu0 %7424  ;;  %v6422_v39 = vpop.permute.xlu1 %6421 }
0x1b9d   :  { %v7426_v32 = vsub.f32 %v7422_v11, %v7425_v37  ;;  %9203 = vpow2.f32 %v7260_v48 }
0x1b9f   :  { %v7427_v49 = vmul.f32 1.442695, %v7426_v32 }
0x1ba1   :  { %9205 = vpow2.f32 %v7427_v49 }
0x1bad   :  { %7100 = vrot.lane.b32.xlu1 %v10699_v40, %s9638_s3 }
0x1bae   :  { %6588 = vrot.lane.b32.xlu0 %v10701_v43, %s9637_s16  ;;  %v9198_v43 = vpop.eup %9197 }
0x1baf   :  { %v9200_v41 = vpop.eup %9199  ;;  %v6750_v46 = vsel %vm671_vm7, %v9198_v43, 0.0 }
0x1bb0   :  { %v10741_v45 = vpop.eup %9201  ;;  %v6930_v50 = vsel %vm671_vm7, %v9200_v41, 0.0 }
0x1bb1   :  { %v10743_v6 = vpop.eup %9203  ;;  %v7094_v53 = vsel %vm671_vm7, %v10741_v45, 0.0 }
0x1bb2   :  { %v10748_v54 = vpop.eup %9205  ;;  %v7262_v57 = vsel %vm671_vm7, %v10743_v6, 0.0 }
0x1bb3   :  { %v7429_v56 = vsel %vm671_vm7, %v10748_v54, 0.0 }
0x1bcd   :  { %6751 = vadd.xlane.f32.xlu0 %v6750_v46  ;;  %v6253_v52 = vpop.xlane.xlu1 %6252 }
0x1bce   :  { %9207 = vrcp.f32 %v6253_v52 }
0x1bd1   :  { %7095 = vadd.xlane.f32.xlu0 %v7094_v53  ;;  %6931 = vadd.xlane.f32.xlu1 %v6930_v50  ;;  %v6756_v60 = vpop.permute.xlu1 %6755 }
0x1bd5   :  { %7430 = vadd.xlane.f32.xlu0 %v7429_v56  ;;  %7263 = vadd.xlane.f32.xlu1 %v7262_v57  ;;  %v8185_v56 = vld [vmem:[#allocation16 + $0x1] ss:$0 sm:$0xff] }
0x1bdb   :  { %v9208_v58 = vpop.eup %9207 }
0x1bdc   :  { %v6255_v59 = vmul.f32 %v9208_v58, %v9192_v20 }
0x1bde   :  { %8925 = vmatmul.mubr.msk.f32.vlgmr.msra.gmra.mxu0 %vm671_vm7, %v6255_v59 }
0x1bdf   :  { %8933 = vmatpush3.msra.mxu0 %v6422_v39  ;;  %8934 = vmatprep.mubr.msk.f32.mxu0 %vm9636_vm6, %v9635_v19 }
0x1be0   :  { %8942 = vmatprep.subr.mxu0 %v9635_v19 }
0x1be6   :  { %7434 = vrot.lane.b32.xlu1 %v10699_v40, %s9639_s23 }
0x1beb   :  { %7267 = vrot.lane.b32.xlu0 %v10699_v40, %s9637_s16 }
0x1c21   :  { %v6417_v61 = vpop.xlane.xlu0 %6416 }
0x1c22   :  { %9209 = vrcp.f32 %v6417_v61 }
0x1c25   :  { %v6585_v62 = vpop.xlane.xlu1 %6584  ;;  %v6589_v0 = vpop.permute.xlu0 %6588 }
0x1c26   :  { %9211 = vrcp.f32 %v6585_v62 }
0x1c29   :  { %v7101_v3 = vpop.permute.xlu1 %7100 }
0x1c2f   :  { %v9210_v12 = vpop.eup %9209 }
0x1c30   :  { %v6419_v63 = vmul.f32 %v9210_v12, %v9194_v38 }
0x1c32   :  { %8935 = vmatmul.mubr.msk.f32.vlgmr.msra.gmra.mxu0 %vm671_vm7, %v6419_v63 }
0x1c33   :  { %v9212_v1 = vpop.eup %9211  ;;  %8943 = vmatpush3.msra.mxu0 %v6589_v0  ;;  %8944 = vmatprep.mubr.msk.f32.mxu0 %vm9636_vm6, %v9635_v19 }
0x1c34   :  { %8952 = vmatprep.subr.mxu0 %v9635_v19  ;;  %v6587_v2 = vmul.f32 %v9212_v1, %v10732_v26 }
0x1c36   :  { %8945 = vmatmul.mubr.msk.f32.vlgmr.msra.gmra.mxu0 %vm671_vm7, %v6587_v2 }
0x1c37   :  { %8953 = vmatpush3.msra.mxu0 %v6756_v60  ;;  %8954 = vmatprep.mubr.msk.f32.mxu0 %vm9636_vm6, %v9635_v19 }
0x1c38   :  { %8962 = vmatprep.subr.mxu0 %v9635_v19 }
0x1c56   :  { %v6752_v4 = vpop.xlane.xlu0 %6751 }
0x1c57   :  { %9213 = vrcp.f32 %v6752_v4 }
0x1c5a   :  { %v6932_v7 = vpop.xlane.xlu1 %6931  ;;  %v7096_v8 = vpop.xlane.xlu0 %7095 }
0x1c5b   :  { %9215 = vrcp.f32 %v6932_v7 }
0x1c5c   :  { %9217 = vrcp.f32 %v7096_v8 }
0x1c5e   :  { %v7264_v9 = vpop.xlane.xlu1 %7263  ;;  %v7431_v11 = vpop.xlane.xlu0 %7430 }
0x1c5f   :  { %9219 = vrcp.f32 %v7264_v9 }
0x1c60   :  { %9221 = vrcp.f32 %v7431_v11 }
0x1c62   :  { %v7435_v42 = vpop.permute.xlu1 %7434 }
0x1c64   :  { %v9214_v15 = vpop.eup %9213 }
0x1c65   :  { %v6754_v16 = vmul.f32 %v9214_v15, %v9198_v43  ;;  %v7663_v15 = vld [vmem:[#allocation20 + $0x30] sm:$0xff] }
0x1c67   :  { %8955 = vmatmul.mubr.msk.f32.vlgmr.msra.gmra.mxu0 %vm671_vm7, %v6754_v16  ;;  %v7662_v16 = vld [vmem:[#allocation20 + $0x28] sm:$0xff] }
0x1c68   :  { %8963 = vmatpush3.msra.mxu0 %v10699_v40  ;;  %8964 = vmatprep.mubr.msk.f32.mxu0 %vm9636_vm6, %v9635_v19  ;;  %v9216_v51 = vpop.eup %9215  ;;  %v7268_v40 = vpop.permute.xlu0 %7267 }
0x1c69   :  { %8972 = vmatprep.subr.mxu0 %v9635_v19  ;;  %v6934_v17 = vmul.f32 %v9216_v51, %v9200_v41  ;;  %v9218_v18 = vpop.eup %9217  ;;  %v7661_v51 = vld [vmem:[#allocation20 + $0x20] sm:$0xff] }
0x1c6a   :  { %v7098_v20 = vmul.f32 %v9218_v18, %v10741_v45  ;;  %v8199_v18 = vld [vmem:[%s10887_s22 + $0x70] sm:$0xff] }
0x1c6b   :  { %8965 = vmatmul.mubr.msk.f32.vlgmr.msra.gmra.mxu0 %vm671_vm7, %v6934_v17  ;;  %v8200_v17 = vld [vmem:[%s10887_s22 + $0x78] sm:$0xff] }
0x1c6c   :  { %8973 = vmatpush3.msra.mxu0 %v7101_v3  ;;  %8974 = vmatprep.mubr.msk.f32.mxu0 %vm9636_vm6, %v9635_v19  ;;  %v9220_v21 = vpop.eup %9219 }
0x1c6d   :  { %8982 = vmatprep.subr.mxu0 %v9635_v19  ;;  %v7266_v13 = vmul.f32 %v9220_v21, %v10743_v6  ;;  %v9222_v22 = vpop.eup %9221  ;;  %v8197_v21 = vld [vmem:[%s10887_s22 + $0x60] sm:$0xff] }
0x1c6e   :  { %v7433_v23 = vmul.f32 %v9222_v22, %v10748_v54 }
0x1c6f   :  { %8975 = vmatmul.mubr.msk.f32.vlgmr.msra.gmra.mxu0 %vm671_vm7, %v7098_v20  ;;  %v8198_v20 = vld [vmem:[%s10887_s22 + $0x68] sm:$0xff] }
0x1c70   :  { %8983 = vmatpush3.msra.mxu0 %v7268_v40  ;;  %8984 = vmatprep.mubr.msk.f32.mxu0 %vm9636_vm6, %v9635_v19 }
0x1c71   :  { %8992 = vmatprep.subr.mxu0 %v9635_v19 }
0x1c73   :  { %8985 = vmatmul.mubr.msk.f32.vlgmr.msra.gmra.mxu0 %vm671_vm7, %v7266_v13 }
0x1c74   :  { %8993 = vmatpush3.msra.mxu0 %v7435_v42  ;;  %8994 = vmatprep.mubr.msk.f32.mxu0 %vm9636_vm6, %v9635_v19  ;;  %v5931_v19 = vld [vmem:[#allocation14 + $0x28] sm:$0xff] }
0x1c75   :  { %9001 = vmatprep.subr.mxu1 %v5931_v19 }
0x1c76   :  { %9002 = vmatpush3.msra.mxu1 %v5931_v19 }
0x1c77   :  { %8995 = vmatmul.mubr.msk.f32.vlgmr.msra.gmra.mxu0 %vm671_vm7, %v7433_v23  ;;  %9003 = vmatprep.subr.mxu1 %v5930_v30 }
0x1c78   :  { %9004 = vmatpush3.msra.mxu1 %v5930_v30 }
0x1c79   :  { %9019 = vmatprep.subr.mxu1 %v8200_v17 }
0x1c9e   :  { %v6325_v5 = vpop.f32.mrf.mxu0 }
0x1ca0   :  { %v8926_v24 = vpop.f32.mrf.mxu0 }
0x1cf2   :  { %v6493_v38 = vpop.f32.mrf.mxu0 }
0x1cf3   :  { %6832 = vrot.lane.b32.xlu0 %v6493_v38, %s9620_s11  ;;  %v8188_v38 = vld [vmem:[#allocation17 + $0x1] ss:$0 sm:$0xff] }
0x1cf4   :  { %v8936_v25 = vpop.f32.mrf.mxu0 }
0x1cf6   :  { %v6660_v26 = vpop.f32.mrf.mxu0 }
0x1cf7   :  { %6836 = vrot.lane.b32.xlu1 %v6660_v26, %s9615_s6  ;;  %v8189_v26 = vld [vmem:[#allocation19 + $0x1] ss:$0 sm:$0xff] }
0x1cf8   :  { %v8946_v27 = vpop.f32.mrf.mxu0 }
0x1d27   :  { %v6827_v55 = vpop.f32.mrf.mxu0 }
0x1d28   :  { %6840 = vrot.lane.b32.xlu1 %v6827_v55, %s9640_s20 }
0x1d29   :  { %v8956_v31 = vpop.f32.mrf.mxu0 }
0x1d2a   :  { %v8196_v31 = vld [vmem:[%s10887_s22 + $0x58] sm:$0xff] }
0x1d2b   :  { %v7004_v34 = vpop.f32.mrf.mxu0 }
0x1d2d   :  { %v8966_v35 = vpop.f32.mrf.mxu0 }
0x1d2e   :  { %v8194_v35 = vld [vmem:[%s10887_s22 + $0x48] sm:$0xff] }
0x1d2f   :  { %v7172_v36 = vpop.f32.mrf.mxu0 }
0x1d30   :  { %7511 = vrot.lane.b32.xlu0 %v7172_v36, %s9620_s11  ;;  %v8193_v36 = vld [vmem:[%s10887_s22 + $0x40] sm:$0xff] }
0x1d31   :  { %v8976_v37 = vpop.f32.mrf.mxu0 }
0x1d32   :  { %v8190_v37 = vld [vmem:[#allocation22 + $0x1] ss:$0 sm:$0xff] }
0x1d33   :  { %v7339_v44 = vpop.f32.mrf.mxu0 }
0x1d34   :  { %7515 = vrot.lane.b32.xlu0 %v7339_v44, %s9615_s6 }
0x1d35   :  { %v8986_v33 = vpop.f32.mrf.mxu0 }
0x1d37   :  { %v7506_v47 = vpop.f32.mrf.mxu0 }
0x1d38   :  { %7519 = vrot.lane.b32.xlu1 %v7506_v47, %s9640_s20 }
0x1d39   :  { %v8996_v32 = vpop.f32.mrf.mxu0 }
0x1d65   :  { %v6833_v48 = vpop.permute.xlu0 %6832 }
0x1d66   :  { %v6843_v43 = vsel %vm671_vm7, %v6325_v5, %v6833_v48 }
0x1d69   :  { %v6837_v49 = vpop.permute.xlu1 %6836 }
0x1d6a   :  { %v6844_v39 = vsel %vm337_vm2, %v6843_v43, %v6837_v49  ;;  %v8201_v43 = vld [vmem:[#allocation23 + $0x1] ss:$0 sm:$0xff] }
0x1d9a   :  { %v6841_v41 = vpop.permute.xlu1 %6840 }
0x1d9b   :  { %v6845_v46 = vsel %vm1351_vm10, %v6844_v39, %v6841_v41 }
0x1d9c   :  { %9005 = vmatprep.mubr.msk.f32.mxu1 %vm438_vm5, %v6845_v46 }
0x1da2   :  { %v7512_v45 = vpop.permute.xlu0 %7511 }
0x1da3   :  { %v7522_v6 = vsel %vm671_vm7, %v7004_v34, %v7512_v45  ;;  %v8195_v34 = vld [vmem:[%s10887_s22 + $0x50] sm:$0xff] }
0x1da6   :  { %v7516_v52 = vpop.permute.xlu0 %7515 }
0x1da7   :  { %v7523_v53 = vsel %vm337_vm2, %v7522_v6, %v7516_v52 }
0x1daa   :  { %v7520_v50 = vpop.permute.xlu1 %7519 }
0x1dab   :  { %v7524_v54 = vsel %vm1351_vm10, %v7523_v53, %v7520_v50 }
0x1dac   :  { %9006 = vmatmul.mubr.msk.f32.vlgmr.msra.gmra.mxu1 %vm438_vm5, %v7524_v54 }
0x1dad   :  { %9020 = vmatpush3.msra.mxu1 %v8200_v17 }
0x1dae   :  { %9021 = vmatprep.subr.mxu1 %v8199_v18 }
0x1daf   :  { %9022 = vmatpush3.msra.mxu1 %v8199_v18 }
0x1db0   :  { %9023 = vmatprep.subr.mxu1 %v8198_v20 }
0x1db1   :  { %9024 = vmatpush3.msra.mxu1 %v8198_v20  ;;  %v8205_v20 = vld [vmem:[#allocation26 + $0x1] ss:$0 sm:$0xff] }
0x1db2   :  { %9025 = vmatprep.subr.mxu1 %v8197_v21 }
0x1db3   :  { %9026 = vmatpush3.msra.mxu1 %v8197_v21 }
0x1db4   :  { %9027 = vmatprep.subr.mxu1 %v8196_v31 }
0x1db5   :  { %9028 = vmatpush3.msra.mxu1 %v8196_v31 }
0x1db6   :  { %9029 = vmatprep.subr.mxu1 %v8195_v34 }
0x1db7   :  { %9030 = vmatpush3.msra.mxu1 %v8195_v34 }
0x1db8   :  { %9031 = vmatprep.subr.mxu1 %v8194_v35 }
0x1db9   :  { %9032 = vmatpush3.msra.mxu1 %v8194_v35 }
0x1dba   :  { %9033 = vmatprep.subr.mxu1 %v8193_v36 }
0x1dbb   :  { %9034 = vmatpush3.msra.mxu1 %v8193_v36 }
0x1e6c   :  { %v9007_v57 = vpop.f32.mrf.mxu1 }
0x1e6d   :  { %v7609_v58 = vadd.f32 %v9007_v57, %v8185_v56 }
0x1e6e   :  { %v7603_v59 = vpop.f32.mrf.mxu1 }
0x1e6f   :  { %v7613_v60 = vadd.f32 %v7609_v58, %v10636_v14  ;;  %v7604_v61 = vadd.f32 %v8185_v56, %v7603_v59 }
0x1e71   :  { %v7612_v62 = vadd.f32 %v7604_v61, %v10632_v10  ;;  %v7621_v12 = vsel %vm438_vm5, %v7613_v60, 0.0  ;;  %v7664_v10 = vld [vmem:[#allocation20 + $0x38] sm:$0xff] }
0x1e72   :  { %7622 = vadd.xlane.f32.xlu1 %v7621_v12  ;;  %9008 = vmatprep.subr.mxu0 %v7664_v10 }
0x1e73   :  { %v7618_v63 = vsel %vm438_vm5, %v7612_v62, 0.0  ;;  %9009 = vmatpush3.msra.mxu0 %v7664_v10 }
0x1e74   :  { %7619 = vadd.xlane.f32.xlu0 %v7618_v63  ;;  %9010 = vmatprep.subr.mxu0 %v7663_v15 }
0x1e75   :  { %9011 = vmatpush3.msra.mxu0 %v7663_v15  ;;  %v8204_v15 = vld [vmem:[#allocation25 + $0x1] ss:$0 sm:$0xff] }
0x1e76   :  { %9012 = vmatprep.subr.mxu0 %v7662_v16 }
0x1e77   :  { %9013 = vmatpush3.msra.mxu0 %v7662_v16 }
0x1e78   :  { %9014 = vmatprep.subr.mxu0 %v7661_v51 }
0x1e79   :  { %9015 = vmatpush3.msra.mxu0 %v7661_v51 }
0x1efb   :  { %v7623_v0 = vpop.xlane.xlu1 %7622 }
0x1efc   :  { %v7625_v1 = vmul.f32 0.03125, %v7623_v0  ;;  %v7905_v0 = vld [vmem:[%s10891_s26 + $0x18] sm:$0xff] }
0x1efd   :  { %v7620_v2 = vpop.xlane.xlu0 %7619  ;;  %9038 = vmatprep.subr.mxu0 %v7905_v0 }
0x1efe   :  { %v7624_v3 = vmul.f32 0.03125, %v7620_v2  ;;  %v7627_v4 = vsub.f32 %v7613_v60, %v7625_v1  ;;  %v7904_v1 = vld [vmem:[%s10891_s26 + $0x10] sm:$0xff]  ;;  %v7903_v2 = vld [vmem:[%s10891_s26 + $0x8] sm:$0xff] }
0x1f00   :  { %v7626_v7 = vsub.f32 %v7612_v62, %v7624_v3  ;;  %v7629_v11 = vmul.f32 %v7627_v4, %v7627_v4  ;;  %v7902_v3 = vld [vmem:[%s10891_s26] sm:$0xff]  ;;  %s9641_s26 = smov [#allocation29]  }
0x1f01   :  { %s8001_s17 = sshll.u32 %s9641_s26, 4  ;;  %s8002_s17 = int_to_ptr.vmem [resolvable:$true] %s8001_s17 }
0x1f02   :  { %v7628_v8 = vmul.f32 %v7626_v7, %v7626_v7  ;;  %v7633_v14 = vsel %vm438_vm5, %v7629_v11, 0.0  ;;  %s9573_s19 = scalar_lea.vmem %s8002_s17, 256  ;;  %p9578_p2 = scmp.lt.s32.totalorder %s8002_s17, %s8002_s17 }
0x1f03   :  { %p9574_p1 = scmp.ne.s32.totalorder %s8002_s17, %s9573_s19  ;;  %p9579_p3 = scmp.lt.s32.totalorder %s9573_s19, %s9573_s19 }
0x1f04   :  { %v7630_v9 = vsel %vm438_vm5, %v7628_v8, 0.0 }
0x1f05   :  { %7631 = vadd.xlane.f32.xlu0 %v7630_v9  ;;  %p9580_p4 = por %p9579_p3, %p9578_p2 }
0x1f07   :  { %p9581_p5 = pnand %p9580_p4, %p9574_p1 }
0x1f09   :  { %7634 = vadd.xlane.f32.xlu0 %v7633_v14 }
0x1f8e   :  { %v7632_v40 = vpop.xlane.xlu0 %7631 }
0x1f8f   :  { %v7636_v13 = vmul.f32 0.03125, %v7632_v40 }
0x1f91   :  { %v7638_v22 = vadd.f32 1e-05, %v7636_v13 }
0x1f92   :  { %v7635_v42 = vpop.xlane.xlu0 %7634 }
0x1f93   :  { %9223 = vrsqrt.f32 %v7638_v22  ;;  %v7637_v23 = vmul.f32 0.03125, %v7635_v42  ;;  %v8206_v22 = vld [vmem:[#allocation28] ss:$0 sm:$0xff] }
0x1f95   :  { %v7639_v5 = vadd.f32 1e-05, %v7637_v23 }
0x1f97   :  { %9225 = vrsqrt.f32 %v7639_v5 }
0x1fa0   :  { %v9224_v24 = vpop.eup %9223 }
0x1fa1   :  { %v7642_v25 = vmul.f32 %v9224_v24, %v7626_v7 }
0x1fa3   :  { %v7650_v27 = vmul.f32 %v8188_v38, %v7642_v25 }
0x1fa4   :  { %v9226_v28 = vpop.eup %9225 }
0x1fa5   :  { %v7643_v29 = vmul.f32 %v9226_v28, %v7627_v4  ;;  %v7658_v55 = vadd.f32 %v8189_v26, %v7650_v27 }
0x1fa7   :  { %v7651_v19 = vmul.f32 %v8188_v38, %v7643_v29  ;;  %9016 = vmatprep.mubr.msk.f32.mxu0 %vm438_vm5, %v7658_v55 }
0x1fa9   :  { %v7659_v30 = vadd.f32 %v8189_v26, %v7651_v19 }
0x1fab   :  { %9017 = vmatmul.mubr.msk.f32.vlgmr.msra.gmra.mxu0 %vm438_vm5, %v7659_v30 }
0x1fac   :  { %9039 = vmatpush3.msra.mxu0 %v7905_v0 }
0x1fad   :  { %9040 = vmatprep.subr.mxu0 %v7904_v1 }
0x1fae   :  { %9041 = vmatpush3.msra.mxu0 %v7904_v1 }
0x1faf   :  { %9042 = vmatprep.subr.mxu0 %v7903_v2 }
0x1fb0   :  { %9043 = vmatpush3.msra.mxu0 %v7903_v2 }
0x1fb1   :  { %9044 = vmatprep.subr.mxu0 %v7902_v3 }
0x1fb2   :  { %9045 = vmatpush3.msra.mxu0 %v7902_v3 }
0x206b   :  { %v9018_v44 = vpop.f32.mrf.mxu0 }
0x206c   :  { %v7751_v33 = vadd.f32 %v9018_v44, %v8190_v37 }
0x206d   :  { %v7745_v47 = vpop.f32.mrf.mxu0 }
0x206e   :  { %v7746_v32 = vadd.f32 %v8190_v37, %v7745_v47  ;;  %v7755_v49 = vmax.f32 %v7751_v33, 0.0 }
0x2070   :  { %v7754_v48 = vmax.f32 %v7746_v32, 0.0 }
0x2072   :  { %9035 = vmatprep.mubr.msk.f32.mxu1 %vm4040_vm13, %v7754_v48 }
0x2073   :  { %9036 = vmatmul.mubr.msk.f32.vlgmr.msra.gmra.mxu1 %vm4040_vm13, %v7755_v49 }
0x2133   :  { %v9037_v39 = vpop.f32.mrf.mxu1 }
0x2134   :  { %v7851_v41 = vadd.f32 %v9037_v39, %v8201_v43 }
0x2135   :  { %v7845_v46 = vpop.f32.mrf.mxu1 }
0x2136   :  { %v7855_v45 = vadd.f32 %v7851_v41, %v7659_v30  ;;  %v7846_v52 = vadd.f32 %v8201_v43, %v7845_v46 }
0x2138   :  { %v7854_v6 = vadd.f32 %v7846_v52, %v7658_v55  ;;  %v7863_v53 = vsel %vm438_vm5, %v7855_v45, 0.0 }
0x2139   :  { %7864 = vadd.xlane.f32.xlu0 %v7863_v53 }
0x213a   :  { %v7860_v50 = vsel %vm438_vm5, %v7854_v6, 0.0 }
0x213b   :  { %7861 = vadd.xlane.f32.xlu1 %v7860_v50 }
0x21c2   :  { %v7865_v54 = vpop.xlane.xlu0 %7864 }
0x21c3   :  { %v7867_v56 = vmul.f32 0.03125, %v7865_v54 }
0x21c4   :  { %v7862_v57 = vpop.xlane.xlu1 %7861 }
0x21c5   :  { %v7869_v58 = vsub.f32 %v7855_v45, %v7867_v56  ;;  %v7866_v59 = vmul.f32 0.03125, %v7862_v57 }
0x21c7   :  { %v7868_v60 = vsub.f32 %v7854_v6, %v7866_v59  ;;  %v7871_v61 = vmul.f32 %v7869_v58, %v7869_v58 }
0x21c9   :  { %v7875_v62 = vsel %vm438_vm5, %v7871_v61, 0.0  ;;  %v7870_v12 = vmul.f32 %v7868_v60, %v7868_v60 }
0x21ca   :  { %7876 = vadd.xlane.f32.xlu0 %v7875_v62 }
0x21cb   :  { %v7872_v63 = vsel %vm438_vm5, %v7870_v12, 0.0 }
0x21cc   :  { %7873 = vadd.xlane.f32.xlu1 %v7872_v63 }
0x2253   :  { %v7877_v4 = vpop.xlane.xlu0 %7876 }
0x2254   :  { %v7879_v7 = vmul.f32 0.03125, %v7877_v4 }
0x2255   :  { %v7874_v8 = vpop.xlane.xlu1 %7873 }
0x2256   :  { %v7881_v9 = vadd.f32 1e-05, %v7879_v7  ;;  %v7878_v11 = vmul.f32 0.03125, %v7874_v8 }
0x2258   :  { %9227 = vrsqrt.f32 %v7881_v9  ;;  %v7880_v14 = vadd.f32 1e-05, %v7878_v11 }
0x225a   :  { %9229 = vrsqrt.f32 %v7880_v14 }
0x2265   :  { %v9228_v10 = vpop.eup %9227 }
0x2266   :  { %v7885_v16 = vmul.f32 %v9228_v10, %v7869_v58 }
0x2267   :  { %v9230_v51 = vpop.eup %9229 }
0x2268   :  { %v7884_v17 = vmul.f32 %v9230_v51, %v7868_v60  ;;  %v7893_v18 = vmul.f32 %v8204_v15, %v7885_v16 }
0x226a   :  { %v7892_v21 = vmul.f32 %v8204_v15, %v7884_v17  ;;  %v7901_v13 = vadd.f32 %v8205_v20, %v7893_v18 }
0x226c   :  { %v7900_v40 = vadd.f32 %v8205_v20, %v7892_v21 }
0x226e   :  { %9046 = vmatprep.mubr.msk.f32.mxu0 %vm438_vm5, %v7900_v40 }
0x226f   :  { %9047 = vmatmul.mubr.msk.f32.vlgmr.msra.gmra.mxu0 %vm438_vm5, %v7901_v13 }
0x232f   :  { %v9048_v42 = vpop.f32.mrf.mxu0 }
0x2330   :  { %v7991_v23 = vadd.f32 %v9048_v42, %v8206_v22 }
0x2331   :  { %v7985_v5 = vpop.f32.mrf.mxu0 }
0x2332   :  { %7995 = vst.msk [vmem:[#allocation29 + $0x8] sm:$0xff] %vm337_vm2, %v7991_v23  ;;  %v7986_v24 = vadd.f32 %v8206_v22, %v7985_v5 }
0x2334   :  { %7994 = vst.msk [vmem:[#allocation29] sm:$0xff] %vm337_vm2, %v7986_v24 }
0x2335   :  { %9584 = shalt.err (!%p9581_p5)
}
0x2336   :  { %8007 = dma.vmem_to_hbm [thread:$0]  %s8002_s17, 256, %s10893_s28, [#allocation4], %s9619_s0, %s9619_s0, %s9620_s11  }
0x2337   :  { %9611 = dma.done.wait [#allocation4], 256  }
0x2338   :  { %9612 = vsyncadd [#allocation4], 4294967040 }
0x2339   :  { %8011 = vsyncpa [#allocation3], 1 }
0x233a   :  { %8012 = vsyncpa [#allocation6], 1 }
0x233b   :  { %8013 = vsyncpa [#allocation9], 1 }
0x233c   :  { %8014 = vsyncpa [#allocation12], 1 }
0x233d   :  { %8015 = vsyncpa [#allocation15], 1 }
0x233e   :  { %8016 = vsyncpa [#allocation18], 1 }
0x233f   :  { %8017 = vsyncpa [#allocation21], 1 }
0x2340   :  { %8018 = vsyncpa [#allocation24], 1 }
0x2341   :  { %8019 = vsyncpa [#allocation27], 1 }
0x2342   :  { %8020 = vsyncpa [#allocation4], 1 }

</bundles_post_ra>
